<compile_context>
chip_gen: v7x
topology: tpu7x:2x2x1
jax: 0.10.0
libtpu: 0.0.40
codegen_flags: <defaults>
</compile_context>

<pallas_src>
import jax
import jax.numpy as jnp
from jax.experimental import pallas as pl
from jax.experimental.pallas import tpu as pltpu

EPS = 1e-5  # nn.BatchNorm2d default
_VMEM_LIMIT = 32 * 1024 * 1024  # safe on v5e/v6e and within v7x's 64 MiB physical VMEM


def _conv_conv_stats_kernel(xp_ref, w1_ref, b1_ref, w2_ref, b2_ref,
                            y2_ref, stats_ref,
                            patch1_ref, patch2_ref, pad_ref):
    """Pass A (one image per grid step).

    xp_ref    : (1, H+2, W+2, Cin)  zero-padded input tile (NHWC)
    w1_ref    : (9*Cin, Cout)       merged conv1 taps, row = (dy*3+dx)*Cin + cin
    b1_ref    : (1, Cout)
    w2_ref    : (9*Cout, Cout)      merged conv2 taps
    b2_ref    : (1, Cout)
    y2_ref    : (1, H, W, Cout)     conv2 output (pre-BN) for this image
    stats_ref : (1, 2, Cout)        per-image [sum, sum_of_squares] over H*W
    patch1_ref: VMEM (H*W, 9*Cin)   im2col scratch for conv1
    patch2_ref: VMEM (H*W, 9*Cout)  im2col scratch for conv2
    pad_ref   : VMEM (H+2, W+2, Cout) padded conv1 output (halo scratch)
    """
    _, Hp, Wp, Cin = xp_ref.shape
    H, W = Hp - 2, Wp - 2
    Cout = y2_ref.shape[-1]
    M = H * W

    xp = xp_ref[0]                                   # (Hp, Wp, Cin), loaded once

    # im2col for conv1: build the (M, 9*Cin) patch with 9 static-slice stores.
    for k in range(9):
        dy, dx = k // 3, k % 3
        patch1_ref[:, k * Cin:(k + 1) * Cin] = (
            xp[dy:dy + H, dx:dx + W, :].reshape(M, Cin))

    # Zero ONLY the 1-wide halo border of the conv1 scratch (interior is fully
    # overwritten below) -- avoids the full-scratch double write.
    pad_ref[0:1, :, :] = jnp.zeros((1, Wp, Cout), jnp.float32)
    pad_ref[H + 1:H + 2, :, :] = jnp.zeros((1, Wp, Cout), jnp.float32)
    pad_ref[1:H + 1, 0:1, :] = jnp.zeros((H, 1, Cout), jnp.float32)
    pad_ref[1:H + 1, W + 1:W + 2, :] = jnp.zeros((H, 1, Cout), jnp.float32)

    # conv1: ONE MXU matmul with K = 9*Cin (merged taps), bias fused, written
    # straight into the padded-scratch interior (no y1 temporary).
    pad_ref[1:H + 1, 1:W + 1, :] = (
        jnp.dot(patch1_ref[...], w1_ref[...], preferred_element_type=jnp.float32)
        + b1_ref[...]).reshape(H, W, Cout)

    # im2col for conv2 from the padded conv1 output.
    for k in range(9):
        dy, dx = k // 3, k % 3
        patch2_ref[:, k * Cout:(k + 1) * Cout] = (
            pad_ref[dy:dy + H, dx:dx + W, :].reshape(M, Cout))

    # conv2: ONE MXU matmul with K = 9*Cout.
    y2 = (jnp.dot(patch2_ref[...], w2_ref[...], preferred_element_type=jnp.float32)
          + b2_ref[...])                             # (M, Cout) f32

    # Fused BatchNorm partial statistics: single pass over y2 (no extra re-read).
    stats_ref[0:1, 0:1, :] = jnp.sum(y2, axis=0, keepdims=True).reshape(1, 1, Cout)
    stats_ref[0:1, 1:2, :] = jnp.sum(y2 * y2, axis=0, keepdims=True).reshape(1, 1, Cout)

    y2_ref[...] = y2.reshape(1, H, W, Cout)


def _bn_relu_kernel(y2_ref, stats_ref, gamma_ref, beta_ref, out_ref):
    """Pass B (one image per grid step): global batch stats -> BN + affine + ReLU.

    y2_ref    : (1, H, W, Cout)  pre-BN activations for this image
    stats_ref : (N, 2, Cout)     per-image partial [sum, sumsq] (tiny, untiled)
    gamma_ref, beta_ref : (1, Cout)
    out_ref   : (1, H, W, Cout)
    """
    _, H, W, Cout = y2_ref.shape
    N = stats_ref.shape[0]
    inv_count = 1.0 / float(N * H * W)

    st = jnp.sum(stats_ref[...], axis=0)                         # (2, Cout)
    mean = st[0:1, :] * inv_count                                # (1, Cout)
    # biased (training-mode) variance, computed in f32; clamp guards fp rounding
    var = jnp.maximum(st[1:2, :] * inv_count - mean * mean, 0.0)
    inv = jax.lax.rsqrt(var + EPS)
    scale = gamma_ref[...] * inv                                 # (1, Cout), hoisted
    shift = beta_ref[...] - mean * scale                         # (1, Cout)

    out_ref[...] = jnp.maximum(y2_ref[...] * scale + shift, 0.0)


def double_conv_block(x_nchw, w1, b1, w2, b2, gamma, beta):
    """Forward pass of DoubleConvBlock.

    x_nchw : (N, Cin, H, W)      float32
    w1     : (Cout, Cin, 3, 3)   conv1 weight (PyTorch layout)
    b1     : (Cout,)
    w2     : (Cout, Cout, 3, 3)  conv2 weight
    b2     : (Cout,)
    gamma, beta : (Cout,)        BatchNorm2d affine params
    returns (N, Cout, H, W) float32
    """
    N, Cin, H, W = x_nchw.shape
    Cout = w1.shape[0]
    Hp, Wp = H + 2, W + 2

    # --- layout glue (outside the kernels) ---
    x_nhwc = jnp.transpose(x_nchw, (0, 2, 3, 1)).astype(jnp.float32)
    x_pad = jnp.pad(x_nhwc, ((0, 0), (1, 1), (1, 1), (0, 0)))

    # torch weight (Cout, Cin, kH, kW) -> (kH, kW, Cin, Cout) -> merged (9*Cin, Cout);
    # row index = (dy*3 + dx)*Cin + cin, matching the im2col column order.
    w1_m = jnp.transpose(w1, (2, 3, 1, 0)).reshape(9 * Cin, Cout).astype(jnp.float32)
    w2_m = jnp.transpose(w2, (2, 3, 1, 0)).reshape(9 * Cout, Cout).astype(jnp.float32)
    b1_r = b1.reshape(1, Cout).astype(jnp.float32)
    b2_r = b2.reshape(1, Cout).astype(jnp.float32)
    g_r = gamma.reshape(1, Cout).astype(jnp.float32)
    be_r = beta.reshape(1, Cout).astype(jnp.float32)

    cparams = pltpu.CompilerParams(
        dimension_semantics=("parallel",),      # batch axis -> both TCs on v7x
        vmem_limit_bytes=_VMEM_LIMIT)

    # ---- pass A: tiled over batch; conv1+conv2 and per-image BN partial stats ----
    y2, part_stats = pl.pallas_call(
        _conv_conv_stats_kernel,
        out_shape=(jax.ShapeDtypeStruct((N, H, W, Cout), jnp.float32),
                   jax.ShapeDtypeStruct((N, 2, Cout), jnp.float32)),
        grid=(N,),
        in_specs=[
            pl.BlockSpec((1, Hp, Wp, Cin), lambda n: (n, 0, 0, 0)),
            pl.BlockSpec((9 * Cin, Cout), lambda n: (0, 0)),
            pl.BlockSpec((1, Cout), lambda n: (0, 0)),
            pl.BlockSpec((9 * Cout, Cout), lambda n: (0, 0)),
            pl.BlockSpec((1, Cout), lambda n: (0, 0)),
        ],
        out_specs=(
            pl.BlockSpec((1, H, W, Cout), lambda n: (n, 0, 0, 0)),
            pl.BlockSpec((1, 2, Cout), lambda n: (n, 0, 0)),
        ),
        scratch_shapes=[
            pltpu.VMEM((H * W, 9 * Cin), jnp.float32),    # conv1 im2col patch
            pltpu.VMEM((H * W, 9 * Cout), jnp.float32),   # conv2 im2col patch
            pltpu.VMEM((Hp, Wp, Cout), jnp.float32),      # padded conv1 output (halo)
        ],
        compiler_params=cparams,
    )(x_pad, w1_m, b1_r, w2_m, b2_r)

    # ---- pass B: tiled over batch; global BN (train-mode batch stats) + ReLU ----
    out_nhwc = pl.pallas_call(
        _bn_relu_kernel,
        out_shape=jax.ShapeDtypeStruct((N, H, W, Cout), jnp.float32),
        grid=(N,),
        in_specs=[
            pl.BlockSpec((1, H, W, Cout), lambda n: (n, 0, 0, 0)),
            pl.BlockSpec((N, 2, Cout), lambda n: (0, 0, 0)),
            pl.BlockSpec((1, Cout), lambda n: (0, 0)),
            pl.BlockSpec((1, Cout), lambda n: (0, 0)),
        ],
        out_specs=pl.BlockSpec((1, H, W, Cout), lambda n: (n, 0, 0, 0)),
        compiler_params=cparams,
    )(y2, part_stats, g_r, be_r)

    return jnp.transpose(out_nhwc, (0, 3, 1, 2))


if __name__ == "__main__":
    # Small shapes consistent with the module: N=2, Cin=4, Cout=8, H=W=16
    N, Cin, Cout, H, W = 2, 4, 8, 16, 16
    key = jax.random.PRNGKey(0)
    kx, kw1, kb1, kw2, kb2, kg, kb = jax.random.split(key, 7)

    x = jax.random.normal(kx, (N, Cin, H, W), dtype=jnp.float32)

    # Deterministic synthetic parameters (shapes match nn.Conv2d / nn.BatchNorm2d)
    w1 = jax.random.normal(kw1, (Cout, Cin, 3, 3), dtype=jnp.float32) * 0.1
    b1 = jax.random.normal(kb1, (Cout,), dtype=jnp.float32) * 0.1
    w2 = jax.random.normal(kw2, (Cout, Cout, 3, 3), dtype=jnp.float32) * 0.1
    b2 = jax.random.normal(kb2, (Cout,), dtype=jnp.float32) * 0.1
    gamma = 1.0 + 0.1 * jax.random.normal(kg, (Cout,), dtype=jnp.float32)
    beta = 0.1 * jax.random.normal(kb, (Cout,), dtype=jnp.float32)

    out = double_conv_block(x, w1, b1, w2, b2, gamma, beta)
    out = jax.block_until_ready(out)
    assert out.shape == (N, Cout, H, W), out.shape
    print("KERNEL_OK")
</pallas_src>

<mosaic_0001>
module attributes {stable_mosaic.version = 11 : i64} {
  func.func @_conv_conv_stats_kernel(%arg0: i32, %arg1: memref<1x18x18x4xf32, #tpu.memory_space<vmem>>, %arg2: memref<36x8xf32, #tpu.memory_space<vmem>>, %arg3: memref<1x8xf32, #tpu.memory_space<vmem>>, %arg4: memref<72x8xf32, #tpu.memory_space<vmem>>, %arg5: memref<1x8xf32, #tpu.memory_space<vmem>>, %arg6: memref<1x16x16x8xf32, #tpu.memory_space<vmem>>, %arg7: memref<1x2x8xf32, #tpu.memory_space<vmem>>, %arg8: memref<256x36xf32, #tpu.memory_space<vmem>>, %arg9: memref<256x72xf32, #tpu.memory_space<vmem>>, %arg10: memref<18x18x8xf32, #tpu.memory_space<vmem>>) attributes {dimension_semantics = [#tpu.dimension_semantics<parallel>], iteration_bounds = array<i64: 2>, scalar_prefetch = 0 : i64, scratch_operands = 3 : i64, tpu.core_type = #tpu.core_type<tc>, window_params = [{transform_indices = @transform_0, window_bounds = array<i64: 1, 18, 18, 4>}, {pipeline_mode = #tpu.pipeline_mode<synchronous>, transform_indices = @transform_1, window_bounds = array<i64: 36, 8>}, {pipeline_mode = #tpu.pipeline_mode<synchronous>, transform_indices = @transform_2, window_bounds = array<i64: 1, 8>}, {pipeline_mode = #tpu.pipeline_mode<synchronous>, transform_indices = @transform_3, window_bounds = array<i64: 72, 8>}, {pipeline_mode = #tpu.pipeline_mode<synchronous>, transform_indices = @transform_4, window_bounds = array<i64: 1, 8>}, {transform_indices = @transform_5, window_bounds = array<i64: 1, 16, 16, 8>}, {transform_indices = @transform_6, window_bounds = array<i64: 1, 2, 8>}]} {
    %c0 = arith.constant 0 : index
    %c0_0 = arith.constant 0 : index
    %c0_1 = arith.constant 0 : index
    %c0_2 = arith.constant 0 : index
    %0 = vector.load %arg1[%c0, %c0_0, %c0_1, %c0_2] : memref<1x18x18x4xf32, #tpu.memory_space<vmem>>, vector<1x18x18x4xf32>
    %1 = vector.shape_cast %0 : vector<1x18x18x4xf32> to vector<18x18x4xf32>
    %2 = vector.extract_strided_slice %1 {offsets = [0, 0, 0], sizes = [16, 16, 4], strides = [1, 1, 1]} : vector<18x18x4xf32> to vector<16x16x4xf32>
    %3 = vector.shape_cast %2 : vector<16x16x4xf32> to vector<256x4xf32>
    %c0_3 = arith.constant 0 : index
    %c0_4 = arith.constant 0 : index
    %4 = vector.load %arg8[%c0_3, %c0_4] : memref<256x36xf32, #tpu.memory_space<vmem>>, vector<256x4xf32>
    tpu.vector_store %arg8[%c0_3, %c0_4], %3 {strides = array<i32>} : memref<256x36xf32, #tpu.memory_space<vmem>>, vector<256x4xf32>,
    %5 = vector.extract_strided_slice %1 {offsets = [0, 1, 0], sizes = [16, 16, 4], strides = [1, 1, 1]} : vector<18x18x4xf32> to vector<16x16x4xf32>
    %6 = vector.shape_cast %5 : vector<16x16x4xf32> to vector<256x4xf32>
    %c0_5 = arith.constant 0 : index
    %c4 = arith.constant 4 : index
    %7 = vector.load %arg8[%c0_5, %c4] : memref<256x36xf32, #tpu.memory_space<vmem>>, vector<256x4xf32>
    tpu.vector_store %arg8[%c0_5, %c4], %6 {strides = array<i32>} : memref<256x36xf32, #tpu.memory_space<vmem>>, vector<256x4xf32>,
    %8 = vector.extract_strided_slice %1 {offsets = [0, 2, 0], sizes = [16, 16, 4], strides = [1, 1, 1]} : vector<18x18x4xf32> to vector<16x16x4xf32>
    %9 = vector.shape_cast %8 : vector<16x16x4xf32> to vector<256x4xf32>
    %c0_6 = arith.constant 0 : index
    %c8 = arith.constant 8 : index
    %10 = vector.load %arg8[%c0_6, %c8] : memref<256x36xf32, #tpu.memory_space<vmem>>, vector<256x4xf32>
    tpu.vector_store %arg8[%c0_6, %c8], %9 {strides = array<i32>} : memref<256x36xf32, #tpu.memory_space<vmem>>, vector<256x4xf32>,
    %11 = vector.extract_strided_slice %1 {offsets = [1, 0, 0], sizes = [16, 16, 4], strides = [1, 1, 1]} : vector<18x18x4xf32> to vector<16x16x4xf32>
    %12 = vector.shape_cast %11 : vector<16x16x4xf32> to vector<256x4xf32>
    %c0_7 = arith.constant 0 : index
    %c12 = arith.constant 12 : index
    %13 = vector.load %arg8[%c0_7, %c12] : memref<256x36xf32, #tpu.memory_space<vmem>>, vector<256x4xf32>
    tpu.vector_store %arg8[%c0_7, %c12], %12 {strides = array<i32>} : memref<256x36xf32, #tpu.memory_space<vmem>>, vector<256x4xf32>,
    %14 = vector.extract_strided_slice %1 {offsets = [1, 1, 0], sizes = [16, 16, 4], strides = [1, 1, 1]} : vector<18x18x4xf32> to vector<16x16x4xf32>
    %15 = vector.shape_cast %14 : vector<16x16x4xf32> to vector<256x4xf32>
    %c0_8 = arith.constant 0 : index
    %c16 = arith.constant 16 : index
    %16 = vector.load %arg8[%c0_8, %c16] : memref<256x36xf32, #tpu.memory_space<vmem>>, vector<256x4xf32>
    tpu.vector_store %arg8[%c0_8, %c16], %15 {strides = array<i32>} : memref<256x36xf32, #tpu.memory_space<vmem>>, vector<256x4xf32>,
    %17 = vector.extract_strided_slice %1 {offsets = [1, 2, 0], sizes = [16, 16, 4], strides = [1, 1, 1]} : vector<18x18x4xf32> to vector<16x16x4xf32>
    %18 = vector.shape_cast %17 : vector<16x16x4xf32> to vector<256x4xf32>
    %c0_9 = arith.constant 0 : index
    %c20 = arith.constant 20 : index
    %19 = vector.load %arg8[%c0_9, %c20] : memref<256x36xf32, #tpu.memory_space<vmem>>, vector<256x4xf32>
    tpu.vector_store %arg8[%c0_9, %c20], %18 {strides = array<i32>} : memref<256x36xf32, #tpu.memory_space<vmem>>, vector<256x4xf32>,
    %20 = vector.extract_strided_slice %1 {offsets = [2, 0, 0], sizes = [16, 16, 4], strides = [1, 1, 1]} : vector<18x18x4xf32> to vector<16x16x4xf32>
    %21 = vector.shape_cast %20 : vector<16x16x4xf32> to vector<256x4xf32>
    %c0_10 = arith.constant 0 : index
    %c24 = arith.constant 24 : index
    %22 = vector.load %arg8[%c0_10, %c24] : memref<256x36xf32, #tpu.memory_space<vmem>>, vector<256x4xf32>
    tpu.vector_store %arg8[%c0_10, %c24], %21 {strides = array<i32>} : memref<256x36xf32, #tpu.memory_space<vmem>>, vector<256x4xf32>,
    %23 = vector.extract_strided_slice %1 {offsets = [2, 1, 0], sizes = [16, 16, 4], strides = [1, 1, 1]} : vector<18x18x4xf32> to vector<16x16x4xf32>
    %24 = vector.shape_cast %23 : vector<16x16x4xf32> to vector<256x4xf32>
    %c0_11 = arith.constant 0 : index
    %c28 = arith.constant 28 : index
    %25 = vector.load %arg8[%c0_11, %c28] : memref<256x36xf32, #tpu.memory_space<vmem>>, vector<256x4xf32>
    tpu.vector_store %arg8[%c0_11, %c28], %24 {strides = array<i32>} : memref<256x36xf32, #tpu.memory_space<vmem>>, vector<256x4xf32>,
    %26 = vector.extract_strided_slice %1 {offsets = [2, 2, 0], sizes = [16, 16, 4], strides = [1, 1, 1]} : vector<18x18x4xf32> to vector<16x16x4xf32>
    %27 = vector.shape_cast %26 : vector<16x16x4xf32> to vector<256x4xf32>
    %c0_12 = arith.constant 0 : index
    %c32 = arith.constant 32 : index
    %28 = vector.load %arg8[%c0_12, %c32] : memref<256x36xf32, #tpu.memory_space<vmem>>, vector<256x4xf32>
    tpu.vector_store %arg8[%c0_12, %c32], %27 {strides = array<i32>} : memref<256x36xf32, #tpu.memory_space<vmem>>, vector<256x4xf32>,
    %cst = arith.constant 0.000000e+00 : f32
    %29 = vector.broadcast %cst : f32 to vector<1x18x8xf32>
    %c0_13 = arith.constant 0 : index
    %c0_14 = arith.constant 0 : index
    %c0_15 = arith.constant 0 : index
    %30 = vector.load %arg10[%c0_13, %c0_14, %c0_15] : memref<18x18x8xf32, #tpu.memory_space<vmem>>, vector<1x18x8xf32>
    tpu.vector_store %arg10[%c0_13, %c0_14, %c0_15], %29 {strides = array<i32>} : memref<18x18x8xf32, #tpu.memory_space<vmem>>, vector<1x18x8xf32>,
    %cst_16 = arith.constant 0.000000e+00 : f32
    %31 = vector.broadcast %cst_16 : f32 to vector<1x18x8xf32>
    %c17 = arith.constant 17 : index
    %c0_17 = arith.constant 0 : index
    %c0_18 = arith.constant 0 : index
    %32 = vector.load %arg10[%c17, %c0_17, %c0_18] : memref<18x18x8xf32, #tpu.memory_space<vmem>>, vector<1x18x8xf32>
    tpu.vector_store %arg10[%c17, %c0_17, %c0_18], %31 {strides = array<i32>} : memref<18x18x8xf32, #tpu.memory_space<vmem>>, vector<1x18x8xf32>,
    %cst_19 = arith.constant 0.000000e+00 : f32
    %33 = vector.broadcast %cst_19 : f32 to vector<16x1x8xf32>
    %c1 = arith.constant 1 : index
    %c0_20 = arith.constant 0 : index
    %c0_21 = arith.constant 0 : index
    %34 = vector.load %arg10[%c1, %c0_20, %c0_21] : memref<18x18x8xf32, #tpu.memory_space<vmem>>, vector<16x1x8xf32>
    tpu.vector_store %arg10[%c1, %c0_20, %c0_21], %33 {strides = array<i32>} : memref<18x18x8xf32, #tpu.memory_space<vmem>>, vector<16x1x8xf32>,
    %cst_22 = arith.constant 0.000000e+00 : f32
    %35 = vector.broadcast %cst_22 : f32 to vector<16x1x8xf32>
    %c1_23 = arith.constant 1 : index
    %c17_24 = arith.constant 17 : index
    %c0_25 = arith.constant 0 : index
    %36 = vector.load %arg10[%c1_23, %c17_24, %c0_25] : memref<18x18x8xf32, #tpu.memory_space<vmem>>, vector<16x1x8xf32>
    tpu.vector_store %arg10[%c1_23, %c17_24, %c0_25], %35 {strides = array<i32>} : memref<18x18x8xf32, #tpu.memory_space<vmem>>, vector<16x1x8xf32>,
    %c0_26 = arith.constant 0 : index
    %c0_27 = arith.constant 0 : index
    %37 = vector.load %arg8[%c0_26, %c0_27] : memref<256x36xf32, #tpu.memory_space<vmem>>, vector<256x36xf32>
    %c0_28 = arith.constant 0 : index
    %c0_29 = arith.constant 0 : index
    %38 = vector.load %arg2[%c0_28, %c0_29] : memref<36x8xf32, #tpu.memory_space<vmem>>, vector<36x8xf32>
    %cst_30 = arith.constant dense<0.000000e+00> : vector<256x8xf32>
    %39 = tpu.matmul %37, %38, %cst_30 {dimension_numbers = #tpu.dot_dimension_numbers<[1], [0], [0], [1], [0, 0, 1, 1], [], []>} : vector<256x36xf32>, vector<36x8xf32>, vector<256x8xf32> -> vector<256x8xf32>
    %c0_31 = arith.constant 0 : index
    %c0_32 = arith.constant 0 : index
    %40 = vector.load %arg3[%c0_31, %c0_32] : memref<1x8xf32, #tpu.memory_space<vmem>>, vector<1x8xf32>
    %41 = vector.broadcast %40 : vector<1x8xf32> to vector<256x8xf32>
    %42 = arith.addf %39, %41 : vector<256x8xf32>
    %43 = vector.shape_cast %42 : vector<256x8xf32> to vector<16x16x8xf32>
    %c1_33 = arith.constant 1 : index
    %c1_34 = arith.constant 1 : index
    %c0_35 = arith.constant 0 : index
    %44 = vector.load %arg10[%c1_33, %c1_34, %c0_35] : memref<18x18x8xf32, #tpu.memory_space<vmem>>, vector<16x16x8xf32>
    tpu.vector_store %arg10[%c1_33, %c1_34, %c0_35], %43 {strides = array<i32>} : memref<18x18x8xf32, #tpu.memory_space<vmem>>, vector<16x16x8xf32>,
    %c0_36 = arith.constant 0 : index
    %c0_37 = arith.constant 0 : index
    %c0_38 = arith.constant 0 : index
    %45 = vector.load %arg10[%c0_36, %c0_37, %c0_38] : memref<18x18x8xf32, #tpu.memory_space<vmem>>, vector<16x16x8xf32>
    %46 = vector.shape_cast %45 : vector<16x16x8xf32> to vector<256x8xf32>
    %c0_39 = arith.constant 0 : index
    %c0_40 = arith.constant 0 : index
    %47 = vector.load %arg9[%c0_39, %c0_40] : memref<256x72xf32, #tpu.memory_space<vmem>>, vector<256x8xf32>
    tpu.vector_store %arg9[%c0_39, %c0_40], %46 {strides = array<i32>} : memref<256x72xf32, #tpu.memory_space<vmem>>, vector<256x8xf32>,
    %c0_41 = arith.constant 0 : index
    %c1_42 = arith.constant 1 : index
    %c0_43 = arith.constant 0 : index
    %48 = vector.load %arg10[%c0_41, %c1_42, %c0_43] : memref<18x18x8xf32, #tpu.memory_space<vmem>>, vector<16x16x8xf32>
    %49 = vector.shape_cast %48 : vector<16x16x8xf32> to vector<256x8xf32>
    %c0_44 = arith.constant 0 : index
    %c8_45 = arith.constant 8 : index
    %50 = vector.load %arg9[%c0_44, %c8_45] : memref<256x72xf32, #tpu.memory_space<vmem>>, vector<256x8xf32>
    tpu.vector_store %arg9[%c0_44, %c8_45], %49 {strides = array<i32>} : memref<256x72xf32, #tpu.memory_space<vmem>>, vector<256x8xf32>,
    %c0_46 = arith.constant 0 : index
    %c2 = arith.constant 2 : index
    %c0_47 = arith.constant 0 : index
    %51 = vector.load %arg10[%c0_46, %c2, %c0_47] : memref<18x18x8xf32, #tpu.memory_space<vmem>>, vector<16x16x8xf32>
    %52 = vector.shape_cast %51 : vector<16x16x8xf32> to vector<256x8xf32>
    %c0_48 = arith.constant 0 : index
    %c16_49 = arith.constant 16 : index
    %53 = vector.load %arg9[%c0_48, %c16_49] : memref<256x72xf32, #tpu.memory_space<vmem>>, vector<256x8xf32>
    tpu.vector_store %arg9[%c0_48, %c16_49], %52 {strides = array<i32>} : memref<256x72xf32, #tpu.memory_space<vmem>>, vector<256x8xf32>,
    %c1_50 = arith.constant 1 : index
    %c0_51 = arith.constant 0 : index
    %c0_52 = arith.constant 0 : index
    %54 = vector.load %arg10[%c1_50, %c0_51, %c0_52] : memref<18x18x8xf32, #tpu.memory_space<vmem>>, vector<16x16x8xf32>
    %55 = vector.shape_cast %54 : vector<16x16x8xf32> to vector<256x8xf32>
    %c0_53 = arith.constant 0 : index
    %c24_54 = arith.constant 24 : index
    %56 = vector.load %arg9[%c0_53, %c24_54] : memref<256x72xf32, #tpu.memory_space<vmem>>, vector<256x8xf32>
    tpu.vector_store %arg9[%c0_53, %c24_54], %55 {strides = array<i32>} : memref<256x72xf32, #tpu.memory_space<vmem>>, vector<256x8xf32>,
    %c1_55 = arith.constant 1 : index
    %c1_56 = arith.constant 1 : index
    %c0_57 = arith.constant 0 : index
    %57 = vector.load %arg10[%c1_55, %c1_56, %c0_57] : memref<18x18x8xf32, #tpu.memory_space<vmem>>, vector<16x16x8xf32>
    %58 = vector.shape_cast %57 : vector<16x16x8xf32> to vector<256x8xf32>
    %c0_58 = arith.constant 0 : index
    %c32_59 = arith.constant 32 : index
    %59 = vector.load %arg9[%c0_58, %c32_59] : memref<256x72xf32, #tpu.memory_space<vmem>>, vector<256x8xf32>
    tpu.vector_store %arg9[%c0_58, %c32_59], %58 {strides = array<i32>} : memref<256x72xf32, #tpu.memory_space<vmem>>, vector<256x8xf32>,
    %c1_60 = arith.constant 1 : index
    %c2_61 = arith.constant 2 : index
    %c0_62 = arith.constant 0 : index
    %60 = vector.load %arg10[%c1_60, %c2_61, %c0_62] : memref<18x18x8xf32, #tpu.memory_space<vmem>>, vector<16x16x8xf32>
    %61 = vector.shape_cast %60 : vector<16x16x8xf32> to vector<256x8xf32>
    %c0_63 = arith.constant 0 : index
    %c40 = arith.constant 40 : index
    %62 = vector.load %arg9[%c0_63, %c40] : memref<256x72xf32, #tpu.memory_space<vmem>>, vector<256x8xf32>
    tpu.vector_store %arg9[%c0_63, %c40], %61 {strides = array<i32>} : memref<256x72xf32, #tpu.memory_space<vmem>>, vector<256x8xf32>,
    %c2_64 = arith.constant 2 : index
    %c0_65 = arith.constant 0 : index
    %c0_66 = arith.constant 0 : index
    %63 = vector.load %arg10[%c2_64, %c0_65, %c0_66] : memref<18x18x8xf32, #tpu.memory_space<vmem>>, vector<16x16x8xf32>
    %64 = vector.shape_cast %63 : vector<16x16x8xf32> to vector<256x8xf32>
    %c0_67 = arith.constant 0 : index
    %c48 = arith.constant 48 : index
    %65 = vector.load %arg9[%c0_67, %c48] : memref<256x72xf32, #tpu.memory_space<vmem>>, vector<256x8xf32>
    tpu.vector_store %arg9[%c0_67, %c48], %64 {strides = array<i32>} : memref<256x72xf32, #tpu.memory_space<vmem>>, vector<256x8xf32>,
    %c2_68 = arith.constant 2 : index
    %c1_69 = arith.constant 1 : index
    %c0_70 = arith.constant 0 : index
    %66 = vector.load %arg10[%c2_68, %c1_69, %c0_70] : memref<18x18x8xf32, #tpu.memory_space<vmem>>, vector<16x16x8xf32>
    %67 = vector.shape_cast %66 : vector<16x16x8xf32> to vector<256x8xf32>
    %c0_71 = arith.constant 0 : index
    %c56 = arith.constant 56 : index
    %68 = vector.load %arg9[%c0_71, %c56] : memref<256x72xf32, #tpu.memory_space<vmem>>, vector<256x8xf32>
    tpu.vector_store %arg9[%c0_71, %c56], %67 {strides = array<i32>} : memref<256x72xf32, #tpu.memory_space<vmem>>, vector<256x8xf32>,
    %c2_72 = arith.constant 2 : index
    %c2_73 = arith.constant 2 : index
    %c0_74 = arith.constant 0 : index
    %69 = vector.load %arg10[%c2_72, %c2_73, %c0_74] : memref<18x18x8xf32, #tpu.memory_space<vmem>>, vector<16x16x8xf32>
    %70 = vector.shape_cast %69 : vector<16x16x8xf32> to vector<256x8xf32>
    %c0_75 = arith.constant 0 : index
    %c64 = arith.constant 64 : index
    %71 = vector.load %arg9[%c0_75, %c64] : memref<256x72xf32, #tpu.memory_space<vmem>>, vector<256x8xf32>
    tpu.vector_store %arg9[%c0_75, %c64], %70 {strides = array<i32>} : memref<256x72xf32, #tpu.memory_space<vmem>>, vector<256x8xf32>,
    %c0_76 = arith.constant 0 : index
    %c0_77 = arith.constant 0 : index
    %72 = vector.load %arg9[%c0_76, %c0_77] : memref<256x72xf32, #tpu.memory_space<vmem>>, vector<256x72xf32>
    %c0_78 = arith.constant 0 : index
    %c0_79 = arith.constant 0 : index
    %73 = vector.load %arg4[%c0_78, %c0_79] : memref<72x8xf32, #tpu.memory_space<vmem>>, vector<72x8xf32>
    %cst_80 = arith.constant dense<0.000000e+00> : vector<256x8xf32>
    %74 = tpu.matmul %72, %73, %cst_80 {dimension_numbers = #tpu.dot_dimension_numbers<[1], [0], [0], [1], [0, 0, 1, 1], [], []>} : vector<256x72xf32>, vector<72x8xf32>, vector<256x8xf32> -> vector<256x8xf32>
    %c0_81 = arith.constant 0 : index
    %c0_82 = arith.constant 0 : index
    %75 = vector.load %arg5[%c0_81, %c0_82] : memref<1x8xf32, #tpu.memory_space<vmem>>, vector<1x8xf32>
    %76 = vector.broadcast %75 : vector<1x8xf32> to vector<256x8xf32>
    %77 = arith.addf %74, %76 : vector<256x8xf32>
    %cst_83 = arith.constant dense<0.000000e+00> : vector<8xf32>
    %78 = vector.multi_reduction <add>, %77, %cst_83 [0] : vector<256x8xf32> to vector<8xf32>
    %79 = vector.shape_cast %78 : vector<8xf32> to vector<1x8xf32>
    %80 = vector.shape_cast %79 : vector<1x8xf32> to vector<1x1x8xf32>
    %c0_84 = arith.constant 0 : index
    %c0_85 = arith.constant 0 : index
    %c0_86 = arith.constant 0 : index
    %81 = vector.load %arg7[%c0_84, %c0_85, %c0_86] : memref<1x2x8xf32, #tpu.memory_space<vmem>>, vector<1x1x8xf32>
    tpu.vector_store %arg7[%c0_84, %c0_85, %c0_86], %80 {strides = array<i32>} : memref<1x2x8xf32, #tpu.memory_space<vmem>>, vector<1x1x8xf32>,
    %82 = arith.mulf %77, %77 : vector<256x8xf32>
    %cst_87 = arith.constant dense<0.000000e+00> : vector<8xf32>
    %83 = vector.multi_reduction <add>, %82, %cst_87 [0] : vector<256x8xf32> to vector<8xf32>
    %84 = vector.shape_cast %83 : vector<8xf32> to vector<1x8xf32>
    %85 = vector.shape_cast %84 : vector<1x8xf32> to vector<1x1x8xf32>
    %c0_88 = arith.constant 0 : index
    %c1_89 = arith.constant 1 : index
    %c0_90 = arith.constant 0 : index
    %86 = vector.load %arg7[%c0_88, %c1_89, %c0_90] : memref<1x2x8xf32, #tpu.memory_space<vmem>>, vector<1x1x8xf32>
    tpu.vector_store %arg7[%c0_88, %c1_89, %c0_90], %85 {strides = array<i32>} : memref<1x2x8xf32, #tpu.memory_space<vmem>>, vector<1x1x8xf32>,
    %87 = vector.shape_cast %77 : vector<256x8xf32> to vector<1x16x16x8xf32>
    %c0_91 = arith.constant 0 : index
    %c0_92 = arith.constant 0 : index
    %c0_93 = arith.constant 0 : index
    %c0_94 = arith.constant 0 : index
    %88 = vector.load %arg6[%c0_91, %c0_92, %c0_93, %c0_94] : memref<1x16x16x8xf32, #tpu.memory_space<vmem>>, vector<1x16x16x8xf32>
    tpu.vector_store %arg6[%c0_91, %c0_92, %c0_93, %c0_94], %87 {strides = array<i32>} : memref<1x16x16x8xf32, #tpu.memory_space<vmem>>, vector<1x16x16x8xf32>,
    return
  }
  func.func @transform_0(%arg0: i32) -> (i32, i32, i32, i32) {
    %c0_i32 = arith.constant 0 : i32
    %c0_i32_0 = arith.constant 0 : i32
    %c0_i32_1 = arith.constant 0 : i32
    %c0_i32_2 = arith.constant 0 : i32
    return %arg0, %c0_i32, %c0_i32_0, %c0_i32_1 : i32, i32, i32, i32
  }
  func.func @transform_1(%arg0: i32) -> (i32, i32) {
    %c0_i32 = arith.constant 0 : i32
    %c0_i32_0 = arith.constant 0 : i32
    %c0_i32_1 = arith.constant 0 : i32
    return %c0_i32, %c0_i32_0 : i32, i32
  }
  func.func @transform_2(%arg0: i32) -> (i32, i32) {
    %c0_i32 = arith.constant 0 : i32
    %c0_i32_0 = arith.constant 0 : i32
    %c0_i32_1 = arith.constant 0 : i32
    return %c0_i32, %c0_i32_0 : i32, i32
  }
  func.func @transform_3(%arg0: i32) -> (i32, i32) {
    %c0_i32 = arith.constant 0 : i32
    %c0_i32_0 = arith.constant 0 : i32
    %c0_i32_1 = arith.constant 0 : i32
    return %c0_i32, %c0_i32_0 : i32, i32
  }
  func.func @transform_4(%arg0: i32) -> (i32, i32) {
    %c0_i32 = arith.constant 0 : i32
    %c0_i32_0 = arith.constant 0 : i32
    %c0_i32_1 = arith.constant 0 : i32
    return %c0_i32, %c0_i32_0 : i32, i32
  }
  func.func @transform_5(%arg0: i32) -> (i32, i32, i32, i32) {
    %c0_i32 = arith.constant 0 : i32
    %c0_i32_0 = arith.constant 0 : i32
    %c0_i32_1 = arith.constant 0 : i32
    %c0_i32_2 = arith.constant 0 : i32
    return %arg0, %c0_i32, %c0_i32_0, %c0_i32_1 : i32, i32, i32, i32
  }
  func.func @transform_6(%arg0: i32) -> (i32, i32, i32) {
    %c0_i32 = arith.constant 0 : i32
    %c0_i32_0 = arith.constant 0 : i32
    %c0_i32_1 = arith.constant 0 : i32
    return %arg0, %c0_i32, %c0_i32_0 : i32, i32, i32
  }
}

</mosaic_0001>

<bundles_post_ra>
// kernel: tpu_custom_call.1
= control target key start
LH: loop header
LB: loop body
LE: loop exit
PB: predicated region body
PF: predicated region fallthrough
CT: control target
= control target key end

     0   :  { %12 = vsyncpa [#allocation6], 0  ;;  %s7411_s0 = inlined_call_operand.vmem [shape: f32[2,18,18,4], index: 0, kind: input, shape index: {}]   ;;  %s7412_s1 = inlined_call_operand.vmem [shape: f32[36,8], index: 1, kind: input, shape index: {}]   ;;  %s7413_s2 = inlined_call_operand.vmem [shape: f32[1,8], index: 2, kind: input, shape index: {}]   ;;  %s7414_s3 = inlined_call_operand.vmem [shape: f32[72,8], index: 3, kind: input, shape index: {}]   ;;  %s7415_s4 = inlined_call_operand.vmem [shape: f32[1,8], index: 4, kind: input, shape index: {}]   ;;  %s7416_s5 = inlined_call_operand.vmem [shape: f32[2,16,16,8], index: 5, kind: output, shape index: {0}]   ;;  %s7417_s6 = inlined_call_operand.hbm [shape: f32[2,2,8], index: 6, kind: output, shape index: {1}]  }
   0x1   :  { %14 = vsyncpa [#allocation6 + $0x1], 0  ;;  %s4834_s21 = smov 0   ;;  %s4836_s22 = smov 0  }
   0x2   :  { %s4838_s23 = smov 0   ;;  %s4840_s24 = smov 0  }
   0x3 LB: > { %s4855_s25 = sadd.s32 4294967295, %s4783_s24   ;;  %s4352_s26 = sadd.s32 4294967294, %s4783_s24   ;;  %s4783_s24 = sphi %s4840_s24, %s7616_s24   ;;  %s4779_s23 = sphi %s4838_s23, %s7615_s23   ;;  %s4775_s22 = sphi %s4836_s22, %s7614_s22   ;;  %s4771_s21 = sphi %s4834_s21, %s7613_s21  }
   0x4   : > { %s4859_s27 = sadd.s32 1, %s4783_s24   ;;  %s163_s28 = sadd.s32 1, %s4779_s23 }
   0x5   : > { %s160_s29 = ssub.s32 %s4783_s24, %s4859_s27  ;;  %p173_p0 = scmp.ne.s32.totalorder %s4779_s23, %s4775_s22 }
   0x6   : > { %p161_p1 = scmp.eq.s32.totalorder %s160_s29, 0  ;;  %p174_p2 = scmp.eq.s32.totalorder %s4855_s25, 1 }
   0x7   : > { %p179_p3 = scmp.ne.s32.totalorder %s4775_s22, %s4771_s21  ;;  %p180_p4 = scmp.eq.s32.totalorder %s4352_s26, 1 }
   0x8   : > { %s4870_s30 = scalar_select %p161_p1, %s4779_s23, %s163_s28  }
   0x9   : > { %p4872_p5 = por %p174_p2, %p173_p0  ;;  %p4876_p6 = por %p180_p4, %p179_p3 }
   0xa   : > { %p4355_p7 = scmp.ge.s32.totalorder %s4783_s24, 1  ;;  %p218_p8 = scmp.lt.s32.totalorder %s4783_s24, 3 }
   0xc   : > { %p219_p9 = pnand %p4355_p7, %p218_p8 }
   0xe   : > { %222 = sbr.rel (%p219_p9) target bundleno = 1695 (0x69f), region = 40 }
  0x15   : > { %p253_p10 = scmp.lt.s32.totalorder %s4855_s25, 1  ;;  %vm317_vm0 = vcmask 31744   ;;  %vm398_vm1 = vcmask 1046528   ;;  %s4785_s14 = smov 4   ;;  %vm608_vm2 = vcmask 1045504   ;;  %vm575_vm3 = vcmask 64544  }
  0x16   : > { %s4786_s15 = smov 8   ;;  %s4787_s16 = smov 12   ;;  %vm785_vm4 = vcmask 97344   ;;  %vm916_vm5 = vcmask 130144   ;;  %vm1051_vm6 = vcmask 162944   ;;  %vm1802_vm7 = vcmask 1043456  }
  0x17   : > { %s4884_s9 = scalar_select %p253_p10, %s4855_s25, 1  ;;  %vm1185_vm8 = vcmask 195744   ;;  %vm1316_vm9 = vcmask 228544   ;;  %vm1451_vm10 = vcmask 261344   ;;  %vm1585_vm11 = vcmask 294144  }
  0x18   : > { %s4788_s17 = smov 16   ;;  %s4789_s18 = smov 20   ;;  %vm1705_vm12 = vcmask 293888   ;;  %vm1618_vm13 = vcmask 64512   ;;  %vm1621_vm14 = vcmask 58368   ;;  %vm1628_vm15 = vcmask 57344  }
  0x19   : > { %s4668_s10 = smul.u32 432, %s4884_s9  ;;  %s4790_s19 = smov 24  }
  0x1a   : > { %s4791_s20 = smov 28   ;;  %s4792_s26 = smov 32  }
  0x1b   : > { %s4890_s13 = scalar_lea.vmem %s7411_s0, %s4668_s10  ;;  %s4428_s12 = sshll.u32 %s4855_s25, 5 }
  0x1c   : > { %v4893_v0 = vld [vmem:[%s4890_s13] sm:$0xff]  ;;  %v4896_v1 = vld [vmem:[%s4890_s13 + $0x8] sm:$0xff]  ;;  %v4899_v2 = vld [vmem:[%s4890_s13 + $0x18] sm:$0xff]  ;;  %s7368_s28 = scalar_lea.hbm %s7417_s6, %s4428_s12 }
  0x1d   : > { %v399_v3 = vrot.slane %v4893_v0, 1  ;;  %v400_v4 = vrot.slane %v4896_v1, 1  ;;  %v4904_v5 = vld [vmem:[%s4890_s13 + $0x20] sm:$0xff]  ;;  %v404_v6 = vrot.slane %v4899_v2, 1  ;;  %v4908_v7 = vld [vmem:[%s4890_s13 + $0x10] sm:$0x3] }
  0x1e   : > { %318 = vst.msk [vmem:[#allocation2] sm:$0xff] %vm317_vm0, %v4893_v0  ;;  %319 = vst.msk [vmem:[#allocation2 + $0x8] sm:$0xff] %vm317_vm0, %v4896_v1  ;;  %v405_v8 = vrot.slane %v4904_v5, 1  ;;  %v402_v9 = vrot.slane %v4908_v7, 1  ;;  %v4919_v10 = vld [vmem:[%s4890_s13 + $0x28] sm:$0x3] }
  0x1f   : > { %320 = vst.msk [vmem:[#allocation2 + $0x10] sm:$0xff] %vm317_vm0, %v4899_v2  ;;  %v4922_v11 = vld [vmem:[%s4890_s13 + $0x30] sm:$0xff]  ;;  %v4925_v12 = vld [vmem:[%s4890_s13 + $0x38] sm:$0xff]  ;;  %321 = vst.msk [vmem:[#allocation2 + $0x18] sm:$0xff] %vm317_vm0, %v4904_v5  ;;  %v401_v13 = vsel %vm398_vm1, %v399_v3, %v400_v4  ;;  %v407_v14 = vrot.slane %v4919_v10, 1 }
  0x20   : > { %v4932_v15 = vld [vmem:[%s4890_s13 + $0x40] sm:$0x3]  ;;  %v4935_v16 = vld [vmem:[%s4890_s13 + $0x48] sm:$0xff]  ;;  %322 = vst.msk [vmem:[#allocation2 + $0x20] sm:$0xff] %vm317_vm0, %v4922_v11  ;;  %323 = vst.msk [vmem:[#allocation2 + $0x28] sm:$0xff] %vm317_vm0, %v4925_v12  ;;  %479 = vrot.lane.b32.xlu0 %v401_v13, %s4785_s14  ;;  %v4943_v17 = vsel %vm398_vm1, %v404_v6, %v405_v8  ;;  %v403_v20 = vsel %vm398_vm1, %v400_v4, %v402_v9  ;;  %v409_v21 = vrot.slane %v4922_v11, 1 }
  0x21   : > { %v4946_v18 = vld [vmem:[%s4890_s13 + $0x50] sm:$0xff]  ;;  %v4949_v19 = vld [vmem:[%s4890_s13 + $0x60] sm:$0xff]  ;;  %324 = vst.msk [vmem:[#allocation2 + $0x30] sm:$0xff] %vm317_vm0, %v4935_v16  ;;  %483 = vrot.lane.b32.xlu1 %v4943_v17, %s4785_s14  ;;  %v410_v22 = vrot.slane %v4925_v12, 1  ;;  %v4959_v23 = vld [vmem:[%s4890_s13 + $0x68] sm:$0xff]  ;;  %v4969_v25 = vsel %vm398_vm1, %v405_v8, %v407_v14  ;;  %v412_v26 = vrot.slane %v4932_v15, 1 }
  0x22   : > { %v4962_v24 = vld [vmem:[%s4890_s13 + $0x78] sm:$0xff]  ;;  %325 = vst.msk [vmem:[#allocation2 + $0x38] sm:$0xff] %vm317_vm0, %v4946_v18  ;;  %326 = vst.msk [vmem:[#allocation2 + $0x40] sm:$0xff] %vm317_vm0, %v4949_v19  ;;  %v4973_v27 = vld [vmem:[%s4890_s13 + $0x80] sm:$0xff]  ;;  %v414_v34 = vrot.slane %v4935_v16, 1  ;;  %v415_v35 = vrot.slane %v4946_v18, 1 }
  0x23   : > { %327 = vst.msk [vmem:[#allocation2 + $0x48] sm:$0xff] %vm317_vm0, %v4959_v23  ;;  %328 = vst.msk [vmem:[#allocation2 + $0x50] sm:$0xff] %vm317_vm0, %v4962_v24  ;;  %v4980_v28 = vld [vmem:[%s4890_s13 + $0x58] sm:$0x3]  ;;  %v4983_v29 = vld [vmem:[%s4890_s13 + $0x90] sm:$0xff]  ;;  %v5004_v33 = vsel %vm398_vm1, %v409_v21, %v410_v22  ;;  %v5022_v39 = vsel %vm398_vm1, %v410_v22, %v412_v26  ;;  %v419_v48 = vrot.slane %v4949_v19, 1 }
  0x24   : > { %v4986_v30 = vld [vmem:[%s4890_s13 + $0x98] sm:$0xff]  ;;  %329 = vst.msk [vmem:[#allocation2 + $0x58] sm:$0xff] %vm317_vm0, %v4973_v27  ;;  %481 = vrot.lane.b32.xlu0 %v403_v20, %s4785_s14  ;;  %v4992_v31 = vld [vmem:[%s4890_s13 + $0xa8] sm:$0xff]  ;;  %v4995_v32 = vld [vmem:[%s4890_s13 + $0xb0] sm:$0xff]  ;;  %v417_v40 = vrot.slane %v4980_v28, 1  ;;  %v5060_v47 = vsel %vm398_vm1, %v414_v34, %v415_v35  ;;  %v420_v49 = vrot.slane %v4959_v23, 1 }
  0x25   : > { %330 = vst.msk [vmem:[#allocation2 + $0x60] sm:$0xff] %vm317_vm0, %v4983_v29  ;;  %331 = vst.msk [vmem:[#allocation2 + $0x68] sm:$0xff] %vm317_vm0, %v4986_v30  ;;  %485 = vrot.lane.b32.xlu1 %v4969_v25, %s4785_s14  ;;  %v5009_v36 = vld [vmem:[%s4890_s13 + $0xc0] sm:$0xff]  ;;  %v5012_v37 = vld [vmem:[%s4890_s13 + $0xc8] sm:$0xff]  ;;  %v424_v60 = vrot.slane %v4962_v24, 1  ;;  %v425_v61 = vrot.slane %v4973_v27, 1 }
  0x26   : > { %v5015_v38 = vld [vmem:[%s4890_s13 + $0xd8] sm:$0xff]  ;;  %332 = vst.msk [vmem:[#allocation2 + $0x70] sm:$0xff] %vm317_vm0, %v4992_v31  ;;  %333 = vst.msk [vmem:[#allocation2 + $0x78] sm:$0xff] %vm317_vm0, %v4995_v32  ;;  %v5026_v41 = vld [vmem:[%s4890_s13 + $0xe0] sm:$0xff]  ;;  %v5075_v52 = vsel %vm398_vm1, %v415_v35, %v417_v40  ;;  %v5106_v59 = vsel %vm398_vm1, %v419_v48, %v420_v49  ;;  %v609_v8 = vrot.slane %v4893_v0, 2  ;;  %v429_v13 = vrot.slane %v4983_v29, 1 }
  0x27   : > { %334 = vst.msk [vmem:[#allocation2 + $0x80] sm:$0xff] %vm317_vm0, %v5009_v36  ;;  %335 = vst.msk [vmem:[#allocation2 + $0x88] sm:$0xff] %vm317_vm0, %v5012_v37  ;;  %v5035_v42 = vld [vmem:[%s4890_s13 + $0x70] sm:$0x3]  ;;  %v5041_v44 = vld [vmem:[%s4890_s13 + $0xf8] sm:$0xff]  ;;  %v5137_v9 = vsel %vm398_vm1, %v424_v60, %v425_v61  ;;  %v430_v14 = vrot.slane %v4986_v30, 1 }
  0x28   : > { %336 = vst.msk [vmem:[#allocation2 + $0x90] sm:$0xff] %vm317_vm0, %v5015_v38  ;;  %v5038_v43 = vld [vmem:[%s4890_s13 + $0xf0] sm:$0xff]  ;;  %337 = vst.msk [vmem:[#allocation2 + $0x98] sm:$0xff] %vm317_vm0, %v5026_v41  ;;  %487 = vrot.lane.b32.xlu0 %v5004_v33, %s4785_s14  ;;  %v5048_v45 = vld [vmem:[%s4890_s13 + $0x108] sm:$0xff]  ;;  %v422_v53 = vrot.slane %v5035_v42, 1  ;;  %v7418_v20 = vrot.slane %v4896_v1, 2 }
  0x29   : > { %v5051_v46 = vld [vmem:[%s4890_s13 + $0x110] sm:$0xff]  ;;  %338 = vst.msk [vmem:[#allocation2 + $0xa0] sm:$0xff] %vm317_vm0, %v5038_v43  ;;  %339 = vst.msk [vmem:[#allocation2 + $0xa8] sm:$0xff] %vm317_vm0, %v5041_v44  ;;  %489 = vrot.lane.b32.xlu1 %v5022_v39, %s4785_s14  ;;  %v5065_v50 = vld [vmem:[%s4890_s13 + $0x120] sm:$0xff]  ;;  %v5159_v34 = vsel %vm398_vm1, %v429_v13, %v430_v14  ;;  %v434_v35 = vrot.slane %v4992_v31, 1  ;;  %v435_v40 = vrot.slane %v4995_v32, 1 }
  0x2a   : > { %v5068_v51 = vld [vmem:[%s4890_s13 + $0x128] sm:$0xff]  ;;  %340 = vst.msk [vmem:[#allocation2 + $0xb0] sm:$0xff] %vm317_vm0, %v5048_v45  ;;  %341 = vst.msk [vmem:[#allocation2 + $0xb8] sm:$0xff] %vm317_vm0, %v5051_v46  ;;  %v5079_v54 = vld [vmem:[%s4890_s13 + $0x138] sm:$0xff]  ;;  %v5121_v3 = vsel %vm398_vm1, %v420_v49, %v422_v53  ;;  %v5152_v0 = vsel %vm608_vm2, %v609_v8, %v7418_v20  ;;  %v445_v20 = vrot.slane %v5026_v41, 1 }
  0x2b   : > { %342 = vst.msk [vmem:[#allocation2 + $0xc0] sm:$0xff] %vm317_vm0, %v5065_v50  ;;  %343 = vst.msk [vmem:[#allocation2 + $0xc8] sm:$0xff] %vm317_vm0, %v5068_v51  ;;  %v5086_v55 = vld [vmem:[%s4890_s13 + $0x88] sm:$0x3]  ;;  %v5089_v56 = vld [vmem:[%s4890_s13 + $0x140] sm:$0xff]  ;;  %v5175_v60 = vsel %vm398_vm1, %v434_v35, %v435_v40  ;;  %v444_v35 = vrot.slane %v5015_v38, 1 }
  0x2c   : > { %7500 = vst [vmem:[#allocation8_spill] sm:$0xff] %v5089_v56  ;;  %344 = vst.msk [vmem:[#allocation2 + $0xd0] sm:$0xff] %vm317_vm0, %v5079_v54  ;;  %491 = vrot.lane.b32.xlu0 %v5060_v47, %s4785_s14  ;;  %v5096_v57 = vld [vmem:[%s4890_s13 + $0x150] sm:$0xff]  ;;  %v5099_v58 = vld [vmem:[%s4890_s13 + $0x158] sm:$0xff]  ;;  %v427_v4 = vrot.slane %v5086_v55, 1 }
  0x2d   : > { %7501 = vst [vmem:[#allocation9_spill] sm:$0xff] %v5096_v57  ;;  %7502 = vst [vmem:[#allocation10_spill] sm:$0xff] %v5099_v58  ;;  %493 = vrot.lane.b32.xlu1 %v5075_v52, %s4785_s14  ;;  %v5111_v62 = vld [vmem:[%s4890_s13 + $0x168] sm:$0xff]  ;;  %v5114_v63 = vld [vmem:[%s4890_s13 + $0x170] sm:$0xff] }
  0x2e   : > { %345 = vst.msk [vmem:[#allocation2 + $0xd8] sm:$0xff] %vm317_vm0, %v5089_v56  ;;  %7503 = vst [vmem:[#allocation11_spill] sm:$0xff] %v5106_v59  ;;  %v5129_v6 = vld [vmem:[%s4890_s13 + $0xa0] sm:$0x3]  ;;  %v5143_v21 = vsel %vm398_vm1, %v425_v61, %v427_v4  ;;  %v5147_v26 = vld [vmem:[%s4890_s13 + $0xb8] sm:$0x3] }
  0x2f   : > { %7504 = vst [vmem:[#allocation12_spill] sm:$0xff] %v5111_v62  ;;  %7505 = vst [vmem:[#allocation13_spill] sm:$0xff] %v5114_v63  ;;  %v432_v22 = vrot.slane %v5129_v6, 1  ;;  %v437_v49 = vrot.slane %v5147_v26, 1  ;;  %v5168_v53 = vld [vmem:[%s4890_s13 + $0xd0] sm:$0x3] }
  0x30   : > { %346 = vst.msk [vmem:[#allocation2 + $0xe0] sm:$0xff] %vm317_vm0, %v5096_v57  ;;  %347 = vst.msk [vmem:[#allocation2 + $0xe8] sm:$0xff] %vm317_vm0, %v5099_v58  ;;  %495 = vrot.lane.b32.xlu0 %v5106_v59, %s4785_s14  ;;  %v439_v61 = vrot.slane %v5009_v36, 1  ;;  %v440_v4 = vrot.slane %v5012_v37, 1  ;;  %v442_v13 = vrot.slane %v5168_v53, 1 }
  0x31   : > { %7506 = vst [vmem:[#allocation14_spill] sm:$0xff] %v5121_v3  ;;  %348 = vst.msk [vmem:[#allocation2 + $0xf0] sm:$0xff] %vm317_vm0, %v5111_v62  ;;  %497 = vrot.lane.b32.xlu1 %v5121_v3, %s4785_s14  ;;  %v5164_v48 = vsel %vm398_vm1, %v430_v14, %v432_v22  ;;  %v5180_v8 = vsel %vm398_vm1, %v435_v40, %v437_v49  ;;  %v5184_v14 = vld [vmem:[%s4890_s13 + $0xe8] sm:$0x3]  ;;  %v5264_v3 = vld [vmem:[%s4890_s13 + $0x160] sm:$0x3] }
  0x32   : > { %349 = vst.msk [vmem:[#allocation2 + $0xf8] sm:$0xff] %vm317_vm0, %v5114_v63  ;;  %7507 = vst [vmem:[#allocation15_spill] sm:$0xff] %v5137_v9  ;;  %v5191_v22 = vsel %vm398_vm1, %v439_v61, %v440_v4  ;;  %v5196_v40 = vsel %vm398_vm1, %v440_v4, %v442_v13  ;;  %v447_v49 = vrot.slane %v5184_v14, 1  ;;  %v5207_v61 = vsel %vm398_vm1, %v444_v35, %v445_v20  ;;  %v5280_v59 = vld [vmem:[%s4890_s13 + $0x178] sm:$0x3] }
  0x33   : > { %7508 = vst [vmem:[#allocation16_spill] sm:$0xff] %v5143_v21  ;;  %7509 = vst [vmem:[#allocation17_spill] sm:$0xff] %v5159_v34  ;;  %vm2287_vm0 = vcmask 130112  }
  0x34   : > { %499 = vrot.lane.b32.xlu0 %v5137_v9, %s4785_s14  ;;  %7510 = vst [vmem:[#allocation18_spill] sm:$0xff] %v5164_v48  ;;  %7511 = vst [vmem:[#allocation19_spill] sm:$0xff] %v5175_v60  ;;  %v5212_v4 = vsel %vm398_vm1, %v445_v20, %v447_v49  ;;  %v5248_v9 = vld [vmem:[%s4890_s13 + $0x148] sm:$0x3] }
  0x35   : > { %501 = vrot.lane.b32.xlu1 %v5143_v21, %s4785_s14  ;;  %7512 = vst [vmem:[#allocation20_spill] sm:$0xff] %v5180_v8  ;;  %7513 = vst [vmem:[#allocation21_spill] sm:$0xff] %v5191_v22  ;;  %v5232_v21 = vld [vmem:[%s4890_s13 + $0x130] sm:$0x3] }
  0x36   : > { %7514 = vst [vmem:[#allocation22_spill] sm:$0xff] %v5196_v40  ;;  %7515 = vst [vmem:[#allocation23_spill] sm:$0xff] %v5207_v61 }
  0x37   : > { %7516 = vst [vmem:[#allocation24_spill] sm:$0xff] %v5212_v4 }
  0x38   : > { %503 = vrot.lane.b32.xlu0 %v5159_v34, %s4785_s14  ;;  %v5216_v34 = vld [vmem:[%s4890_s13 + $0x118] sm:$0x3] }
  0x39   : > { %505 = vrot.lane.b32.xlu1 %v5164_v48, %s4785_s14  ;;  %v5200_v48 = vld [vmem:[%s4890_s13 + $0x100] sm:$0x3]  ;;  %v457_v49 = vrot.slane %v5216_v34, 1 }
  0x3a   : > { %v452_v13 = vrot.slane %v5200_v48, 1 }
  0x3c   : > { %507 = vrot.lane.b32.xlu0 %v5175_v60, %s4785_s14  ;;  %v450_v60 = vrot.slane %v5041_v44, 1 }
  0x3d   : > { %509 = vrot.lane.b32.xlu1 %v5180_v8, %s4785_s14  ;;  %v449_v8 = vrot.slane %v5038_v43, 1 }
  0x3e   : > { %v5228_v20 = vsel %vm398_vm1, %v450_v60, %v452_v13  ;;  %v462_v13 = vrot.slane %v5232_v21, 1 }
  0x3f   : > { %v5223_v35 = vsel %vm398_vm1, %v449_v8, %v450_v60  ;;  %7518 = vst [vmem:[#allocation26_spill] sm:$0xff] %v5228_v20 }
  0x40   : > { %511 = vrot.lane.b32.xlu0 %v5191_v22, %s4785_s14  ;;  %7517 = vst [vmem:[#allocation25_spill] sm:$0xff] %v5223_v35  ;;  %v455_v22 = vrot.slane %v5051_v46, 1 }
  0x41   : > { %513 = vrot.lane.b32.xlu1 %v5196_v40, %s4785_s14  ;;  %v454_v40 = vrot.slane %v5048_v45, 1 }
  0x42   : > { %v5244_v60 = vsel %vm398_vm1, %v455_v22, %v457_v49  ;;  %v467_v49 = vrot.slane %v5248_v9, 1 }
  0x43   : > { %v5239_v8 = vsel %vm398_vm1, %v454_v40, %v455_v22  ;;  %7520 = vst [vmem:[#allocation28_spill] sm:$0xff] %v5244_v60 }
  0x44   : > { %515 = vrot.lane.b32.xlu0 %v5207_v61, %s4785_s14  ;;  %7519 = vst [vmem:[#allocation27_spill] sm:$0xff] %v5239_v8  ;;  %v460_v61 = vrot.slane %v5068_v51, 1 }
  0x45   : > { %517 = vrot.lane.b32.xlu1 %v5212_v4, %s4785_s14  ;;  %v459_v4 = vrot.slane %v5065_v50, 1 }
  0x46   : > { %v5260_v22 = vsel %vm398_vm1, %v460_v61, %v462_v13  ;;  %v472_v13 = vrot.slane %v5264_v3, 1 }
  0x47   : > { %v5255_v40 = vsel %vm398_vm1, %v459_v4, %v460_v61  ;;  %7522 = vst [vmem:[#allocation30_spill] sm:$0xff] %v5260_v22 }
  0x48   : > { %519 = vrot.lane.b32.xlu0 %v5223_v35, %s4785_s14  ;;  %7521 = vst [vmem:[#allocation29_spill] sm:$0xff] %v5255_v40  ;;  %v465_v35 = vrot.slane %v5089_v56, 1 }
  0x49   : > { %521 = vrot.lane.b32.xlu1 %v5228_v20, %s4785_s14  ;;  %v464_v20 = vrot.slane %v5079_v54, 1 }
  0x4a   : > { %v5276_v61 = vsel %vm398_vm1, %v465_v35, %v467_v49  ;;  %v477_v49 = vrot.slane %v5280_v59, 1 }
  0x4b   : > { %v5271_v4 = vsel %vm398_vm1, %v464_v20, %v465_v35  ;;  %7524 = vst [vmem:[#allocation32_spill] sm:$0xff] %v5276_v61 }
  0x4c   : > { %523 = vrot.lane.b32.xlu0 %v5239_v8, %s4785_s14  ;;  %7523 = vst [vmem:[#allocation31_spill] sm:$0xff] %v5271_v4  ;;  %v470_v8 = vrot.slane %v5099_v58, 1 }
  0x4d   : > { %525 = vrot.lane.b32.xlu1 %v5244_v60, %s4785_s14  ;;  %v469_v60 = vrot.slane %v5096_v57, 1 }
  0x4e   : > { %v5292_v35 = vsel %vm398_vm1, %v470_v8, %v472_v13  ;;  %v615_v13 = vrot.slane %v4904_v5, 2 }
  0x4f   : > { %v5287_v20 = vsel %vm398_vm1, %v469_v60, %v470_v8  ;;  %7526 = vst [vmem:[#allocation34_spill] sm:$0xff] %v5292_v35  ;;  %v614_v8 = vrot.slane %v4899_v2, 2 }
  0x50   : > { %527 = vrot.lane.b32.xlu0 %v5255_v40, %s4785_s14  ;;  %7525 = vst [vmem:[#allocation33_spill] sm:$0xff] %v5287_v20  ;;  %v475_v40 = vrot.slane %v5114_v63, 1 }
  0x51   : > { %529 = vrot.lane.b32.xlu1 %v5260_v22, %s4785_s14  ;;  %v474_v22 = vrot.slane %v5111_v62, 1 }
  0x52   : > { %v5303_v60 = vsel %vm398_vm1, %v475_v40, %v477_v49  ;;  %v620_v49 = vrot.slane %v4925_v12, 2 }
  0x53   : > { %7528 = vst [vmem:[#allocation36_spill] sm:$0xff] %v5303_v60 }
  0x54   : > { %531 = vrot.lane.b32.xlu0 %v5271_v4, %s4785_s14  ;;  %v612_v4 = vrot.slane %v4908_v7, 2  ;;  %v5320_v7 = vsel %vm608_vm2, %v614_v8, %v615_v13  ;;  %v629_v8 = vrot.slane %v4949_v19, 2 }
  0x55   : > { %533 = vrot.lane.b32.xlu1 %v5276_v61, %s4785_s14  ;;  %v5300_v61 = vsel %vm398_vm1, %v474_v22, %v475_v40  ;;  %v619_v40 = vrot.slane %v4922_v11, 2 }
  0x56   : > { %7527 = vst [vmem:[#allocation35_spill] sm:$0xff] %v5300_v61 }
  0x58   : > { %535 = vrot.lane.b32.xlu0 %v5287_v20, %s4785_s14  ;;  %v617_v20 = vrot.slane %v4919_v10, 2  ;;  %v5333_v10 = vsel %vm608_vm2, %v619_v40, %v620_v49  ;;  %v632_v40 = vrot.slane %v5035_v42, 2 }
  0x59   : > { %537 = vrot.lane.b32.xlu1 %v5292_v35, %s4785_s14  ;;  %v7529_v35 = vrot.slane %v4896_v1, 2  ;;  %v622_v1 = vrot.slane %v4932_v15, 2 }
  0x5b   : > { %v613_v22 = vsel %vm608_vm2, %v7529_v35, %v612_v4  ;;  %v625_v4 = vrot.slane %v4946_v18, 2  ;;  %v5338_v35 = vsel %vm608_vm2, %v620_v49, %v622_v1  ;;  %v634_v49 = vrot.slane %v4962_v24, 2 }
  0x5c   : > { %539 = vrot.lane.b32.xlu0 %v5300_v61, %s4785_s14  ;;  %v635_v1 = vrot.slane %v4973_v27, 2 }
  0x5d   : > { %541 = vrot.lane.b32.xlu1 %v5303_v60, %s4785_s14  ;;  %v5325_v60 = vsel %vm608_vm2, %v615_v13, %v617_v20  ;;  %v627_v20 = vrot.slane %v4980_v28, 2  ;;  %v630_v13 = vrot.slane %v4959_v23, 2 }
  0x5e   : > { %v5372_v42 = vsel %vm608_vm2, %v634_v49, %v635_v1  ;;  %v645_v49 = vrot.slane %v4995_v32, 2 }
  0x5f   : > { %v5359_v28 = vsel %vm608_vm2, %v629_v8, %v630_v13  ;;  %v640_v8 = vrot.slane %v4986_v30, 2 }
  0x60   : > { %689 = vrot.lane.b32.xlu0 %v5152_v0, %s4786_s15  ;;  %v624_v0 = vrot.slane %v4935_v16, 2 }
  0x61   : > { %691 = vrot.lane.b32.xlu1 %v613_v22, %s4786_s15  ;;  %v5351_v22 = vsel %vm608_vm2, %v625_v4, %v627_v20  ;;  %v639_v20 = vrot.slane %v4983_v29, 2 }
  0x62   : > { %v5346_v15 = vsel %vm608_vm2, %v624_v0, %v625_v4  ;;  %7530 = vst [vmem:[#allocation37_spill] sm:$0xff] %v5351_v22  ;;  %v5364_v0 = vsel %vm608_vm2, %v630_v13, %v632_v40  ;;  %v637_v4 = vrot.slane %v5086_v55, 2  ;;  %v642_v13 = vrot.slane %v5129_v6, 2 }
  0x63   : > { %7531 = vst [vmem:[#allocation38_spill] sm:$0xff] %v5364_v0  ;;  %v5385_v55 = vsel %vm608_vm2, %v639_v20, %v640_v8  ;;  %v644_v40 = vrot.slane %v4992_v31, 2  ;;  %v650_v20 = vrot.slane %v5012_v37, 2 }
  0x64   : > { %693 = vrot.lane.b32.xlu0 %v5320_v7, %s4786_s15 }
  0x65   : > { %695 = vrot.lane.b32.xlu1 %v5325_v60, %s4786_s15  ;;  %v5398_v6 = vsel %vm608_vm2, %v644_v40, %v645_v49  ;;  %v655_v40 = vrot.slane %v5026_v41, 2 }
  0x68   : > { %697 = vrot.lane.b32.xlu0 %v5333_v10, %s4786_s15 }
  0x69   : > { %699 = vrot.lane.b32.xlu1 %v5338_v35, %s4786_s15 }
  0x6c   : > { %701 = vrot.lane.b32.xlu0 %v5346_v15, %s4786_s15 }
  0x6d   : > { %703 = vrot.lane.b32.xlu1 %v5351_v22, %s4786_s15  ;;  %v5377_v22 = vsel %vm608_vm2, %v635_v1, %v637_v4  ;;  %v647_v1 = vrot.slane %v5147_v26, 2  ;;  %v649_v4 = vrot.slane %v5009_v36, 2 }
  0x6e   : > { %7532 = vst [vmem:[#allocation39_spill] sm:$0xff] %v5377_v22 }
  0x6f   : > { %v5411_v26 = vsel %vm608_vm2, %v649_v4, %v650_v20  ;;  %v660_v4 = vrot.slane %v5041_v44, 2 }
  0x70   : > { %705 = vrot.lane.b32.xlu0 %v5359_v28, %s4786_s15 }
  0x71   : > { %707 = vrot.lane.b32.xlu1 %v5364_v0, %s4786_s15  ;;  %v5390_v0 = vsel %vm608_vm2, %v640_v8, %v642_v13  ;;  %v652_v8 = vrot.slane %v5168_v53, 2  ;;  %v654_v13 = vrot.slane %v5015_v38, 2 }
  0x72   : > { %7533 = vst [vmem:[#allocation40_spill] sm:$0xff] %v5390_v0 }
  0x73   : > { %v5424_v53 = vsel %vm608_vm2, %v654_v13, %v655_v40  ;;  %v665_v13 = vrot.slane %v5051_v46, 2 }
  0x74   : > { %709 = vrot.lane.b32.xlu0 %v5372_v42, %s4786_s15 }
  0x75   : > { %711 = vrot.lane.b32.xlu1 %v5377_v22, %s4786_s15  ;;  %v5403_v22 = vsel %vm608_vm2, %v645_v49, %v647_v1  ;;  %v657_v49 = vrot.slane %v5184_v14, 2  ;;  %v659_v1 = vrot.slane %v5038_v43, 2 }
  0x76   : > { %7534 = vst [vmem:[#allocation41_spill] sm:$0xff] %v5403_v22 }
  0x77   : > { %v5437_v14 = vsel %vm608_vm2, %v659_v1, %v660_v4  ;;  %v670_v1 = vrot.slane %v5068_v51, 2 }
  0x78   : > { %713 = vrot.lane.b32.xlu0 %v5385_v55, %s4786_s15 }
  0x79   : > { %715 = vrot.lane.b32.xlu1 %v5390_v0, %s4786_s15  ;;  %v5416_v0 = vsel %vm608_vm2, %v650_v20, %v652_v8  ;;  %v662_v20 = vrot.slane %v5200_v48, 2  ;;  %v664_v8 = vrot.slane %v5048_v45, 2 }
  0x7a   : > { %7535 = vst [vmem:[#allocation42_spill] sm:$0xff] %v5416_v0 }
  0x7b   : > { %v5450_v48 = vsel %vm608_vm2, %v664_v8, %v665_v13  ;;  %v675_v8 = vrot.slane %v5089_v56, 2 }
  0x7c   : > { %717 = vrot.lane.b32.xlu0 %v5398_v6, %s4786_s15 }
  0x7d   : > { %719 = vrot.lane.b32.xlu1 %v5403_v22, %s4786_s15  ;;  %v5429_v22 = vsel %vm608_vm2, %v655_v40, %v657_v49  ;;  %v667_v40 = vrot.slane %v5216_v34, 2  ;;  %v669_v49 = vrot.slane %v5065_v50, 2 }
  0x7e   : > { %7536 = vst [vmem:[#allocation43_spill] sm:$0xff] %v5429_v22 }
  0x7f   : > { %v5463_v34 = vsel %vm608_vm2, %v669_v49, %v670_v1  ;;  %v680_v49 = vrot.slane %v5099_v58, 2 }
  0x80   : > { %721 = vrot.lane.b32.xlu0 %v5411_v26, %s4786_s15  ;;  %7539 = vst [vmem:[#allocation46_spill] sm:$0xff] %v5463_v34 }
  0x81   : > { %723 = vrot.lane.b32.xlu1 %v5416_v0, %s4786_s15  ;;  %v5442_v0 = vsel %vm608_vm2, %v660_v4, %v662_v20  ;;  %v672_v4 = vrot.slane %v5232_v21, 2  ;;  %v674_v20 = vrot.slane %v5079_v54, 2 }
  0x82   : > { %7537 = vst [vmem:[#allocation44_spill] sm:$0xff] %v5442_v0 }
  0x83   : > { %v5476_v21 = vsel %vm608_vm2, %v674_v20, %v675_v8 }
  0x84   : > { %725 = vrot.lane.b32.xlu0 %v5424_v53, %s4786_s15  ;;  %7541 = vst [vmem:[#allocation48_spill] sm:$0xff] %v5476_v21 }
  0x85   : > { %727 = vrot.lane.b32.xlu1 %v5429_v22, %s4786_s15  ;;  %v5455_v22 = vsel %vm608_vm2, %v665_v13, %v667_v40  ;;  %v677_v13 = vrot.slane %v5248_v9, 2  ;;  %v679_v40 = vrot.slane %v5096_v57, 2  ;;  %v682_v9 = vrot.slane %v5264_v3, 2 }
  0x86   : > { %7538 = vst [vmem:[#allocation45_spill] sm:$0xff] %v5455_v22 }
  0x87   : > { %v5491_v20 = vsel %vm608_vm2, %v679_v40, %v680_v49  ;;  %v5496_v3 = vsel %vm608_vm2, %v680_v49, %v682_v9 }
  0x88   : > { %729 = vrot.lane.b32.xlu0 %v5437_v14, %s4786_s15 }
  0x89   : > { %731 = vrot.lane.b32.xlu1 %v5442_v0, %s4786_s15  ;;  %v5468_v0 = vsel %vm608_vm2, %v670_v1, %v672_v4  ;;  %v5481_v1 = vsel %vm608_vm2, %v675_v8, %v677_v13  ;;  %v685_v8 = vrot.slane %v5114_v63, 2 }
  0x8a   : > { %7540 = vst [vmem:[#allocation47_spill] sm:$0xff] %v5468_v0  ;;  %7542 = vst [vmem:[#allocation49_spill] sm:$0xff] %v5481_v1 }
  0x8c   : > { %733 = vrot.lane.b32.xlu0 %v5450_v48, %s4786_s15 }
  0x8d   : > { %735 = vrot.lane.b32.xlu1 %v5455_v22, %s4786_s15 }
  0x90   : > { %737 = vrot.lane.b32.xlu0 %v5463_v34, %s4786_s15 }
  0x91   : > { %739 = vrot.lane.b32.xlu1 %v5468_v0, %s4786_s15  ;;  %v684_v0 = vrot.slane %v5111_v62, 2 }
  0x92   : > { %v480_v22 = vpop.permute.xlu0 %479 }
  0x93   : > { %576 = vst.msk [vmem:[#allocation2] sm:$0xff] %vm575_vm3, %v480_v22  ;;  %v484_v4 = vpop.permute.xlu1 %483  ;;  %v687_v22 = vrot.slane %v5280_v59, 2  ;;  %v5506_v40 = vsel %vm608_vm2, %v684_v0, %v685_v8 }
  0x94   : > { %578 = vst.msk [vmem:[#allocation2 + $0x10] sm:$0xff] %vm575_vm3, %v484_v4  ;;  %741 = vrot.lane.b32.xlu0 %v5476_v21, %s4786_s15 }
  0x95   : > { %743 = vrot.lane.b32.xlu1 %v5481_v1, %s4786_s15  ;;  %v5509_v49 = vsel %vm608_vm2, %v685_v8, %v687_v22 }
  0x96   : > { %v482_v13 = vpop.permute.xlu0 %481 }
  0x97   : > { %577 = vst.msk [vmem:[#allocation2 + $0x8] sm:$0xff] %vm575_vm3, %v482_v13  ;;  %v486_v4 = vpop.permute.xlu1 %485 }
  0x98   : > { %579 = vst.msk [vmem:[#allocation2 + $0x18] sm:$0xff] %vm575_vm3, %v486_v4  ;;  %745 = vrot.lane.b32.xlu0 %v5491_v20, %s4786_s15 }
  0x99   : > { %747 = vrot.lane.b32.xlu1 %v5496_v3, %s4786_s15 }
  0x9a   : > { %v488_v1 = vpop.permute.xlu0 %487 }
  0x9b   : > { %580 = vst.msk [vmem:[#allocation2 + $0x20] sm:$0xff] %vm575_vm3, %v488_v1  ;;  %v490_v59 = vpop.permute.xlu1 %489 }
  0x9c   : > { %581 = vst.msk [vmem:[#allocation2 + $0x28] sm:$0xff] %vm575_vm3, %v490_v59  ;;  %749 = vrot.lane.b32.xlu0 %v5506_v40, %s4786_s15 }
  0x9d   : > { %751 = vrot.lane.b32.xlu1 %v5509_v49, %s4786_s15 }
  0x9e   : > { %v492_v9 = vpop.permute.xlu0 %491 }
  0x9f   : > { %582 = vst.msk [vmem:[#allocation2 + $0x30] sm:$0xff] %vm575_vm3, %v492_v9  ;;  %v494_v0 = vpop.permute.xlu1 %493 }
  0xa0   : > { %583 = vst.msk [vmem:[#allocation2 + $0x38] sm:$0xff] %vm575_vm3, %v494_v0  ;;  %820 = vrot.lane.b32.xlu0 %v4899_v2, %s4787_s16 }
  0xa1   : > { %822 = vrot.lane.b32.xlu1 %v4904_v5, %s4787_s16 }
  0xa2   : > { %v496_v1 = vpop.permute.xlu0 %495 }
  0xa3   : > { %584 = vst.msk [vmem:[#allocation2 + $0x40] sm:$0xff] %vm575_vm3, %v496_v1  ;;  %v498_v8 = vpop.permute.xlu1 %497 }
  0xa4   : > { %585 = vst.msk [vmem:[#allocation2 + $0x48] sm:$0xff] %vm575_vm3, %v498_v8  ;;  %824 = vrot.lane.b32.xlu0 %v4922_v11, %s4787_s16 }
  0xa5   : > { %826 = vrot.lane.b32.xlu1 %v4925_v12, %s4787_s16 }
  0xa6   : > { %v500_v13 = vpop.permute.xlu0 %499 }
  0xa7   : > { %586 = vst.msk [vmem:[#allocation2 + $0x50] sm:$0xff] %vm575_vm3, %v500_v13  ;;  %v502_v22 = vpop.permute.xlu1 %501 }
  0xa8   : > { %587 = vst.msk [vmem:[#allocation2 + $0x58] sm:$0xff] %vm575_vm3, %v502_v22  ;;  %828 = vrot.lane.b32.xlu0 %v4935_v16, %s4787_s16 }
  0xa9   : > { %830 = vrot.lane.b32.xlu1 %v4946_v18, %s4787_s16 }
  0xaa   : > { %v504_v2 = vpop.permute.xlu0 %503 }
  0xab   : > { %588 = vst.msk [vmem:[#allocation2 + $0x60] sm:$0xff] %vm575_vm3, %v504_v2  ;;  %v506_v5 = vpop.permute.xlu1 %505 }
  0xac   : > { %589 = vst.msk [vmem:[#allocation2 + $0x68] sm:$0xff] %vm575_vm3, %v506_v5  ;;  %832 = vrot.lane.b32.xlu0 %v4949_v19, %s4787_s16 }
  0xad   : > { %834 = vrot.lane.b32.xlu1 %v4959_v23, %s4787_s16 }
  0xae   : > { %v508_v4 = vpop.permute.xlu0 %507 }
  0xaf   : > { %590 = vst.msk [vmem:[#allocation2 + $0x70] sm:$0xff] %vm575_vm3, %v508_v4  ;;  %v510_v59 = vpop.permute.xlu1 %509 }
  0xb0   : > { %591 = vst.msk [vmem:[#allocation2 + $0x78] sm:$0xff] %vm575_vm3, %v510_v59  ;;  %836 = vrot.lane.b32.xlu0 %v4962_v24, %s4787_s16 }
  0xb1   : > { %838 = vrot.lane.b32.xlu1 %v4973_v27, %s4787_s16 }
  0xb2   : > { %v512_v9 = vpop.permute.xlu0 %511 }
  0xb3   : > { %592 = vst.msk [vmem:[#allocation2 + $0x80] sm:$0xff] %vm575_vm3, %v512_v9  ;;  %v514_v0 = vpop.permute.xlu1 %513 }
  0xb4   : > { %593 = vst.msk [vmem:[#allocation2 + $0x88] sm:$0xff] %vm575_vm3, %v514_v0  ;;  %840 = vrot.lane.b32.xlu0 %v4983_v29, %s4787_s16 }
  0xb5   : > { %842 = vrot.lane.b32.xlu1 %v4986_v30, %s4787_s16 }
  0xb6   : > { %v516_v1 = vpop.permute.xlu0 %515 }
  0xb7   : > { %594 = vst.msk [vmem:[#allocation2 + $0x90] sm:$0xff] %vm575_vm3, %v516_v1  ;;  %v518_v8 = vpop.permute.xlu1 %517 }
  0xb8   : > { %595 = vst.msk [vmem:[#allocation2 + $0x98] sm:$0xff] %vm575_vm3, %v518_v8  ;;  %844 = vrot.lane.b32.xlu0 %v4992_v31, %s4787_s16 }
  0xb9   : > { %846 = vrot.lane.b32.xlu1 %v4995_v32, %s4787_s16 }
  0xba   : > { %v520_v13 = vpop.permute.xlu0 %519 }
  0xbb   : > { %596 = vst.msk [vmem:[#allocation2 + $0xa0] sm:$0xff] %vm575_vm3, %v520_v13  ;;  %v522_v22 = vpop.permute.xlu1 %521 }
  0xbc   : > { %597 = vst.msk [vmem:[#allocation2 + $0xa8] sm:$0xff] %vm575_vm3, %v522_v22  ;;  %848 = vrot.lane.b32.xlu0 %v5009_v36, %s4787_s16 }
  0xbd   : > { %850 = vrot.lane.b32.xlu1 %v5012_v37, %s4787_s16 }
  0xbe   : > { %v524_v2 = vpop.permute.xlu0 %523 }
  0xbf   : > { %598 = vst.msk [vmem:[#allocation2 + $0xb0] sm:$0xff] %vm575_vm3, %v524_v2  ;;  %v526_v5 = vpop.permute.xlu1 %525 }
  0xc0   : > { %599 = vst.msk [vmem:[#allocation2 + $0xb8] sm:$0xff] %vm575_vm3, %v526_v5  ;;  %852 = vrot.lane.b32.xlu0 %v5015_v38, %s4787_s16 }
  0xc1   : > { %854 = vrot.lane.b32.xlu1 %v5026_v41, %s4787_s16 }
  0xc2   : > { %v528_v4 = vpop.permute.xlu0 %527 }
  0xc3   : > { %600 = vst.msk [vmem:[#allocation2 + $0xc0] sm:$0xff] %vm575_vm3, %v528_v4  ;;  %v530_v59 = vpop.permute.xlu1 %529 }
  0xc4   : > { %601 = vst.msk [vmem:[#allocation2 + $0xc8] sm:$0xff] %vm575_vm3, %v530_v59  ;;  %856 = vrot.lane.b32.xlu0 %v5038_v43, %s4787_s16 }
  0xc5   : > { %858 = vrot.lane.b32.xlu1 %v5041_v44, %s4787_s16 }
  0xc6   : > { %v532_v9 = vpop.permute.xlu0 %531 }
  0xc7   : > { %602 = vst.msk [vmem:[#allocation2 + $0xd0] sm:$0xff] %vm575_vm3, %v532_v9  ;;  %v534_v0 = vpop.permute.xlu1 %533  ;;  %v5608_v9 = vld [vmem:[%s4890_s13 + $0x180] sm:$0xff] }
  0xc8   : > { %603 = vst.msk [vmem:[#allocation2 + $0xd8] sm:$0xff] %vm575_vm3, %v534_v0  ;;  %860 = vrot.lane.b32.xlu0 %v5048_v45, %s4787_s16 }
  0xc9   : > { %862 = vrot.lane.b32.xlu1 %v5051_v46, %s4787_s16 }
  0xca   : > { %v536_v1 = vpop.permute.xlu0 %535 }
  0xcb   : > { %604 = vst.msk [vmem:[#allocation2 + $0xe0] sm:$0xff] %vm575_vm3, %v536_v1  ;;  %v538_v8 = vpop.permute.xlu1 %537  ;;  %v5611_v1 = vld [vmem:[%s4890_s13 + $0x188] sm:$0xff] }
  0xcc   : > { %605 = vst.msk [vmem:[#allocation2 + $0xe8] sm:$0xff] %vm575_vm3, %v538_v8  ;;  %864 = vrot.lane.b32.xlu0 %v5065_v50, %s4787_s16  ;;  %7543 = vst [vmem:[#allocation50_spill] sm:$0xff] %v5611_v1 }
  0xcd   : > { %866 = vrot.lane.b32.xlu1 %v5068_v51, %s4787_s16 }
  0xce   : > { %v540_v13 = vpop.permute.xlu0 %539 }
  0xcf   : > { %606 = vst.msk [vmem:[#allocation2 + $0xf0] sm:$0xff] %vm575_vm3, %v540_v13  ;;  %v542_v22 = vpop.permute.xlu1 %541 }
  0xd0   : > { %607 = vst.msk [vmem:[#allocation2 + $0xf8] sm:$0xff] %vm575_vm3, %v542_v22  ;;  %868 = vrot.lane.b32.xlu0 %v5079_v54, %s4787_s16  ;;  %vm2866_vm3 = vcmask 326912  }
  0xd1   : > { %870 = vrot.lane.b32.xlu1 %v5089_v56, %s4787_s16  ;;  %v7554_v56 = vld [vmem:[#allocation23_spill] sm:$0xff] }
  0xd2   : > { %v690_v2 = vpop.permute.xlu0 %689 }
  0xd3   : > { %786 = vst.msk [vmem:[#allocation2] sm:$0xff] %vm785_vm4, %v690_v2  ;;  %v692_v5 = vpop.permute.xlu1 %691 }
  0xd4   : > { %787 = vst.msk [vmem:[#allocation2 + $0x8] sm:$0xff] %vm785_vm4, %v692_v5  ;;  %872 = vrot.lane.b32.xlu0 %v5096_v57, %s4787_s16 }
  0xd5   : > { %874 = vrot.lane.b32.xlu1 %v5099_v58, %s4787_s16  ;;  %v7552_v58 = vld [vmem:[#allocation21_spill] sm:$0xff] }
  0xd6   : > { %v694_v4 = vpop.permute.xlu0 %693 }
  0xd7   : > { %788 = vst.msk [vmem:[#allocation2 + $0x10] sm:$0xff] %vm785_vm4, %v694_v4  ;;  %v696_v59 = vpop.permute.xlu1 %695 }
  0xd8   : > { %789 = vst.msk [vmem:[#allocation2 + $0x18] sm:$0xff] %vm785_vm4, %v696_v59  ;;  %876 = vrot.lane.b32.xlu0 %v5111_v62, %s4787_s16 }
  0xd9   : > { %878 = vrot.lane.b32.xlu1 %v5114_v63, %s4787_s16  ;;  %v7550_v63 = vld [vmem:[#allocation19_spill] sm:$0xff] }
  0xda   : > { %v698_v0 = vpop.permute.xlu0 %697 }
  0xdb   : > { %790 = vst.msk [vmem:[#allocation2 + $0x20] sm:$0xff] %vm785_vm4, %v698_v0  ;;  %v700_v8 = vpop.permute.xlu1 %699  ;;  %v7544_v0 = vld [vmem:[#allocation11_spill] sm:$0xff] }
  0xdc   : > { %791 = vst.msk [vmem:[#allocation2 + $0x28] sm:$0xff] %vm785_vm4, %v700_v8  ;;  %880 = vrot.lane.b32.xlu0 %v5608_v9, %s4787_s16  ;;  %v7545_v8 = vld [vmem:[#allocation14_spill] sm:$0xff] }
  0xdd   : > { %882 = vrot.lane.b32.xlu1 %v5611_v1, %s4787_s16 }
  0xde   : > { %v702_v13 = vpop.permute.xlu0 %701 }
  0xdf   : > { %792 = vst.msk [vmem:[#allocation2 + $0x30] sm:$0xff] %vm785_vm4, %v702_v13  ;;  %v704_v22 = vpop.permute.xlu1 %703 }
  0xe0   : > { %793 = vst.msk [vmem:[#allocation2 + $0x38] sm:$0xff] %vm785_vm4, %v704_v22  ;;  %955 = vrot.lane.b32.xlu0 %v4943_v17, %s4788_s17 }
  0xe1   : > { %957 = vrot.lane.b32.xlu1 %v4969_v25, %s4788_s17 }
  0xe2   : > { %v706_v2 = vpop.permute.xlu0 %705 }
  0xe3   : > { %794 = vst.msk [vmem:[#allocation2 + $0x40] sm:$0xff] %vm785_vm4, %v706_v2  ;;  %v708_v5 = vpop.permute.xlu1 %707  ;;  %v7546_v2 = vld [vmem:[#allocation15_spill] sm:$0xff] }
  0xe4   : > { %795 = vst.msk [vmem:[#allocation2 + $0x48] sm:$0xff] %vm785_vm4, %v708_v5  ;;  %959 = vrot.lane.b32.xlu0 %v5004_v33, %s4788_s17  ;;  %v7547_v5 = vld [vmem:[#allocation16_spill] sm:$0xff] }
  0xe5   : > { %961 = vrot.lane.b32.xlu1 %v5022_v39, %s4788_s17 }
  0xe6   : > { %v710_v4 = vpop.permute.xlu0 %709 }
  0xe7   : > { %796 = vst.msk [vmem:[#allocation2 + $0x50] sm:$0xff] %vm785_vm4, %v710_v4  ;;  %v712_v59 = vpop.permute.xlu1 %711 }
  0xe8   : > { %797 = vst.msk [vmem:[#allocation2 + $0x58] sm:$0xff] %vm785_vm4, %v712_v59  ;;  %963 = vrot.lane.b32.xlu0 %v5060_v47, %s4788_s17 }
  0xe9   : > { %965 = vrot.lane.b32.xlu1 %v5075_v52, %s4788_s17 }
  0xea   : > { %v714_v17 = vpop.permute.xlu0 %713 }
  0xeb   : > { %798 = vst.msk [vmem:[#allocation2 + $0x60] sm:$0xff] %vm785_vm4, %v714_v17  ;;  %v716_v25 = vpop.permute.xlu1 %715  ;;  %v7548_v17 = vld [vmem:[#allocation17_spill] sm:$0xff] }
  0xec   : > { %799 = vst.msk [vmem:[#allocation2 + $0x68] sm:$0xff] %vm785_vm4, %v716_v25  ;;  %967 = vrot.lane.b32.xlu0 %v7544_v0, %s4788_s17  ;;  %v7549_v25 = vld [vmem:[#allocation18_spill] sm:$0xff] }
  0xed   : > { %969 = vrot.lane.b32.xlu1 %v7545_v8, %s4788_s17 }
  0xee   : > { %v718_v13 = vpop.permute.xlu0 %717 }
  0xef   : > { %800 = vst.msk [vmem:[#allocation2 + $0x70] sm:$0xff] %vm785_vm4, %v718_v13  ;;  %v720_v22 = vpop.permute.xlu1 %719 }
  0xf0   : > { %801 = vst.msk [vmem:[#allocation2 + $0x78] sm:$0xff] %vm785_vm4, %v720_v22  ;;  %971 = vrot.lane.b32.xlu0 %v7546_v2, %s4788_s17 }
  0xf1   : > { %973 = vrot.lane.b32.xlu1 %v7547_v5, %s4788_s17 }
  0xf2   : > { %v722_v4 = vpop.permute.xlu0 %721 }
  0xf3   : > { %802 = vst.msk [vmem:[#allocation2 + $0x80] sm:$0xff] %vm785_vm4, %v722_v4  ;;  %v724_v59 = vpop.permute.xlu1 %723  ;;  %v7551_v4 = vld [vmem:[#allocation20_spill] sm:$0xff] }
  0xf4   : > { %803 = vst.msk [vmem:[#allocation2 + $0x88] sm:$0xff] %vm785_vm4, %v724_v59  ;;  %975 = vrot.lane.b32.xlu0 %v7548_v17, %s4788_s17 }
  0xf5   : > { %977 = vrot.lane.b32.xlu1 %v7549_v25, %s4788_s17 }
  0xf6   : > { %v726_v13 = vpop.permute.xlu0 %725 }
  0xf7   : > { %804 = vst.msk [vmem:[#allocation2 + $0x90] sm:$0xff] %vm785_vm4, %v726_v13  ;;  %v728_v22 = vpop.permute.xlu1 %727  ;;  %v7553_v13 = vld [vmem:[#allocation22_spill] sm:$0xff] }
  0xf8   : > { %805 = vst.msk [vmem:[#allocation2 + $0x98] sm:$0xff] %vm785_vm4, %v728_v22  ;;  %979 = vrot.lane.b32.xlu0 %v7550_v63, %s4788_s17 }
  0xf9   : > { %981 = vrot.lane.b32.xlu1 %v7551_v4, %s4788_s17 }
  0xfa   : > { %v730_v62 = vpop.permute.xlu0 %729 }
  0xfb   : > { %806 = vst.msk [vmem:[#allocation2 + $0xa0] sm:$0xff] %vm785_vm4, %v730_v62  ;;  %v732_v59 = vpop.permute.xlu1 %731  ;;  %v7555_v62 = vld [vmem:[#allocation24_spill] sm:$0xff] }
  0xfc   : > { %807 = vst.msk [vmem:[#allocation2 + $0xa8] sm:$0xff] %vm785_vm4, %v732_v59  ;;  %983 = vrot.lane.b32.xlu0 %v7552_v58, %s4788_s17 }
  0xfd   : > { %985 = vrot.lane.b32.xlu1 %v7553_v13, %s4788_s17  ;;  %v7556_v13 = vld [vmem:[#allocation25_spill] sm:$0xff] }
  0xfe   : > { %v734_v57 = vpop.permute.xlu0 %733 }
  0xff   : > { %808 = vst.msk [vmem:[#allocation2 + $0xb0] sm:$0xff] %vm785_vm4, %v734_v57  ;;  %v736_v22 = vpop.permute.xlu1 %735  ;;  %v7557_v57 = vld [vmem:[#allocation26_spill] sm:$0xff] }
 0x100   : > { %809 = vst.msk [vmem:[#allocation2 + $0xb8] sm:$0xff] %vm785_vm4, %v736_v22  ;;  %987 = vrot.lane.b32.xlu0 %v7554_v56, %s4788_s17 }
 0x101   : > { %989 = vrot.lane.b32.xlu1 %v7555_v62, %s4788_s17  ;;  %v7558_v62 = vld [vmem:[#allocation27_spill] sm:$0xff] }
 0x102   : > { %v738_v4 = vpop.permute.xlu0 %737 }
 0x103   : > { %810 = vst.msk [vmem:[#allocation2 + $0xc0] sm:$0xff] %vm785_vm4, %v738_v4  ;;  %v740_v59 = vpop.permute.xlu1 %739  ;;  %v7559_v4 = vld [vmem:[#allocation28_spill] sm:$0xff] }
 0x104   : > { %811 = vst.msk [vmem:[#allocation2 + $0xc8] sm:$0xff] %vm785_vm4, %v740_v59  ;;  %991 = vrot.lane.b32.xlu0 %v7556_v13, %s4788_s17  ;;  %v5699_v13 = vld [vmem:[%s4890_s13 + $0x190] sm:$0x3] }
 0x105   : > { %993 = vrot.lane.b32.xlu1 %v7557_v57, %s4788_s17  ;;  %v7560_v57 = vld [vmem:[#allocation29_spill] sm:$0xff] }
 0x106   : > { %v742_v58 = vpop.permute.xlu0 %741 }
 0x107   : > { %812 = vst.msk [vmem:[#allocation2 + $0xd0] sm:$0xff] %vm785_vm4, %v742_v58  ;;  %v744_v22 = vpop.permute.xlu1 %743  ;;  %v7561_v58 = vld [vmem:[#allocation30_spill] sm:$0xff] }
 0x108   : > { %813 = vst.msk [vmem:[#allocation2 + $0xd8] sm:$0xff] %vm785_vm4, %v744_v22  ;;  %995 = vrot.lane.b32.xlu0 %v7558_v62, %s4788_s17 }
 0x109   : > { %997 = vrot.lane.b32.xlu1 %v7559_v4, %s4788_s17  ;;  %v7562_v4 = vld [vmem:[#allocation31_spill] sm:$0xff] }
 0x10a   : > { %v746_v56 = vpop.permute.xlu0 %745 }
 0x10b   : > { %814 = vst.msk [vmem:[#allocation2 + $0xe0] sm:$0xff] %vm785_vm4, %v746_v56  ;;  %v748_v59 = vpop.permute.xlu1 %747  ;;  %v7563_v56 = vld [vmem:[#allocation32_spill] sm:$0xff] }
 0x10c   : > { %815 = vst.msk [vmem:[#allocation2 + $0xe8] sm:$0xff] %vm785_vm4, %v748_v59  ;;  %999 = vrot.lane.b32.xlu0 %v7560_v57, %s4788_s17 }
 0x10d   : > { %1001 = vrot.lane.b32.xlu1 %v7561_v58, %s4788_s17  ;;  %v951_v58 = vrot.slane %v5611_v1, 1 }
 0x10e   : > { %v750_v22 = vpop.permute.xlu0 %749 }
 0x10f   : > { %816 = vst.msk [vmem:[#allocation2 + $0xf0] sm:$0xff] %vm785_vm4, %v750_v22  ;;  %v752_v62 = vpop.permute.xlu1 %751  ;;  %v7564_v22 = vld [vmem:[#allocation33_spill] sm:$0xff] }
 0x110   : > { %817 = vst.msk [vmem:[#allocation2 + $0xf8] sm:$0xff] %vm785_vm4, %v752_v62  ;;  %1003 = vrot.lane.b32.xlu0 %v7562_v4, %s4788_s17  ;;  %v950_v62 = vrot.slane %v5608_v9, 1  ;;  %v7565_v4 = vld [vmem:[#allocation34_spill] sm:$0xff]  ;;  %vm3059_vm4 = vcmask 392512  }
 0x111   : > { %1005 = vrot.lane.b32.xlu1 %v7563_v56, %s4788_s17  ;;  %v953_v56 = vrot.slane %v5699_v13, 1 }
 0x112   : > { %v821_v59 = vpop.permute.xlu0 %820 }
 0x113   : > { %917 = vst.msk [vmem:[#allocation2] sm:$0xff] %vm916_vm5, %v821_v59  ;;  %v823_v57 = vpop.permute.xlu1 %822 }
 0x114   : > { %918 = vst.msk [vmem:[#allocation2 + $0x8] sm:$0xff] %vm916_vm5, %v823_v57  ;;  %1007 = vrot.lane.b32.xlu0 %v7564_v22, %s4788_s17  ;;  %v7566_v57 = vld [vmem:[#allocation36_spill] sm:$0xff]  ;;  %v5716_v22 = vsel %vm398_vm1, %v950_v62, %v951_v58 }
 0x115   : > { %1009 = vrot.lane.b32.xlu1 %v7565_v4, %s4788_s17  ;;  %7567 = vst [vmem:[#allocation11_spill] sm:$0xff] %v5716_v22  ;;  %v5719_v4 = vsel %vm398_vm1, %v951_v58, %v953_v56 }
 0x116   : > { %v825_v63 = vpop.permute.xlu0 %824  ;;  %7568 = vst [vmem:[#allocation14_spill] sm:$0xff] %v5719_v4 }
 0x117   : > { %919 = vst.msk [vmem:[#allocation2 + $0x10] sm:$0xff] %vm916_vm5, %v825_v63  ;;  %v827_v59 = vpop.permute.xlu1 %826 }
 0x118   : > { %920 = vst.msk [vmem:[#allocation2 + $0x18] sm:$0xff] %vm916_vm5, %v827_v59  ;;  %1011 = vrot.lane.b32.xlu0 %v5300_v61, %s4788_s17 }
 0x119   : > { %1013 = vrot.lane.b32.xlu1 %v7566_v57, %s4788_s17 }
 0x11a   : > { %v829_v25 = vpop.permute.xlu0 %828 }
 0x11b   : > { %921 = vst.msk [vmem:[#allocation2 + $0x20] sm:$0xff] %vm916_vm5, %v829_v25  ;;  %v831_v17 = vpop.permute.xlu1 %830 }
 0x11c   : > { %922 = vst.msk [vmem:[#allocation2 + $0x28] sm:$0xff] %vm916_vm5, %v831_v17  ;;  %1015 = vrot.lane.b32.xlu0 %v5716_v22, %s4788_s17 }
 0x11d   : > { %1017 = vrot.lane.b32.xlu1 %v5719_v4, %s4788_s17 }
 0x11e   : > { %v833_v63 = vpop.permute.xlu0 %832 }
 0x11f   : > { %923 = vst.msk [vmem:[#allocation2 + $0x30] sm:$0xff] %vm916_vm5, %v833_v63  ;;  %v835_v62 = vpop.permute.xlu1 %834  ;;  %v7570_v63 = vld [vmem:[#allocation38_spill] sm:$0xff] }
 0x120   : > { %924 = vst.msk [vmem:[#allocation2 + $0x38] sm:$0xff] %vm916_vm5, %v835_v62  ;;  %1089 = vrot.lane.b32.xlu0 %v5320_v7, %s4789_s18 }
 0x121   : > { %1091 = vrot.lane.b32.xlu1 %v5325_v60, %s4789_s18  ;;  %v7569_v60 = vld [vmem:[#allocation37_spill] sm:$0xff] }
 0x122   : > { %v837_v17 = vpop.permute.xlu0 %836 }
 0x123   : > { %925 = vst.msk [vmem:[#allocation2 + $0x40] sm:$0xff] %vm916_vm5, %v837_v17  ;;  %v839_v25 = vpop.permute.xlu1 %838 }
 0x124   : > { %926 = vst.msk [vmem:[#allocation2 + $0x48] sm:$0xff] %vm916_vm5, %v839_v25  ;;  %1093 = vrot.lane.b32.xlu0 %v5333_v10, %s4789_s18  ;;  %v7571_v25 = vld [vmem:[#allocation39_spill] sm:$0xff] }
 0x125   : > { %1095 = vrot.lane.b32.xlu1 %v5338_v35, %s4789_s18 }
 0x126   : > { %v841_v58 = vpop.permute.xlu0 %840 }
 0x127   : > { %927 = vst.msk [vmem:[#allocation2 + $0x50] sm:$0xff] %vm916_vm5, %v841_v58  ;;  %v843_v56 = vpop.permute.xlu1 %842 }
 0x128   : > { %928 = vst.msk [vmem:[#allocation2 + $0x58] sm:$0xff] %vm916_vm5, %v843_v56  ;;  %1097 = vrot.lane.b32.xlu0 %v5346_v15, %s4789_s18 }
 0x129   : > { %1099 = vrot.lane.b32.xlu1 %v7569_v60, %s4789_s18 }
 0x12a   : > { %v845_v7 = vpop.permute.xlu0 %844 }
 0x12b   : > { %929 = vst.msk [vmem:[#allocation2 + $0x60] sm:$0xff] %vm916_vm5, %v845_v7  ;;  %v847_v59 = vpop.permute.xlu1 %846  ;;  %v7572_v7 = vld [vmem:[#allocation40_spill] sm:$0xff] }
 0x12c   : > { %930 = vst.msk [vmem:[#allocation2 + $0x68] sm:$0xff] %vm916_vm5, %v847_v59  ;;  %1101 = vrot.lane.b32.xlu0 %v5359_v28, %s4789_s18 }
 0x12d   : > { %1103 = vrot.lane.b32.xlu1 %v7570_v63, %s4789_s18 }
 0x12e   : > { %v849_v62 = vpop.permute.xlu0 %848 }
 0x12f   : > { %931 = vst.msk [vmem:[#allocation2 + $0x70] sm:$0xff] %vm916_vm5, %v849_v62  ;;  %v851_v17 = vpop.permute.xlu1 %850 }
 0x130   : > { %932 = vst.msk [vmem:[#allocation2 + $0x78] sm:$0xff] %vm916_vm5, %v851_v17  ;;  %1105 = vrot.lane.b32.xlu0 %v5372_v42, %s4789_s18  ;;  %v7573_v17 = vld [vmem:[#allocation41_spill] sm:$0xff] }
 0x131   : > { %1107 = vrot.lane.b32.xlu1 %v7571_v25, %s4789_s18 }
 0x132   : > { %v853_v58 = vpop.permute.xlu0 %852 }
 0x133   : > { %933 = vst.msk [vmem:[#allocation2 + $0x80] sm:$0xff] %vm916_vm5, %v853_v58  ;;  %v855_v56 = vpop.permute.xlu1 %854 }
 0x134   : > { %934 = vst.msk [vmem:[#allocation2 + $0x88] sm:$0xff] %vm916_vm5, %v855_v56  ;;  %1109 = vrot.lane.b32.xlu0 %v5385_v55, %s4789_s18 }
 0x135   : > { %1111 = vrot.lane.b32.xlu1 %v7572_v7, %s4789_s18 }
 0x136   : > { %v857_v59 = vpop.permute.xlu0 %856 }
 0x137   : > { %935 = vst.msk [vmem:[#allocation2 + $0x90] sm:$0xff] %vm916_vm5, %v857_v59  ;;  %v859_v62 = vpop.permute.xlu1 %858  ;;  %v7574_v59 = vld [vmem:[#allocation42_spill] sm:$0xff] }
 0x138   : > { %936 = vst.msk [vmem:[#allocation2 + $0x98] sm:$0xff] %vm916_vm5, %v859_v62  ;;  %1113 = vrot.lane.b32.xlu0 %v5398_v6, %s4789_s18 }
 0x139   : > { %1115 = vrot.lane.b32.xlu1 %v7573_v17, %s4789_s18 }
 0x13a   : > { %v861_v58 = vpop.permute.xlu0 %860 }
 0x13b   : > { %937 = vst.msk [vmem:[#allocation2 + $0xa0] sm:$0xff] %vm916_vm5, %v861_v58  ;;  %v863_v56 = vpop.permute.xlu1 %862  ;;  %v7575_v58 = vld [vmem:[#allocation43_spill] sm:$0xff] }
 0x13c   : > { %938 = vst.msk [vmem:[#allocation2 + $0xa8] sm:$0xff] %vm916_vm5, %v863_v56  ;;  %1117 = vrot.lane.b32.xlu0 %v5411_v26, %s4789_s18 }
 0x13d   : > { %1119 = vrot.lane.b32.xlu1 %v7574_v59, %s4789_s18 }
 0x13e   : > { %v865_v4 = vpop.permute.xlu0 %864 }
 0x13f   : > { %939 = vst.msk [vmem:[#allocation2 + $0xb0] sm:$0xff] %vm916_vm5, %v865_v4  ;;  %v867_v62 = vpop.permute.xlu1 %866  ;;  %v7576_v4 = vld [vmem:[#allocation44_spill] sm:$0xff] }
 0x140   : > { %940 = vst.msk [vmem:[#allocation2 + $0xb8] sm:$0xff] %vm916_vm5, %v867_v62  ;;  %1121 = vrot.lane.b32.xlu0 %v5424_v53, %s4789_s18 }
 0x141   : > { %1123 = vrot.lane.b32.xlu1 %v7575_v58, %s4789_s18 }
 0x142   : > { %v869_v22 = vpop.permute.xlu0 %868 }
 0x143   : > { %941 = vst.msk [vmem:[#allocation2 + $0xc0] sm:$0xff] %vm916_vm5, %v869_v22  ;;  %v871_v56 = vpop.permute.xlu1 %870  ;;  %v7577_v22 = vld [vmem:[#allocation45_spill] sm:$0xff] }
 0x144   : > { %942 = vst.msk [vmem:[#allocation2 + $0xc8] sm:$0xff] %vm916_vm5, %v871_v56  ;;  %1125 = vrot.lane.b32.xlu0 %v5437_v14, %s4789_s18 }
 0x145   : > { %1127 = vrot.lane.b32.xlu1 %v7576_v4, %s4789_s18 }
 0x146   : > { %v873_v57 = vpop.permute.xlu0 %872 }
 0x147   : > { %943 = vst.msk [vmem:[#allocation2 + $0xd0] sm:$0xff] %vm916_vm5, %v873_v57  ;;  %v875_v62 = vpop.permute.xlu1 %874  ;;  %v7578_v57 = vld [vmem:[#allocation47_spill] sm:$0xff] }
 0x148   : > { %944 = vst.msk [vmem:[#allocation2 + $0xd8] sm:$0xff] %vm916_vm5, %v875_v62  ;;  %1129 = vrot.lane.b32.xlu0 %v5450_v48, %s4789_s18 }
 0x149   : > { %1131 = vrot.lane.b32.xlu1 %v7577_v22, %s4789_s18 }
 0x14a   : > { %v877_v61 = vpop.permute.xlu0 %876 }
 0x14b   : > { %945 = vst.msk [vmem:[#allocation2 + $0xe0] sm:$0xff] %vm916_vm5, %v877_v61  ;;  %v879_v56 = vpop.permute.xlu1 %878  ;;  %v7579_v61 = vld [vmem:[#allocation49_spill] sm:$0xff] }
 0x14c   : > { %946 = vst.msk [vmem:[#allocation2 + $0xe8] sm:$0xff] %vm916_vm5, %v879_v56  ;;  %1133 = vrot.lane.b32.xlu0 %v5463_v34, %s4789_s18 }
 0x14d   : > { %1135 = vrot.lane.b32.xlu1 %v7578_v57, %s4789_s18  ;;  %v1087_v57 = vrot.slane %v5699_v13, 2 }
 0x14e   : > { %v881_v4 = vpop.permute.xlu0 %880 }
 0x14f   : > { %947 = vst.msk [vmem:[#allocation2 + $0xf0] sm:$0xff] %vm916_vm5, %v881_v4  ;;  %v883_v62 = vpop.permute.xlu1 %882  ;;  %v1084_v4 = vrot.slane %v5608_v9, 2 }
 0x150   : > { %948 = vst.msk [vmem:[#allocation2 + $0xf8] sm:$0xff] %vm916_vm5, %v883_v62  ;;  %1137 = vrot.lane.b32.xlu0 %v5476_v21, %s4789_s18  ;;  %v1085_v62 = vrot.slane %v5611_v1, 2  ;;  %vm3253_vm5 = vcmask 458112  }
 0x151   : > { %1139 = vrot.lane.b32.xlu1 %v7579_v61, %s4789_s18 }
 0x152   : > { %v956_v56 = vpop.permute.xlu0 %955  ;;  %v5824_v1 = vsel %vm608_vm2, %v1085_v62, %v1087_v57 }
 0x153   : > { %1052 = vst.msk [vmem:[#allocation2] sm:$0xff] %vm1051_vm6, %v956_v56  ;;  %v958_v34 = vpop.permute.xlu1 %957 }
 0x154   : > { %1053 = vst.msk [vmem:[#allocation2 + $0x8] sm:$0xff] %vm1051_vm6, %v958_v34  ;;  %1141 = vrot.lane.b32.xlu0 %v5491_v20, %s4789_s18  ;;  %v5821_v34 = vsel %vm608_vm2, %v1084_v4, %v1085_v62 }
 0x155   : > { %1143 = vrot.lane.b32.xlu1 %v5496_v3, %s4789_s18 }
 0x156   : > { %v960_v21 = vpop.permute.xlu0 %959 }
 0x157   : > { %1054 = vst.msk [vmem:[#allocation2 + $0x10] sm:$0xff] %vm1051_vm6, %v960_v21  ;;  %v962_v61 = vpop.permute.xlu1 %961 }
 0x158   : > { %1055 = vst.msk [vmem:[#allocation2 + $0x18] sm:$0xff] %vm1051_vm6, %v962_v61  ;;  %1145 = vrot.lane.b32.xlu0 %v5506_v40, %s4789_s18 }
 0x159   : > { %1147 = vrot.lane.b32.xlu1 %v5509_v49, %s4789_s18 }
 0x15a   : > { %v964_v56 = vpop.permute.xlu0 %963 }
 0x15b   : > { %1056 = vst.msk [vmem:[#allocation2 + $0x20] sm:$0xff] %vm1051_vm6, %v964_v56  ;;  %v966_v13 = vpop.permute.xlu1 %965 }
 0x15c   : > { %1057 = vst.msk [vmem:[#allocation2 + $0x28] sm:$0xff] %vm1051_vm6, %v966_v13  ;;  %1149 = vrot.lane.b32.xlu0 %v5821_v34, %s4789_s18 }
 0x15d   : > { %1151 = vrot.lane.b32.xlu1 %v5824_v1, %s4789_s18 }
 0x15e   : > { %v968_v21 = vpop.permute.xlu0 %967 }
 0x15f   : > { %1058 = vst.msk [vmem:[#allocation2 + $0x30] sm:$0xff] %vm1051_vm6, %v968_v21  ;;  %v970_v61 = vpop.permute.xlu1 %969  ;;  %v1696_v21 = vld [vmem:[%s7412_s1 + $0x18] sm:$0xff] }
 0x160   : > { %1059 = vst.msk [vmem:[#allocation2 + $0x38] sm:$0xff] %vm1051_vm6, %v970_v61  ;;  %1220 = vrot.lane.b32.xlu0 %v4922_v11, %s4790_s19 }
 0x161   : > { %1222 = vrot.lane.b32.xlu1 %v4925_v12, %s4790_s19 }
 0x162   : > { %v972_v57 = vpop.permute.xlu0 %971 }
 0x163   : > { %1060 = vst.msk [vmem:[#allocation2 + $0x40] sm:$0xff] %vm1051_vm6, %v972_v57  ;;  %v974_v4 = vpop.permute.xlu1 %973 }
 0x164   : > { %1061 = vst.msk [vmem:[#allocation2 + $0x48] sm:$0xff] %vm1051_vm6, %v974_v4  ;;  %1224 = vrot.lane.b32.xlu0 %v4935_v16, %s4790_s19  ;;  %v1697_v4 = vld [vmem:[%s7412_s1 + $0x20] sm:$0xf] }
 0x165   : > { %1226 = vrot.lane.b32.xlu1 %v4946_v18, %s4790_s19 }
 0x166   : > { %v976_v62 = vpop.permute.xlu0 %975 }
 0x167   : > { %1062 = vst.msk [vmem:[#allocation2 + $0x50] sm:$0xff] %vm1051_vm6, %v976_v62  ;;  %v978_v56 = vpop.permute.xlu1 %977 }
 0x168   : > { %1063 = vst.msk [vmem:[#allocation2 + $0x58] sm:$0xff] %vm1051_vm6, %v978_v56  ;;  %1228 = vrot.lane.b32.xlu0 %v4949_v19, %s4790_s19 }
 0x169   : > { %1230 = vrot.lane.b32.xlu1 %v4959_v23, %s4790_s19 }
 0x16a   : > { %v980_v11 = vpop.permute.xlu0 %979 }
 0x16b   : > { %1064 = vst.msk [vmem:[#allocation2 + $0x60] sm:$0xff] %vm1051_vm6, %v980_v11  ;;  %v982_v12 = vpop.permute.xlu1 %981 }
 0x16c   : > { %1065 = vst.msk [vmem:[#allocation2 + $0x68] sm:$0xff] %vm1051_vm6, %v982_v12  ;;  %1232 = vrot.lane.b32.xlu0 %v4962_v24, %s4790_s19 }
 0x16d   : > { %1234 = vrot.lane.b32.xlu1 %v4973_v27, %s4790_s19 }
 0x16e   : > { %v984_v16 = vpop.permute.xlu0 %983 }
 0x16f   : > { %1066 = vst.msk [vmem:[#allocation2 + $0x70] sm:$0xff] %vm1051_vm6, %v984_v16  ;;  %v986_v18 = vpop.permute.xlu1 %985 }
 0x170   : > { %1067 = vst.msk [vmem:[#allocation2 + $0x78] sm:$0xff] %vm1051_vm6, %v986_v18  ;;  %1236 = vrot.lane.b32.xlu0 %v4983_v29, %s4790_s19 }
 0x171   : > { %1238 = vrot.lane.b32.xlu1 %v4986_v30, %s4790_s19 }
 0x172   : > { %v988_v19 = vpop.permute.xlu0 %987 }
 0x173   : > { %1068 = vst.msk [vmem:[#allocation2 + $0x80] sm:$0xff] %vm1051_vm6, %v988_v19  ;;  %v990_v23 = vpop.permute.xlu1 %989 }
 0x174   : > { %1069 = vst.msk [vmem:[#allocation2 + $0x88] sm:$0xff] %vm1051_vm6, %v990_v23  ;;  %1240 = vrot.lane.b32.xlu0 %v4992_v31, %s4790_s19 }
 0x175   : > { %1242 = vrot.lane.b32.xlu1 %v4995_v32, %s4790_s19 }
 0x176   : > { %v992_v24 = vpop.permute.xlu0 %991 }
 0x177   : > { %1070 = vst.msk [vmem:[#allocation2 + $0x90] sm:$0xff] %vm1051_vm6, %v992_v24  ;;  %v994_v27 = vpop.permute.xlu1 %993 }
 0x178   : > { %1071 = vst.msk [vmem:[#allocation2 + $0x98] sm:$0xff] %vm1051_vm6, %v994_v27  ;;  %1244 = vrot.lane.b32.xlu0 %v5009_v36, %s4790_s19 }
 0x179   : > { %1246 = vrot.lane.b32.xlu1 %v5012_v37, %s4790_s19  ;;  %v1693_v37 = vld [vmem:[%s7412_s1] sm:$0xff] }
 0x17a   : > { %v996_v29 = vpop.permute.xlu0 %995 }
 0x17b   : > { %1072 = vst.msk [vmem:[#allocation2 + $0xa0] sm:$0xff] %vm1051_vm6, %v996_v29  ;;  %v998_v30 = vpop.permute.xlu1 %997 }
 0x17c   : > { %1073 = vst.msk [vmem:[#allocation2 + $0xa8] sm:$0xff] %vm1051_vm6, %v998_v30  ;;  %1248 = vrot.lane.b32.xlu0 %v5015_v38, %s4790_s19  ;;  %v1694_v38 = vld [vmem:[%s7412_s1 + $0x8] sm:$0xff] }
 0x17d   : > { %1250 = vrot.lane.b32.xlu1 %v5026_v41, %s4790_s19  ;;  %v4634_v13 = vpack.c.bf16 %v1694_v38, %v1693_v37 }
 0x17e   : > { %v1000_v31 = vpop.permute.xlu0 %999 }
 0x17f   : > { %1074 = vst.msk [vmem:[#allocation2 + $0xb0] sm:$0xff] %vm1051_vm6, %v1000_v31  ;;  %v1002_v32 = vpop.permute.xlu1 %1001  ;;  %4635 = vmatprep.subr.bf16.mxu0 %v4634_v13 }
 0x180   : > { %1075 = vst.msk [vmem:[#allocation2 + $0xb8] sm:$0xff] %vm1051_vm6, %v1002_v32  ;;  %1252 = vrot.lane.b32.xlu0 %v5038_v43, %s4790_s19  ;;  %4637 = vmatpush3.bf16.msra.mxu0 %v4634_v13 }
 0x181   : > { %1254 = vrot.lane.b32.xlu1 %v5041_v44, %s4790_s19  ;;  %v1695_v44 = vld [vmem:[%s7412_s1 + $0x10] sm:$0xff] }
 0x182   : > { %v1004_v36 = vpop.permute.xlu0 %1003  ;;  %v4638_v57 = vpack.c.bf16 %v1696_v21, %v1695_v44  ;;  %v7591_v44 = vld [vmem:[#allocation27_spill] sm:$0xff] }
 0x183   : > { %1076 = vst.msk [vmem:[#allocation2 + $0xc0] sm:$0xff] %vm1051_vm6, %v1004_v36  ;;  %v1006_v41 = vpop.permute.xlu1 %1005 }
 0x184   : > { %1077 = vst.msk [vmem:[#allocation2 + $0xc8] sm:$0xff] %vm1051_vm6, %v1006_v41  ;;  %1256 = vrot.lane.b32.xlu0 %v5048_v45, %s4790_s19  ;;  %4639 = vmatprep.subr.bf16.mxu0 %v4638_v57 }
 0x185   : > { %1258 = vrot.lane.b32.xlu1 %v5051_v46, %s4790_s19  ;;  %4641 = vmatpush3.bf16.msra.mxu0 %v4638_v57 }
 0x186   : > { %v1008_v43 = vpop.permute.xlu0 %1007  ;;  %4518 = vmatprep.subr.msk.mxu0 %vm1802_vm7, %v1697_v4 }
 0x187   : > { %1078 = vst.msk [vmem:[#allocation2 + $0xd0] sm:$0xff] %vm1051_vm6, %v1008_v43  ;;  %v1010_v61 = vpop.permute.xlu1 %1009  ;;  %v7590_v43 = vld [vmem:[#allocation44_spill] sm:$0xff] }
 0x188   : > { %1079 = vst.msk [vmem:[#allocation2 + $0xd8] sm:$0xff] %vm1051_vm6, %v1010_v61  ;;  %1260 = vrot.lane.b32.xlu0 %v5065_v50, %s4790_s19 }
 0x189   : > { %1262 = vrot.lane.b32.xlu1 %v5068_v51, %s4790_s19  ;;  %4519 = vmatpush3.msk.msra.mxu0 %vm1802_vm7, %v1697_v4  ;;  %vm3639_vm7 = vcmask 589312  }
 0x18a   : > { %v1012_v45 = vpop.permute.xlu0 %1011 }
 0x18b   : > { %1080 = vst.msk [vmem:[#allocation2 + $0xe0] sm:$0xff] %vm1051_vm6, %v1012_v45  ;;  %v1014_v46 = vpop.permute.xlu1 %1013 }
 0x18c   : > { %1081 = vst.msk [vmem:[#allocation2 + $0xe8] sm:$0xff] %vm1051_vm6, %v1014_v46  ;;  %1264 = vrot.lane.b32.xlu0 %v5079_v54, %s4790_s19  ;;  %v7593_v46 = vld [vmem:[#allocation29_spill] sm:$0xff] }
 0x18d   : > { %1355 = vrot.lane.b32.xlu1 %v5004_v33, %s4791_s20 }
 0x18e   : > { %v1016_v50 = vpop.permute.xlu0 %1015 }
 0x18f   : > { %1082 = vst.msk [vmem:[#allocation2 + $0xf0] sm:$0xff] %vm1051_vm6, %v1016_v50  ;;  %v1018_v51 = vpop.permute.xlu1 %1017 }
 0x190   : > { %1083 = vst.msk [vmem:[#allocation2 + $0xf8] sm:$0xff] %vm1051_vm6, %v1018_v51  ;;  %1357 = vrot.lane.b32.xlu0 %v5022_v39, %s4791_s20  ;;  %v7595_v51 = vld [vmem:[#allocation46_spill] sm:$0xff]  ;;  %vm3446_vm6 = vcmask 523712  }
 0x191   : > { %1489 = vrot.lane.b32.xlu1 %v5333_v10, %s4792_s26 }
 0x192   : > { %v1090_v54 = vpop.permute.xlu0 %1089 }
 0x193   : > { %1186 = vst.msk [vmem:[#allocation2] sm:$0xff] %vm1185_vm8, %v1090_v54  ;;  %v1092_v33 = vpop.permute.xlu1 %1091 }
 0x194   : > { %1187 = vst.msk [vmem:[#allocation2 + $0x8] sm:$0xff] %vm1185_vm8, %v1092_v33  ;;  %1491 = vrot.lane.b32.xlu0 %v5338_v35, %s4792_s26 }
 0x195   : > { %1359 = vrot.lane.b32.xlu1 %v5060_v47, %s4791_s20 }
 0x196   : > { %v1094_v62 = vpop.permute.xlu0 %1093 }
 0x197   : > { %1188 = vst.msk [vmem:[#allocation2 + $0x10] sm:$0xff] %vm1185_vm8, %v1094_v62  ;;  %v1096_v39 = vpop.permute.xlu1 %1095  ;;  %v7597_v62 = vld [vmem:[#allocation8_spill] sm:$0xff] }
 0x198   : > { %1189 = vst.msk [vmem:[#allocation2 + $0x18] sm:$0xff] %vm1185_vm8, %v1096_v39  ;;  %1361 = vrot.lane.b32.xlu0 %v5075_v52, %s4791_s20 }
 0x199   : > { %1493 = vrot.lane.b32.xlu1 %v5346_v15, %s4792_s26 }
 0x19a   : > { %v1098_v10 = vpop.permute.xlu0 %1097 }
 0x19b   : > { %1190 = vst.msk [vmem:[#allocation2 + $0x20] sm:$0xff] %vm1185_vm8, %v1098_v10  ;;  %v1100_v56 = vpop.permute.xlu1 %1099 }
 0x19c   : > { %1191 = vst.msk [vmem:[#allocation2 + $0x28] sm:$0xff] %vm1185_vm8, %v1100_v56  ;;  %1495 = vrot.lane.b32.xlu0 %v7569_v60, %s4792_s26  ;;  %v7598_v56 = vld [vmem:[#allocation31_spill] sm:$0xff] }
 0x19d   : > { %1363 = vrot.lane.b32.xlu1 %v7544_v0, %s4791_s20 }
 0x19e   : > { %v1102_v47 = vpop.permute.xlu0 %1101 }
 0x19f   : > { %1192 = vst.msk [vmem:[#allocation2 + $0x30] sm:$0xff] %vm1185_vm8, %v1102_v47  ;;  %v1104_v35 = vpop.permute.xlu1 %1103  ;;  %v7599_v47 = vld [vmem:[#allocation32_spill] sm:$0xff] }
 0x1a0   : > { %1193 = vst.msk [vmem:[#allocation2 + $0x38] sm:$0xff] %vm1185_vm8, %v1104_v35  ;;  %1365 = vrot.lane.b32.xlu0 %v7545_v8, %s4791_s20 }
 0x1a1   : > { %1497 = vrot.lane.b32.xlu1 %v5359_v28, %s4792_s26 }
 0x1a2   : > { %v1106_v52 = vpop.permute.xlu0 %1105 }
 0x1a3   : > { %1194 = vst.msk [vmem:[#allocation2 + $0x40] sm:$0xff] %vm1185_vm8, %v1106_v52  ;;  %v1108_v15 = vpop.permute.xlu1 %1107 }
 0x1a4   : > { %1195 = vst.msk [vmem:[#allocation2 + $0x48] sm:$0xff] %vm1185_vm8, %v1108_v15  ;;  %1499 = vrot.lane.b32.xlu0 %v7570_v63, %s4792_s26  ;;  %v7600_v15 = vld [vmem:[#allocation48_spill] sm:$0xff] }
 0x1a5   : > { %1367 = vrot.lane.b32.xlu1 %v7546_v2, %s4791_s20  ;;  %v7580_v2 = vld [vmem:[#allocation17_spill] sm:$0xff] }
 0x1a6   : > { %v1110_v0 = vpop.permute.xlu0 %1109 }
 0x1a7   : > { %1196 = vst.msk [vmem:[#allocation2 + $0x50] sm:$0xff] %vm1185_vm8, %v1110_v0  ;;  %v1112_v60 = vpop.permute.xlu1 %1111  ;;  %v7601_v0 = vld [vmem:[#allocation49_spill] sm:$0xff] }
 0x1a8   : > { %1197 = vst.msk [vmem:[#allocation2 + $0x58] sm:$0xff] %vm1185_vm8, %v1112_v60  ;;  %1369 = vrot.lane.b32.xlu0 %v7547_v5, %s4791_s20 }
 0x1a9   : > { %1501 = vrot.lane.b32.xlu1 %v5372_v42, %s4792_s26  ;;  %v7581_v42 = vld [vmem:[#allocation18_spill] sm:$0xff] }
 0x1aa   : > { %v1114_v28 = vpop.permute.xlu0 %1113 }
 0x1ab   : > { %1198 = vst.msk [vmem:[#allocation2 + $0x60] sm:$0xff] %vm1185_vm8, %v1114_v28  ;;  %v1116_v8 = vpop.permute.xlu1 %1115 }
 0x1ac   : > { %1199 = vst.msk [vmem:[#allocation2 + $0x68] sm:$0xff] %vm1185_vm8, %v1116_v8  ;;  %1503 = vrot.lane.b32.xlu0 %v7571_v25, %s4792_s26  ;;  %v7582_v25 = vld [vmem:[#allocation19_spill] sm:$0xff]  ;;  %v7602_v8 = vld [vmem:[#allocation9_spill] sm:$0xff] }
 0x1ad   : > { %1371 = vrot.lane.b32.xlu1 %v7580_v2, %s4791_s20  ;;  %v7603_v2 = vld [vmem:[#allocation10_spill] sm:$0xff] }
 0x1ae   : > { %v1118_v63 = vpop.permute.xlu0 %1117 }
 0x1af   : > { %1200 = vst.msk [vmem:[#allocation2 + $0x70] sm:$0xff] %vm1185_vm8, %v1118_v63  ;;  %v1120_v11 = vpop.permute.xlu1 %1119 }
 0x1b0   : > { %1201 = vst.msk [vmem:[#allocation2 + $0x78] sm:$0xff] %vm1185_vm8, %v1120_v11  ;;  %1373 = vrot.lane.b32.xlu0 %v7581_v42, %s4791_s20  ;;  %v7604_v42 = vld [vmem:[#allocation33_spill] sm:$0xff] }
 0x1b1   : > { %1505 = vrot.lane.b32.xlu1 %v5385_v55, %s4792_s26  ;;  %v7583_v55 = vld [vmem:[#allocation20_spill] sm:$0xff] }
 0x1b2   : > { %v1122_v5 = vpop.permute.xlu0 %1121 }
 0x1b3   : > { %1202 = vst.msk [vmem:[#allocation2 + $0x80] sm:$0xff] %vm1185_vm8, %v1122_v5  ;;  %v1124_v12 = vpop.permute.xlu1 %1123  ;;  %v7605_v5 = vld [vmem:[#allocation34_spill] sm:$0xff] }
 0x1b4   : > { %1203 = vst.msk [vmem:[#allocation2 + $0x88] sm:$0xff] %vm1185_vm8, %v1124_v12  ;;  %1507 = vrot.lane.b32.xlu0 %v7572_v7, %s4792_s26  ;;  %v7584_v7 = vld [vmem:[#allocation21_spill] sm:$0xff] }
 0x1b5   : > { %1375 = vrot.lane.b32.xlu1 %v7582_v25, %s4791_s20 }
 0x1b6   : > { %v1126_v16 = vpop.permute.xlu0 %1125 }
 0x1b7   : > { %1204 = vst.msk [vmem:[#allocation2 + $0x90] sm:$0xff] %vm1185_vm8, %v1126_v16  ;;  %v1128_v18 = vpop.permute.xlu1 %1127 }
 0x1b8   : > { %1205 = vst.msk [vmem:[#allocation2 + $0x98] sm:$0xff] %vm1185_vm8, %v1128_v18  ;;  %1377 = vrot.lane.b32.xlu0 %v7583_v55, %s4791_s20  ;;  %v7606_v55 = vld [vmem:[#allocation12_spill] sm:$0xff] }
 0x1b9   : > { %1509 = vrot.lane.b32.xlu1 %v5398_v6, %s4792_s26  ;;  %v7585_v6 = vld [vmem:[#allocation22_spill] sm:$0xff] }
 0x1ba   : > { %v1130_v19 = vpop.permute.xlu0 %1129 }
 0x1bb   : > { %1206 = vst.msk [vmem:[#allocation2 + $0xa0] sm:$0xff] %vm1185_vm8, %v1130_v19  ;;  %v1132_v23 = vpop.permute.xlu1 %1131  ;;  %v7607_v19 = vld [vmem:[#allocation13_spill] sm:$0xff] }
 0x1bc   : > { %1207 = vst.msk [vmem:[#allocation2 + $0xa8] sm:$0xff] %vm1185_vm8, %v1132_v23  ;;  %1511 = vrot.lane.b32.xlu0 %v7573_v17, %s4792_s26  ;;  %v7586_v17 = vld [vmem:[#allocation23_spill] sm:$0xff] }
 0x1bd   : > { %1379 = vrot.lane.b32.xlu1 %v7584_v7, %s4791_s20  ;;  %v7609_v7 = vld [vmem:[#allocation36_spill] sm:$0xff] }
 0x1be   : > { %v1134_v24 = vpop.permute.xlu0 %1133 }
 0x1bf   : > { %1208 = vst.msk [vmem:[#allocation2 + $0xb0] sm:$0xff] %vm1185_vm8, %v1134_v24  ;;  %v1136_v27 = vpop.permute.xlu1 %1135 }
 0x1c0   : > { %1209 = vst.msk [vmem:[#allocation2 + $0xb8] sm:$0xff] %vm1185_vm8, %v1136_v27  ;;  %1381 = vrot.lane.b32.xlu0 %v7585_v6, %s4791_s20 }
 0x1c1   : > { %1513 = vrot.lane.b32.xlu1 %v5411_v26, %s4792_s26  ;;  %v7587_v26 = vld [vmem:[#allocation24_spill] sm:$0xff] }
 0x1c2   : > { %v1138_v29 = vpop.permute.xlu0 %1137 }
 0x1c3   : > { %1210 = vst.msk [vmem:[#allocation2 + $0xc0] sm:$0xff] %vm1185_vm8, %v1138_v29  ;;  %v1140_v30 = vpop.permute.xlu1 %1139 }
 0x1c4   : > { %1211 = vst.msk [vmem:[#allocation2 + $0xc8] sm:$0xff] %vm1185_vm8, %v1140_v30  ;;  %1515 = vrot.lane.b32.xlu0 %v7574_v59, %s4792_s26  ;;  %v7588_v59 = vld [vmem:[#allocation25_spill] sm:$0xff]  ;;  %v7610_v30 = vld [vmem:[#allocation50_spill] sm:$0xff] }
 0x1c5   : > { %1383 = vrot.lane.b32.xlu1 %v7586_v17, %s4791_s20 }
 0x1c6   : > { %v1142_v31 = vpop.permute.xlu0 %1141 }
 0x1c7   : > { %1212 = vst.msk [vmem:[#allocation2 + $0xd0] sm:$0xff] %vm1185_vm8, %v1142_v31  ;;  %v1144_v32 = vpop.permute.xlu1 %1143  ;;  %v7611_v31 = vld [vmem:[#allocation11_spill] sm:$0xff] }
 0x1c8   : > { %1213 = vst.msk [vmem:[#allocation2 + $0xd8] sm:$0xff] %vm1185_vm8, %v1144_v32  ;;  %1385 = vrot.lane.b32.xlu0 %v7587_v26, %s4791_s20  ;;  %v7612_v32 = vld [vmem:[#allocation14_spill] sm:$0xff] }
 0x1c9   : > { %1517 = vrot.lane.b32.xlu1 %v5424_v53, %s4792_s26  ;;  %v7589_v53 = vld [vmem:[#allocation26_spill] sm:$0xff] }
 0x1ca   : > { %v1146_v36 = vpop.permute.xlu0 %1145 }
 0x1cb   : > { %1214 = vst.msk [vmem:[#allocation2 + $0xe0] sm:$0xff] %vm1185_vm8, %v1146_v36  ;;  %v1148_v37 = vpop.permute.xlu1 %1147  ;;  %v6113_v36 = vld [vmem:[%s4890_s13 + $0x1a0] sm:$0xff] }
 0x1cc   : > { %1215 = vst.msk [vmem:[#allocation2 + $0xe8] sm:$0xff] %vm1185_vm8, %v1148_v37  ;;  %1519 = vrot.lane.b32.xlu0 %v7575_v58, %s4792_s26  ;;  %v6116_v37 = vld [vmem:[%s4890_s13 + $0x198] sm:$0xff] }
 0x1cd   : > { %1387 = vrot.lane.b32.xlu1 %v7588_v59, %s4791_s20 }
 0x1ce   : > { %v1150_v38 = vpop.permute.xlu0 %1149 }
 0x1cf   : > { %1216 = vst.msk [vmem:[#allocation2 + $0xf0] sm:$0xff] %vm1185_vm8, %v1150_v38  ;;  %v1152_v41 = vpop.permute.xlu1 %1151  ;;  %v6121_v38 = vld [vmem:[%s4890_s13 + $0x1a8] sm:$0x3]  ;;  %s4796_s13 = smov 56  }
 0x1d0   : > { %1217 = vst.msk [vmem:[#allocation2 + $0xf8] sm:$0xff] %vm1185_vm8, %v1152_v41  ;;  %1389 = vrot.lane.b32.xlu0 %v7589_v53, %s4791_s20  ;;  %v1351_v41 = vrot.slane %v6113_v36, 1  ;;  %v1350_v53 = vrot.slane %v6116_v37, 1  ;;  %vm3720_vm8 = vcmask 588800  }
 0x1d1   : > { %1521 = vrot.lane.b32.xlu1 %v5437_v14, %s4792_s26  ;;  %v7592_v14 = vld [vmem:[#allocation28_spill] sm:$0xff] }
 0x1d2   : > { %v1221_v13 = vpop.permute.xlu0 %1220 }
 0x1d3   : > { %1317 = vst.msk [vmem:[#allocation2] sm:$0xff] %vm1316_vm9, %v1221_v13  ;;  %v1223_v58 = vpop.permute.xlu1 %1222 }
 0x1d4   : > { %1318 = vst.msk [vmem:[#allocation2 + $0x8] sm:$0xff] %vm1316_vm9, %v1223_v58  ;;  %1523 = vrot.lane.b32.xlu0 %v7590_v43, %s4792_s26  ;;  %v1353_v58 = vrot.slane %v6121_v38, 1 }
 0x1d5   : > { %1391 = vrot.lane.b32.xlu1 %v7591_v44, %s4791_s20 }
 0x1d6   : > { %v1225_v21 = vpop.permute.xlu0 %1224 }
 0x1d7   : > { %1319 = vst.msk [vmem:[#allocation2 + $0x10] sm:$0xff] %vm1316_vm9, %v1225_v21  ;;  %v1227_v61 = vpop.permute.xlu1 %1226 }
 0x1d8   : > { %1320 = vst.msk [vmem:[#allocation2 + $0x18] sm:$0xff] %vm1316_vm9, %v1227_v61  ;;  %1393 = vrot.lane.b32.xlu0 %v7592_v14, %s4791_s20  ;;  %v1354_v61 = vsel %vm398_vm1, %v1351_v41, %v1353_v58 }
 0x1d9   : > { %1525 = vrot.lane.b32.xlu1 %v5450_v48, %s4792_s26  ;;  %v7594_v48 = vld [vmem:[#allocation30_spill] sm:$0xff] }
 0x1da   : > { %v1229_v57 = vpop.permute.xlu0 %1228 }
 0x1db   : > { %1321 = vst.msk [vmem:[#allocation2 + $0x20] sm:$0xff] %vm1316_vm9, %v1229_v57  ;;  %v1231_v45 = vpop.permute.xlu1 %1230 }
 0x1dc   : > { %1322 = vst.msk [vmem:[#allocation2 + $0x28] sm:$0xff] %vm1316_vm9, %v1231_v45  ;;  %1527 = vrot.lane.b32.xlu0 %v7577_v22, %s4792_s26  ;;  %v7596_v22 = vld [vmem:[#allocation47_spill] sm:$0xff] }
 0x1dd   : > { %1395 = vrot.lane.b32.xlu1 %v7593_v46, %s4791_s20 }
 0x1de   : > { %v1233_v4 = vpop.permute.xlu0 %1232 }
 0x1df   : > { %1323 = vst.msk [vmem:[#allocation2 + $0x30] sm:$0xff] %vm1316_vm9, %v1233_v4  ;;  %v1235_v50 = vpop.permute.xlu1 %1234 }
 0x1e0   : > { %1324 = vst.msk [vmem:[#allocation2 + $0x38] sm:$0xff] %vm1316_vm9, %v1235_v50  ;;  %1397 = vrot.lane.b32.xlu0 %v7594_v48, %s4791_s20 }
 0x1e1   : > { %1529 = vrot.lane.b32.xlu1 %v7595_v51, %s4792_s26 }
 0x1e2   : > { %v1237_v54 = vpop.permute.xlu0 %1236 }
 0x1e3   : > { %1325 = vst.msk [vmem:[#allocation2 + $0x40] sm:$0xff] %vm1316_vm9, %v1237_v54  ;;  %v1239_v33 = vpop.permute.xlu1 %1238 }
 0x1e4   : > { %1326 = vst.msk [vmem:[#allocation2 + $0x48] sm:$0xff] %vm1316_vm9, %v1239_v33  ;;  %1531 = vrot.lane.b32.xlu0 %v7596_v22, %s4792_s26 }
 0x1e5   : > { %1266 = vrot.lane.b32.xlu1 %v7597_v62, %s4790_s19 }
 0x1e6   : > { %v1241_v39 = vpop.permute.xlu0 %1240 }
 0x1e7   : > { %1327 = vst.msk [vmem:[#allocation2 + $0x50] sm:$0xff] %vm1316_vm9, %v1241_v39  ;;  %v1243_v10 = vpop.permute.xlu1 %1242 }
 0x1e8   : > { %1328 = vst.msk [vmem:[#allocation2 + $0x58] sm:$0xff] %vm1316_vm9, %v1243_v10  ;;  %1399 = vrot.lane.b32.xlu0 %v7598_v56, %s4791_s20 }
 0x1e9   : > { %1401 = vrot.lane.b32.xlu1 %v7599_v47, %s4791_s20 }
 0x1ea   : > { %v1245_v35 = vpop.permute.xlu0 %1244 }
 0x1eb   : > { %1329 = vst.msk [vmem:[#allocation2 + $0x60] sm:$0xff] %vm1316_vm9, %v1245_v35  ;;  %v1247_v52 = vpop.permute.xlu1 %1246 }
 0x1ec   : > { %1330 = vst.msk [vmem:[#allocation2 + $0x68] sm:$0xff] %vm1316_vm9, %v1247_v52  ;;  %1533 = vrot.lane.b32.xlu0 %v7600_v15, %s4792_s26 }
 0x1ed   : > { %1535 = vrot.lane.b32.xlu1 %v7601_v0, %s4792_s26 }
 0x1ee   : > { %v1249_v60 = vpop.permute.xlu0 %1248 }
 0x1ef   : > { %1331 = vst.msk [vmem:[#allocation2 + $0x70] sm:$0xff] %vm1316_vm9, %v1249_v60  ;;  %v1251_v28 = vpop.permute.xlu1 %1250 }
 0x1f0   : > { %1332 = vst.msk [vmem:[#allocation2 + $0x78] sm:$0xff] %vm1316_vm9, %v1251_v28  ;;  %1268 = vrot.lane.b32.xlu0 %v7602_v8, %s4790_s19 }
 0x1f1   : > { %1270 = vrot.lane.b32.xlu1 %v7603_v2, %s4790_s19 }
 0x1f2   : > { %v1253_v63 = vpop.permute.xlu0 %1252 }
 0x1f3   : > { %1333 = vst.msk [vmem:[#allocation2 + $0x80] sm:$0xff] %vm1316_vm9, %v1253_v63  ;;  %v1255_v11 = vpop.permute.xlu1 %1254 }
 0x1f4   : > { %1334 = vst.msk [vmem:[#allocation2 + $0x88] sm:$0xff] %vm1316_vm9, %v1255_v11  ;;  %1403 = vrot.lane.b32.xlu0 %v7604_v42, %s4791_s20 }
 0x1f5   : > { %1405 = vrot.lane.b32.xlu1 %v7605_v5, %s4791_s20 }
 0x1f6   : > { %v1257_v12 = vpop.permute.xlu0 %1256 }
 0x1f7   : > { %1335 = vst.msk [vmem:[#allocation2 + $0x90] sm:$0xff] %vm1316_vm9, %v1257_v12  ;;  %v1259_v25 = vpop.permute.xlu1 %1258 }
 0x1f8   : > { %1336 = vst.msk [vmem:[#allocation2 + $0x98] sm:$0xff] %vm1316_vm9, %v1259_v25  ;;  %1537 = vrot.lane.b32.xlu0 %v5491_v20, %s4792_s26 }
 0x1f9   : > { %1539 = vrot.lane.b32.xlu1 %v5496_v3, %s4792_s26  ;;  %v7608_v3 = vld [vmem:[#allocation35_spill] sm:$0xff] }
 0x1fa   : > { %v1261_v16 = vpop.permute.xlu0 %1260 }
 0x1fb   : > { %1337 = vst.msk [vmem:[#allocation2 + $0xa0] sm:$0xff] %vm1316_vm9, %v1261_v16  ;;  %v1263_v18 = vpop.permute.xlu1 %1262 }
 0x1fc   : > { %1338 = vst.msk [vmem:[#allocation2 + $0xa8] sm:$0xff] %vm1316_vm9, %v1263_v18  ;;  %1272 = vrot.lane.b32.xlu0 %v7606_v55, %s4790_s19 }
 0x1fd   : > { %1274 = vrot.lane.b32.xlu1 %v7607_v19, %s4790_s19 }
 0x1fe   : > { %v1265_v23 = vpop.permute.xlu0 %1264 }
 0x1ff   : > { %1339 = vst.msk [vmem:[#allocation2 + $0xb0] sm:$0xff] %vm1316_vm9, %v1265_v23  ;;  %v1356_v20 = vpop.permute.xlu1 %1355 }
 0x200   : > { %1452 = vst.msk [vmem:[#allocation2] sm:$0xff] %vm1451_vm10, %v1356_v20  ;;  %1407 = vrot.lane.b32.xlu0 %v7608_v3, %s4791_s20 }
 0x201   : > { %1409 = vrot.lane.b32.xlu1 %v7609_v7, %s4791_s20 }
 0x202   : > { %v1358_v24 = vpop.permute.xlu0 %1357 }
 0x203   : > { %1453 = vst.msk [vmem:[#allocation2 + $0x8] sm:$0xff] %vm1451_vm10, %v1358_v24  ;;  %v1490_v27 = vpop.permute.xlu1 %1489 }
 0x204   : > { %1586 = vst.msk [vmem:[#allocation2] sm:$0xff] %vm1585_vm11, %v1490_v27  ;;  %1541 = vrot.lane.b32.xlu0 %v5506_v40, %s4792_s26 }
 0x205   : > { %1543 = vrot.lane.b32.xlu1 %v5509_v49, %s4792_s26 }
 0x206   : > { %v1492_v6 = vpop.permute.xlu0 %1491 }
 0x207   : > { %1587 = vst.msk [vmem:[#allocation2 + $0x8] sm:$0xff] %vm1585_vm11, %v1492_v6  ;;  %v1360_v29 = vpop.permute.xlu1 %1359 }
 0x208   : > { %1454 = vst.msk [vmem:[#allocation2 + $0x10] sm:$0xff] %vm1451_vm10, %v1360_v29  ;;  %1276 = vrot.lane.b32.xlu0 %v5608_v9, %s4790_s19 }
 0x209   : > { %1278 = vrot.lane.b32.xlu1 %v7610_v30, %s4790_s19 }
 0x20a   : > { %v1362_v40 = vpop.permute.xlu0 %1361 }
 0x20b   : > { %1455 = vst.msk [vmem:[#allocation2 + $0x18] sm:$0xff] %vm1451_vm10, %v1362_v40  ;;  %v1494_v49 = vpop.permute.xlu1 %1493  ;;  %v1661_v17 = vld [vmem:[#allocation2] sm:$0xff] }
 0x20c   : > { %1588 = vst.msk [vmem:[#allocation2 + $0x10] sm:$0xff] %vm1585_vm11, %v1494_v49  ;;  %1411 = vrot.lane.b32.xlu0 %v7611_v31, %s4791_s20  ;;  %4520 = vmatprep.mubr.msk.f32.mxu0 %vm1705_vm12, %v1661_v17 }
 0x20d   : > { %1413 = vrot.lane.b32.xlu1 %v7612_v32, %s4791_s20 }
 0x20e   : > { %v1496_v9 = vpop.permute.xlu0 %1495  ;;  %v1662_v26 = vld [vmem:[#allocation2 + $0x8] sm:$0xff] }
 0x20f   : > { %1589 = vst.msk [vmem:[#allocation2 + $0x18] sm:$0xff] %vm1585_vm11, %v1496_v9  ;;  %v1364_v59 = vpop.permute.xlu1 %1363  ;;  %4521 = vmatmul.mubr.msk.f32.vlgmr.msra.gmra.mrb[0].mxu0 %vm1705_vm12, %v1662_v26 }
 0x210   : > { %1456 = vst.msk [vmem:[#allocation2 + $0x20] sm:$0xff] %vm1451_vm10, %v1364_v59  ;;  %1545 = vrot.lane.b32.xlu0 %v5821_v34, %s4792_s26 }
 0x211   : > { %1547 = vrot.lane.b32.xlu1 %v5824_v1, %s4792_s26  ;;  %v1352_v1 = vsel %vm398_vm1, %v1350_v53, %v1351_v41  ;;  %vm2480_vm1 = vcmask 195712  }
 0x212   : > { %v1366_v13 = vpop.permute.xlu0 %1365 }
 0x213   : > { %1457 = vst.msk [vmem:[#allocation2 + $0x28] sm:$0xff] %vm1451_vm10, %v1366_v13  ;;  %v1498_v43 = vpop.permute.xlu1 %1497  ;;  %v1663_v44 = vld [vmem:[#allocation2 + $0x10] sm:$0xff] }
 0x214   : > { %1590 = vst.msk [vmem:[#allocation2 + $0x20] sm:$0xff] %vm1585_vm11, %v1498_v43  ;;  %4523 = vmatprep.mubr.msk.f32.mxu0 %vm1705_vm12, %v1663_v44  ;;  %1280 = vrot.lane.b32.xlu0 %v6116_v37, %s4790_s19  ;;  %v1485_v43 = vrot.slane %v6113_v36, 2  ;;  %v1484_v44 = vrot.slane %v6116_v37, 2 }
 0x215   : > { %1282 = vrot.lane.b32.xlu1 %v6113_v36, %s4790_s19 }
 0x216   : > { %v1500_v34 = vpop.permute.xlu0 %1499  ;;  %v1664_v21 = vld [vmem:[#allocation2 + $0x18] sm:$0xff] }
 0x217   : > { %1591 = vst.msk [vmem:[#allocation2 + $0x28] sm:$0xff] %vm1585_vm11, %v1500_v34  ;;  %v1368_v14 = vpop.permute.xlu1 %1367  ;;  %4524 = vmatmul.mubr.msk.f32.gmra.mrb[2].mxu0 %vm1705_vm12, %v1664_v21  ;;  %v1487_v21 = vrot.slane %v6121_v38, 2 }
 0x218   : > { %1458 = vst.msk [vmem:[#allocation2 + $0x30] sm:$0xff] %vm1451_vm10, %v1368_v14  ;;  %1415 = vrot.lane.b32.xlu0 %v1352_v1, %s4791_s20  ;;  %v4793_v1 = vmov 0.0  }
 0x219   : > { %1417 = vrot.lane.b32.xlu1 %v1354_v61, %s4791_s20  ;;  %1620 = vst.msk [vmem:[#allocation4 + $0x8] sm:$0xff] %vm1618_vm13, %v4793_v1  ;;  %1619 = vst.msk [vmem:[#allocation4] sm:$0xff] %vm1618_vm13, %v4793_v1  ;;  %v1488_v37 = vsel %vm608_vm2, %v1485_v43, %v1487_v21  ;;  %v1486_v61 = vsel %vm608_vm2, %v1484_v44, %v1485_v43  ;;  %s4797_s20 = smov 64   ;;  %vm2673_vm2 = vcmask 261312  }
 0x21a   : > { %v1370_v57 = vpop.permute.xlu0 %1369  ;;  %1622 = vst.msk [vmem:[#allocation4 + $0x10] sm:$0x3] %vm1621_vm14, %v4793_v1  ;;  %1626 = vst.msk [vmem:[#allocation4 + $0x1a8] sm:$0x3] %vm1621_vm14, %v4793_v1 }
 0x21b   : > { %1459 = vst.msk [vmem:[#allocation2 + $0x38] sm:$0xff] %vm1451_vm10, %v1370_v57  ;;  %v1502_v45 = vpop.permute.xlu1 %1501  ;;  %v1665_v46 = vld [vmem:[#allocation2 + $0x20] sm:$0xff] }
 0x21c   : > { %1592 = vst.msk [vmem:[#allocation2 + $0x30] sm:$0xff] %vm1585_vm11, %v1502_v45  ;;  %4526 = vmatprep.mubr.msk.f32.mxu0 %vm1705_vm12, %v1665_v46  ;;  %1549 = vrot.lane.b32.xlu0 %v1486_v61, %s4792_s26 }
 0x21d   : > { %1624 = vst.msk [vmem:[#allocation4 + $0x198] sm:$0xff] %vm1618_vm13, %v4793_v1  ;;  %1625 = vst.msk [vmem:[#allocation4 + $0x1a0] sm:$0xff] %vm1618_vm13, %v4793_v1  ;;  %1551 = vrot.lane.b32.xlu1 %v1488_v37, %s4792_s26 }
 0x21e   : > { %v1504_v4 = vpop.permute.xlu0 %1503  ;;  %v1666_v50 = vld [vmem:[#allocation2 + $0x28] sm:$0xff]  ;;  %1629 = vst.msk [vmem:[#allocation4 + $0x18] sm:$0x1] %vm1628_vm15, %v4793_v1  ;;  %1630 = vst.msk [vmem:[#allocation4 + $0x30] sm:$0x1] %vm1628_vm15, %v4793_v1 }
 0x21f   : > { %1593 = vst.msk [vmem:[#allocation2 + $0x38] sm:$0xff] %vm1585_vm11, %v1504_v4  ;;  %v1372_v48 = vpop.permute.xlu1 %1371  ;;  %4527 = vmatmul.mubr.msk.f32.gmra.mrb[4].mxu0 %vm1705_vm12, %v1666_v50 }
 0x220   : > { %1460 = vst.msk [vmem:[#allocation2 + $0x40] sm:$0xff] %vm1451_vm10, %v1372_v48  ;;  %v2127_v4 = vld [vmem:[#allocation4 + $0x1] sm:$0xff] }
 0x221   : > { %1631 = vst.msk [vmem:[#allocation4 + $0x48] sm:$0x1] %vm1628_vm15, %v4793_v1  ;;  %1632 = vst.msk [vmem:[#allocation4 + $0x60] sm:$0x1] %vm1628_vm15, %v4793_v1  ;;  %v2128_v46 = vld [vmem:[#allocation4 + $0x9] sm:$0xff]  ;;  %2191 = vrot.lane.b32.xlu0 %v2127_v4, %s4786_s15 }
 0x222   : > { %v1374_v51 = vpop.permute.xlu0 %1373  ;;  %1633 = vst.msk [vmem:[#allocation4 + $0x78] sm:$0x1] %vm1628_vm15, %v4793_v1  ;;  %1634 = vst.msk [vmem:[#allocation4 + $0x90] sm:$0x1] %vm1628_vm15, %v4793_v1  ;;  %2193 = vrot.lane.b32.xlu1 %v2128_v46, %s4786_s15 }
 0x223   : > { %1461 = vst.msk [vmem:[#allocation2 + $0x48] sm:$0xff] %vm1451_vm10, %v1374_v51  ;;  %v1506_v54 = vpop.permute.xlu1 %1505  ;;  %v1667_v33 = vld [vmem:[#allocation2 + $0x30] sm:$0xff] }
 0x224   : > { %1594 = vst.msk [vmem:[#allocation2 + $0x40] sm:$0xff] %vm1585_vm11, %v1506_v54  ;;  %4529 = vmatprep.mubr.msk.f32.mxu0 %vm1705_vm12, %v1667_v33 }
 0x225   : > { %1635 = vst.msk [vmem:[#allocation4 + $0xa8] sm:$0x1] %vm1628_vm15, %v4793_v1  ;;  %1636 = vst.msk [vmem:[#allocation4 + $0xc0] sm:$0x1] %vm1628_vm15, %v4793_v1 }
 0x226   : > { %v1508_v22 = vpop.permute.xlu0 %1507  ;;  %v1668_v62 = vld [vmem:[#allocation2 + $0x38] sm:$0xff]  ;;  %1637 = vst.msk [vmem:[#allocation4 + $0xd8] sm:$0x1] %vm1628_vm15, %v4793_v1  ;;  %1638 = vst.msk [vmem:[#allocation4 + $0xf0] sm:$0x1] %vm1628_vm15, %v4793_v1 }
 0x227   : > { %1595 = vst.msk [vmem:[#allocation2 + $0x48] sm:$0xff] %vm1585_vm11, %v1508_v22  ;;  %v1376_v39 = vpop.permute.xlu1 %1375  ;;  %4530 = vmatmul.mubr.msk.f32.gmra.mrb[6].mxu0 %vm1705_vm12, %v1668_v62 }
 0x228   : > { %1462 = vst.msk [vmem:[#allocation2 + $0x50] sm:$0xff] %vm1451_vm10, %v1376_v39 }
 0x229   : > { %1639 = vst.msk [vmem:[#allocation4 + $0x108] sm:$0x1] %vm1628_vm15, %v4793_v1  ;;  %1640 = vst.msk [vmem:[#allocation4 + $0x120] sm:$0x1] %vm1628_vm15, %v4793_v1 }
 0x22a   : > { %v1378_v10 = vpop.permute.xlu0 %1377  ;;  %1641 = vst.msk [vmem:[#allocation4 + $0x138] sm:$0x1] %vm1628_vm15, %v4793_v1  ;;  %1642 = vst.msk [vmem:[#allocation4 + $0x150] sm:$0x1] %vm1628_vm15, %v4793_v1 }
 0x22b   : > { %1463 = vst.msk [vmem:[#allocation2 + $0x58] sm:$0xff] %vm1451_vm10, %v1378_v10  ;;  %v1510_v56 = vpop.permute.xlu1 %1509  ;;  %v1669_v47 = vld [vmem:[#allocation2 + $0x40] sm:$0xff] }
 0x22c   : > { %1596 = vst.msk [vmem:[#allocation2 + $0x50] sm:$0xff] %vm1585_vm11, %v1510_v56  ;;  %4532 = vmatprep.mubr.msk.f32.mxu0 %vm1705_vm12, %v1669_v47 }
 0x22d   : > { %1643 = vst.msk [vmem:[#allocation4 + $0x168] sm:$0x1] %vm1628_vm15, %v4793_v1  ;;  %1644 = vst.msk [vmem:[#allocation4 + $0x180] sm:$0x1] %vm1628_vm15, %v4793_v1 }
 0x22e   : > { %v1512_v35 = vpop.permute.xlu0 %1511  ;;  %v1670_v52 = vld [vmem:[#allocation2 + $0x48] sm:$0xff]  ;;  %1645 = vst.msk [vmem:[#allocation4 + $0x29] sm:$0x1] %vm1628_vm15, %v4793_v1  ;;  %1646 = vst.msk [vmem:[#allocation4 + $0x41] sm:$0x1] %vm1628_vm15, %v4793_v1 }
 0x22f   : > { %1597 = vst.msk [vmem:[#allocation2 + $0x58] sm:$0xff] %vm1585_vm11, %v1512_v35  ;;  %v1380_v15 = vpop.permute.xlu1 %1379  ;;  %4533 = vmatmul.mubr.msk.f32.gmra.mrb[8].mxu0 %vm1705_vm12, %v1670_v52 }
 0x230   : > { %1464 = vst.msk [vmem:[#allocation2 + $0x60] sm:$0xff] %vm1451_vm10, %v1380_v15 }
 0x231   : > { %1647 = vst.msk [vmem:[#allocation4 + $0x59] sm:$0x1] %vm1628_vm15, %v4793_v1  ;;  %1648 = vst.msk [vmem:[#allocation4 + $0x71] sm:$0x1] %vm1628_vm15, %v4793_v1 }
 0x232   : > { %v1382_v0 = vpop.permute.xlu0 %1381  ;;  %1649 = vst.msk [vmem:[#allocation4 + $0x89] sm:$0x1] %vm1628_vm15, %v4793_v1  ;;  %1650 = vst.msk [vmem:[#allocation4 + $0xa1] sm:$0x1] %vm1628_vm15, %v4793_v1 }
 0x233   : > { %1465 = vst.msk [vmem:[#allocation2 + $0x68] sm:$0xff] %vm1451_vm10, %v1382_v0  ;;  %v1514_v60 = vpop.permute.xlu1 %1513  ;;  %v1671_v28 = vld [vmem:[#allocation2 + $0x50] sm:$0xff] }
 0x234   : > { %1598 = vst.msk [vmem:[#allocation2 + $0x60] sm:$0xff] %vm1585_vm11, %v1514_v60  ;;  %4535 = vmatprep.mubr.msk.f32.mxu0 %vm1705_vm12, %v1671_v28 }
 0x235   : > { %1651 = vst.msk [vmem:[#allocation4 + $0xb9] sm:$0x1] %vm1628_vm15, %v4793_v1  ;;  %1652 = vst.msk [vmem:[#allocation4 + $0xd1] sm:$0x1] %vm1628_vm15, %v4793_v1 }
 0x236   : > { %v1516_v8 = vpop.permute.xlu0 %1515  ;;  %v1672_v2 = vld [vmem:[#allocation2 + $0x58] sm:$0xff]  ;;  %1653 = vst.msk [vmem:[#allocation4 + $0xe9] sm:$0x1] %vm1628_vm15, %v4793_v1  ;;  %1654 = vst.msk [vmem:[#allocation4 + $0x101] sm:$0x1] %vm1628_vm15, %v4793_v1 }
 0x237   : > { %1599 = vst.msk [vmem:[#allocation2 + $0x68] sm:$0xff] %vm1585_vm11, %v1516_v8  ;;  %v1384_v63 = vpop.permute.xlu1 %1383  ;;  %4536 = vmatmul.mubr.msk.f32.gmra.mrb[10].mxu0 %vm1705_vm12, %v1672_v2 }
 0x238   : > { %1466 = vst.msk [vmem:[#allocation2 + $0x70] sm:$0xff] %vm1451_vm10, %v1384_v63 }
 0x239   : > { %1655 = vst.msk [vmem:[#allocation4 + $0x119] sm:$0x1] %vm1628_vm15, %v4793_v1  ;;  %1656 = vst.msk [vmem:[#allocation4 + $0x131] sm:$0x1] %vm1628_vm15, %v4793_v1 }
 0x23a   : > { %v1386_v11 = vpop.permute.xlu0 %1385  ;;  %1657 = vst.msk [vmem:[#allocation4 + $0x149] sm:$0x1] %vm1628_vm15, %v4793_v1  ;;  %1658 = vst.msk [vmem:[#allocation4 + $0x161] sm:$0x1] %vm1628_vm15, %v4793_v1 }
 0x23b   : > { %1467 = vst.msk [vmem:[#allocation2 + $0x78] sm:$0xff] %vm1451_vm10, %v1386_v11  ;;  %v1518_v42 = vpop.permute.xlu1 %1517  ;;  %v1673_v5 = vld [vmem:[#allocation2 + $0x60] sm:$0xff] }
 0x23c   : > { %1600 = vst.msk [vmem:[#allocation2 + $0x70] sm:$0xff] %vm1585_vm11, %v1518_v42  ;;  %4538 = vmatprep.mubr.msk.f32.mxu0 %vm1705_vm12, %v1673_v5 }
 0x23d   : > { %1659 = vst.msk [vmem:[#allocation4 + $0x179] sm:$0x1] %vm1628_vm15, %v4793_v1  ;;  %1660 = vst.msk [vmem:[#allocation4 + $0x191] sm:$0x1] %vm1628_vm15, %v4793_v1 }
 0x23e   : > { %v1520_v12 = vpop.permute.xlu0 %1519  ;;  %v1674_v25 = vld [vmem:[#allocation2 + $0x68] sm:$0xff] }
 0x23f   : > { %1601 = vst.msk [vmem:[#allocation2 + $0x78] sm:$0xff] %vm1585_vm11, %v1520_v12  ;;  %v1388_v16 = vpop.permute.xlu1 %1387  ;;  %4539 = vmatmul.mubr.msk.f32.gmra.mrb[12].mxu0 %vm1705_vm12, %v1674_v25 }
 0x240   : > { %1468 = vst.msk [vmem:[#allocation2 + $0x80] sm:$0xff] %vm1451_vm10, %v1388_v16  ;;  %v2064_v16 = vld [vmem:[#allocation4 + $0x8] sm:$0xff] }
 0x241   : > { %2096 = vst.msk [vmem:[#allocation3 + $0x8] sm:$0xff] %vm1618_vm13, %v2064_v16 }
 0x242   : > { %v1390_v18 = vpop.permute.xlu0 %1389 }
 0x243   : > { %1469 = vst.msk [vmem:[#allocation2 + $0x88] sm:$0xff] %vm1451_vm10, %v1390_v18  ;;  %v1522_v55 = vpop.permute.xlu1 %1521  ;;  %v1675_v19 = vld [vmem:[#allocation2 + $0x70] sm:$0xff]  ;;  %v2063_v18 = vld [vmem:[#allocation4] sm:$0xff] }
 0x244   : > { %1602 = vst.msk [vmem:[#allocation2 + $0x80] sm:$0xff] %vm1585_vm11, %v1522_v55  ;;  %4541 = vmatprep.mubr.msk.f32.mxu0 %vm1705_vm12, %v1675_v19 }
 0x245   : > { %2095 = vst.msk [vmem:[#allocation3] sm:$0xff] %vm1618_vm13, %v2063_v18 }
 0x246   : > { %v1524_v23 = vpop.permute.xlu0 %1523  ;;  %v1676_v20 = vld [vmem:[#allocation2 + $0x78] sm:$0xff] }
 0x247   : > { %1603 = vst.msk [vmem:[#allocation2 + $0x88] sm:$0xff] %vm1585_vm11, %v1524_v23  ;;  %v1392_v3 = vpop.permute.xlu1 %1391  ;;  %4542 = vmatmul.mubr.msk.f32.gmra.mrb[14].mxu0 %vm1705_vm12, %v1676_v20  ;;  %v6283_v20 = vld [vmem:[%s7413_s2] ss:$0 sm:$0xff] }
 0x248   : > { %1470 = vst.msk [vmem:[#allocation2 + $0x90] sm:$0xff] %vm1451_vm10, %v1392_v3 }
 0x24a   : > { %v1394_v7 = vpop.permute.xlu0 %1393 }
 0x24b   : > { %1471 = vst.msk [vmem:[#allocation2 + $0x98] sm:$0xff] %vm1451_vm10, %v1394_v7  ;;  %v1526_v24 = vpop.permute.xlu1 %1525  ;;  %v1677_v27 = vld [vmem:[#allocation2 + $0x80] sm:$0xff] }
 0x24c   : > { %1604 = vst.msk [vmem:[#allocation2 + $0x90] sm:$0xff] %vm1585_vm11, %v1526_v24  ;;  %4544 = vmatprep.mubr.msk.f32.mxu0 %vm1705_vm12, %v1677_v27 }
 0x24e   : > { %v1528_v6 = vpop.permute.xlu0 %1527  ;;  %v1678_v29 = vld [vmem:[#allocation2 + $0x88] sm:$0xff] }
 0x24f   : > { %1605 = vst.msk [vmem:[#allocation2 + $0x98] sm:$0xff] %vm1585_vm11, %v1528_v6  ;;  %v1396_v30 = vpop.permute.xlu1 %1395  ;;  %4545 = vmatmul.mubr.msk.f32.gmra.mrb[16].mxu0 %vm1705_vm12, %v1678_v29 }
 0x250   : > { %1472 = vst.msk [vmem:[#allocation2 + $0xa0] sm:$0xff] %vm1451_vm10, %v1396_v30 }
 0x252   : > { %v1398_v40 = vpop.permute.xlu0 %1397 }
 0x253   : > { %1473 = vst.msk [vmem:[#allocation2 + $0xa8] sm:$0xff] %vm1451_vm10, %v1398_v40  ;;  %v1530_v49 = vpop.permute.xlu1 %1529  ;;  %v1679_v17 = vld [vmem:[#allocation2 + $0x90] sm:$0xff] }
 0x254   : > { %1606 = vst.msk [vmem:[#allocation2 + $0xa0] sm:$0xff] %vm1585_vm11, %v1530_v49  ;;  %4547 = vmatprep.mubr.msk.f32.mxu0 %vm1705_vm12, %v1679_v17 }
 0x256   : > { %v1532_v31 = vpop.permute.xlu0 %1531  ;;  %v1680_v32 = vld [vmem:[#allocation2 + $0x98] sm:$0xff] }
 0x257   : > { %1607 = vst.msk [vmem:[#allocation2 + $0xa8] sm:$0xff] %vm1585_vm11, %v1532_v31  ;;  %v1267_v9 = vpop.permute.xlu1 %1266  ;;  %4548 = vmatmul.mubr.msk.f32.gmra.mrb[18].mxu0 %vm1705_vm12, %v1680_v32 }
 0x258   : > { %1340 = vst.msk [vmem:[#allocation2 + $0xb8] sm:$0xff] %vm1316_vm9, %v1267_v9 }
 0x25a   : > { %v1400_v26 = vpop.permute.xlu0 %1399 }
 0x25b   : > { %1474 = vst.msk [vmem:[#allocation2 + $0xb0] sm:$0xff] %vm1451_vm10, %v1400_v26  ;;  %v1402_v59 = vpop.permute.xlu1 %1401  ;;  %v1681_v41 = vld [vmem:[#allocation2 + $0xa0] sm:$0xff] }
 0x25c   : > { %1475 = vst.msk [vmem:[#allocation2 + $0xb8] sm:$0xff] %vm1451_vm10, %v1402_v59  ;;  %4550 = vmatprep.mubr.msk.f32.mxu0 %vm1705_vm12, %v1681_v41 }
 0x25e   : > { %v1534_v53 = vpop.permute.xlu0 %1533  ;;  %v1682_v13 = vld [vmem:[#allocation2 + $0xa8] sm:$0xff] }
 0x25f   : > { %1608 = vst.msk [vmem:[#allocation2 + $0xb0] sm:$0xff] %vm1585_vm11, %v1534_v53  ;;  %v1536_v58 = vpop.permute.xlu1 %1535  ;;  %4551 = vmatmul.mubr.msk.f32.gmra.mrb[20].mxu0 %vm1705_vm12, %v1682_v13 }
 0x260   : > { %1609 = vst.msk [vmem:[#allocation2 + $0xb8] sm:$0xff] %vm1585_vm11, %v1536_v58 }
 0x262   : > { %v1269_v34 = vpop.permute.xlu0 %1268 }
 0x263   : > { %1341 = vst.msk [vmem:[#allocation2 + $0xc0] sm:$0xff] %vm1316_vm9, %v1269_v34  ;;  %v1271_v36 = vpop.permute.xlu1 %1270 }
 0x264   : > { %1342 = vst.msk [vmem:[#allocation2 + $0xc8] sm:$0xff] %vm1316_vm9, %v1271_v36 }
 0x266   : > { %v1404_v38 = vpop.permute.xlu0 %1403  ;;  %v1683_v14 = vld [vmem:[#allocation2 + $0xb0] sm:$0xff] }
 0x267   : > { %1476 = vst.msk [vmem:[#allocation2 + $0xc0] sm:$0xff] %vm1451_vm10, %v1404_v38  ;;  %v1406_v57 = vpop.permute.xlu1 %1405  ;;  %4553 = vmatprep.mubr.msk.f32.mxu0 %vm1705_vm12, %v1683_v14  ;;  %v1684_v45 = vld [vmem:[#allocation2 + $0xb8] sm:$0xff] }
 0x268   : > { %1477 = vst.msk [vmem:[#allocation2 + $0xc8] sm:$0xff] %vm1451_vm10, %v1406_v57  ;;  %4554 = vmatmul.mubr.msk.f32.gmra.mrb[22].mxu0 %vm1705_vm12, %v1684_v45 }
 0x26a   : > { %v1538_v50 = vpop.permute.xlu0 %1537 }
 0x26b   : > { %1610 = vst.msk [vmem:[#allocation2 + $0xc0] sm:$0xff] %vm1585_vm11, %v1538_v50  ;;  %v1540_v48 = vpop.permute.xlu1 %1539 }
 0x26c   : > { %1611 = vst.msk [vmem:[#allocation2 + $0xc8] sm:$0xff] %vm1585_vm11, %v1540_v48 }
 0x26e   : > { %v1273_v51 = vpop.permute.xlu0 %1272 }
 0x26f   : > { %1343 = vst.msk [vmem:[#allocation2 + $0xd0] sm:$0xff] %vm1316_vm9, %v1273_v51  ;;  %v1275_v54 = vpop.permute.xlu1 %1274 }
 0x270   : > { %1344 = vst.msk [vmem:[#allocation2 + $0xd8] sm:$0xff] %vm1316_vm9, %v1275_v54 }
 0x272   : > { %v1408_v33 = vpop.permute.xlu0 %1407  ;;  %v1685_v22 = vld [vmem:[#allocation2 + $0xc0] sm:$0xff] }
 0x273   : > { %1478 = vst.msk [vmem:[#allocation2 + $0xd0] sm:$0xff] %vm1451_vm10, %v1408_v33  ;;  %v1410_v62 = vpop.permute.xlu1 %1409  ;;  %4556 = vmatprep.mubr.msk.f32.mxu0 %vm1705_vm12, %v1685_v22  ;;  %v1686_v39 = vld [vmem:[#allocation2 + $0xc8] sm:$0xff] }
 0x274   : > { %1479 = vst.msk [vmem:[#allocation2 + $0xd8] sm:$0xff] %vm1451_vm10, %v1410_v62  ;;  %4557 = vmatmul.mubr.msk.f32.gmra.mrb[24].mxu0 %vm1705_vm12, %v1686_v39 }
 0x276   : > { %v1542_v10 = vpop.permute.xlu0 %1541 }
 0x277   : > { %1612 = vst.msk [vmem:[#allocation2 + $0xd0] sm:$0xff] %vm1585_vm11, %v1542_v10  ;;  %v1544_v56 = vpop.permute.xlu1 %1543 }
 0x278   : > { %1613 = vst.msk [vmem:[#allocation2 + $0xd8] sm:$0xff] %vm1585_vm11, %v1544_v56 }
 0x27a   : > { %v1277_v47 = vpop.permute.xlu0 %1276 }
 0x27b   : > { %1345 = vst.msk [vmem:[#allocation2 + $0xe0] sm:$0xff] %vm1316_vm9, %v1277_v47  ;;  %v1279_v35 = vpop.permute.xlu1 %1278 }
 0x27c   : > { %1346 = vst.msk [vmem:[#allocation2 + $0xe8] sm:$0xff] %vm1316_vm9, %v1279_v35 }
 0x27e   : > { %v1412_v52 = vpop.permute.xlu0 %1411  ;;  %v1687_v15 = vld [vmem:[#allocation2 + $0xd0] sm:$0xff] }
 0x27f   : > { %1480 = vst.msk [vmem:[#allocation2 + $0xe0] sm:$0xff] %vm1451_vm10, %v1412_v52  ;;  %v1414_v0 = vpop.permute.xlu1 %1413  ;;  %4559 = vmatprep.mubr.msk.f32.mxu0 %vm1705_vm12, %v1687_v15  ;;  %v1688_v60 = vld [vmem:[#allocation2 + $0xd8] sm:$0xff] }
 0x280   : > { %1481 = vst.msk [vmem:[#allocation2 + $0xe8] sm:$0xff] %vm1451_vm10, %v1414_v0  ;;  %4560 = vmatmul.mubr.msk.f32.gmra.mrb[26].mxu0 %vm1705_vm12, %v1688_v60 }
 0x282   : > { %v1546_v28 = vpop.permute.xlu0 %1545 }
 0x283   : > { %1614 = vst.msk [vmem:[#allocation2 + $0xe0] sm:$0xff] %vm1585_vm11, %v1546_v28  ;;  %v1548_v8 = vpop.permute.xlu1 %1547 }
 0x284   : > { %1615 = vst.msk [vmem:[#allocation2 + $0xe8] sm:$0xff] %vm1585_vm11, %v1548_v8 }
 0x286   : > { %v1281_v42 = vpop.permute.xlu0 %1280 }
 0x287   : > { %v1283_v11 = vpop.permute.xlu1 %1282  ;;  %1347 = vst.msk [vmem:[#allocation2 + $0xf0] sm:$0xff] %vm1316_vm9, %v1281_v42 }
 0x288   : > { %1348 = vst.msk [vmem:[#allocation2 + $0xf8] sm:$0xff] %vm1316_vm9, %v1283_v11 }
 0x28a   : > { %v1689_v2 = vld [vmem:[#allocation2 + $0xe0] sm:$0xff]  ;;  %v1416_v12 = vpop.permute.xlu0 %1415 }
 0x28b   : > { %4562 = vmatprep.mubr.msk.f32.mxu0 %vm1705_vm12, %v1689_v2  ;;  %v1690_v63 = vld [vmem:[#allocation2 + $0xe8] sm:$0xff]  ;;  %v1418_v5 = vpop.permute.xlu1 %1417  ;;  %1482 = vst.msk [vmem:[#allocation2 + $0xf0] sm:$0xff] %vm1451_vm10, %v1416_v12 }
 0x28c   : > { %4563 = vmatmul.mubr.msk.f32.gmra.mrb[28].mxu0 %vm1705_vm12, %v1690_v63  ;;  %1483 = vst.msk [vmem:[#allocation2 + $0xf8] sm:$0xff] %vm1451_vm10, %v1418_v5 }
 0x28e   : > { %v1550_v55 = vpop.permute.xlu0 %1549 }
 0x28f   : > { %v1552_v25 = vpop.permute.xlu1 %1551  ;;  %1616 = vst.msk [vmem:[#allocation2 + $0xf0] sm:$0xff] %vm1585_vm11, %v1550_v55 }
 0x290   : > { %1617 = vst.msk [vmem:[#allocation2 + $0xf8] sm:$0xff] %vm1585_vm11, %v1552_v25 }
 0x293   : > { %v2192_v23 = vpop.permute.xlu0 %2191 }
 0x294   : > { %v2194_v19 = vpop.permute.xlu1 %2193  ;;  %2288 = vst.msk [vmem:[#allocation3] sm:$0xff] %vm2287_vm0, %v2192_v23 }
 0x295   : > { %2289 = vst.msk [vmem:[#allocation3 + $0x8] sm:$0xff] %vm2287_vm0, %v2194_v19 }
 0x2e2   : > { %v4522_v3 = vpop.f32.mrb[0].mxu0 }
 0x2e3   : > { %v1878_v7 = vadd.f32 %v4522_v3, %v6283_v20  ;;  %v1872_v24 = vpop.f32.mrb[1].mxu0  ;;  %v1691_v3 = vld [vmem:[#allocation2 + $0xf0] sm:$0xff] }
 0x2e4   : > { %v1873_v27 = vadd.f32 %v6283_v20, %v1872_v24  ;;  %4565 = vmatprep.mubr.msk.f32.mxu0 %vm1705_vm12, %v1691_v3 }
 0x2e5   : > { %2032 = vst.msk [vmem:[#allocation4 + $0x21] sm:$0xff] %vm1618_vm13, %v1878_v7  ;;  %v1692_v7 = vld [vmem:[#allocation2 + $0xf8] sm:$0xff] }
 0x2e6   : > { %2031 = vst.msk [vmem:[#allocation4 + $0x19] sm:$0xff] %vm1618_vm13, %v1873_v27  ;;  %4566 = vmatmul.mubr.msk.f32.gmra.mrb[30].mxu0 %vm1705_vm12, %v1692_v7 }
 0x2ea   : > { %v4525_v6 = vpop.f32.mrb[2].mxu0 }
 0x2eb   : > { %v1888_v29 = vadd.f32 %v4525_v6, %v6283_v20  ;;  %v1882_v30 = vpop.f32.mrb[3].mxu0 }
 0x2ec   : > { %v1883_v40 = vadd.f32 %v6283_v20, %v1882_v30  ;;  %v6291_v49 = vld [vmem:[#allocation4 + $0x21] sm:$0xff] }
 0x2ed   : > { %2034 = vst.msk [vmem:[#allocation4 + $0x39] sm:$0xff] %vm1618_vm13, %v1888_v29  ;;  %2197 = vrot.lane.b32.xlu1 %v6291_v49, %s4786_s15  ;;  %v6296_v17 = vld [vmem:[#allocation4 + $0x19] sm:$0xff] }
 0x2ee   : > { %v6298_v31 = vld [vmem:[#allocation4 + $0x20] sm:$0xff]  ;;  %v6300_v32 = vld [vmem:[#allocation4 + $0x18] sm:$0xff]  ;;  %2033 = vst.msk [vmem:[#allocation4 + $0x31] sm:$0xff] %vm1618_vm13, %v1883_v40  ;;  %2195 = vrot.lane.b32.xlu0 %v6296_v17, %s4786_s15 }
 0x2ef   : > { %2098 = vst.msk [vmem:[#allocation3 + $0x18] sm:$0xff] %vm1618_vm13, %v6298_v31  ;;  %2097 = vst.msk [vmem:[#allocation3 + $0x10] sm:$0xff] %vm1618_vm13, %v6300_v32 }
 0x2f2   : > { %v4528_v9 = vpop.f32.mrb[4].mxu0 }
 0x2f3   : > { %v1898_v26 = vadd.f32 %v4528_v9, %v6283_v20  ;;  %v1892_v59 = vpop.f32.mrb[5].mxu0 }
 0x2f4   : > { %v1893_v41 = vadd.f32 %v6283_v20, %v1892_v59  ;;  %v6311_v53 = vld [vmem:[#allocation4 + $0x39] sm:$0xff] }
 0x2f5   : > { %2036 = vst.msk [vmem:[#allocation4 + $0x51] sm:$0xff] %vm1618_vm13, %v1898_v26  ;;  %2201 = vrot.lane.b32.xlu1 %v6311_v53, %s4786_s15  ;;  %v6316_v13 = vld [vmem:[#allocation4 + $0x31] sm:$0xff] }
 0x2f6   : > { %v6318_v58 = vld [vmem:[#allocation4 + $0x38] sm:$0xff]  ;;  %v6320_v43 = vld [vmem:[#allocation4 + $0x30] sm:$0xff]  ;;  %2035 = vst.msk [vmem:[#allocation4 + $0x49] sm:$0xff] %vm1618_vm13, %v1893_v41  ;;  %2199 = vrot.lane.b32.xlu0 %v6316_v13, %s4786_s15 }
 0x2f7   : > { %2100 = vst.msk [vmem:[#allocation3 + $0x28] sm:$0xff] %vm1618_vm13, %v6318_v58  ;;  %2099 = vst.msk [vmem:[#allocation3 + $0x20] sm:$0xff] %vm1618_vm13, %v6320_v43 }
 0x2fa   : > { %v4531_v44 = vpop.f32.mrb[6].mxu0 }
 0x2fb   : > { %v1908_v1 = vadd.f32 %v4531_v44, %v6283_v20  ;;  %v1902_v34 = vpop.f32.mrb[7].mxu0 }
 0x2fc   : > { %v1903_v21 = vadd.f32 %v6283_v20, %v1902_v34  ;;  %v6331_v36 = vld [vmem:[#allocation4 + $0x51] sm:$0xff] }
 0x2fd   : > { %2038 = vst.msk [vmem:[#allocation4 + $0x69] sm:$0xff] %vm1618_vm13, %v1908_v1  ;;  %2205 = vrot.lane.b32.xlu1 %v6331_v36, %s4786_s15  ;;  %v6336_v37 = vld [vmem:[#allocation4 + $0x49] sm:$0xff] }
 0x2fe   : > { %v6338_v61 = vld [vmem:[#allocation4 + $0x50] sm:$0xff]  ;;  %v6340_v38 = vld [vmem:[#allocation4 + $0x48] sm:$0xff]  ;;  %2037 = vst.msk [vmem:[#allocation4 + $0x61] sm:$0xff] %vm1618_vm13, %v1903_v21  ;;  %2203 = vrot.lane.b32.xlu0 %v6336_v37, %s4786_s15 }
 0x2ff   : > { %2102 = vst.msk [vmem:[#allocation3 + $0x38] sm:$0xff] %vm1618_vm13, %v6338_v61  ;;  %2101 = vst.msk [vmem:[#allocation3 + $0x30] sm:$0xff] %vm1618_vm13, %v6340_v38 }
 0x302   : > { %v4534_v14 = vpop.f32.mrb[8].mxu0 }
 0x303   : > { %v1918_v57 = vadd.f32 %v4534_v14, %v6283_v20  ;;  %v1912_v45 = vpop.f32.mrb[9].mxu0 }
 0x304   : > { %v1913_v46 = vadd.f32 %v6283_v20, %v1912_v45  ;;  %v6351_v4 = vld [vmem:[#allocation4 + $0x69] sm:$0xff] }
 0x305   : > { %2040 = vst.msk [vmem:[#allocation4 + $0x81] sm:$0xff] %vm1618_vm13, %v1918_v57  ;;  %2209 = vrot.lane.b32.xlu1 %v6351_v4, %s4786_s15  ;;  %v6356_v50 = vld [vmem:[#allocation4 + $0x61] sm:$0xff] }
 0x306   : > { %v6358_v48 = vld [vmem:[#allocation4 + $0x68] sm:$0xff]  ;;  %v6360_v51 = vld [vmem:[#allocation4 + $0x60] sm:$0xff]  ;;  %2039 = vst.msk [vmem:[#allocation4 + $0x79] sm:$0xff] %vm1618_vm13, %v1913_v46  ;;  %2207 = vrot.lane.b32.xlu0 %v6356_v50, %s4786_s15 }
 0x307   : > { %2104 = vst.msk [vmem:[#allocation3 + $0x48] sm:$0xff] %vm1618_vm13, %v6358_v48  ;;  %2103 = vst.msk [vmem:[#allocation3 + $0x40] sm:$0xff] %vm1618_vm13, %v6360_v51 }
 0x30a   : > { %v4537_v54 = vpop.f32.mrb[10].mxu0 }
 0x30b   : > { %v1928_v33 = vadd.f32 %v4537_v54, %v6283_v20  ;;  %v1922_v22 = vpop.f32.mrb[11].mxu0 }
 0x30c   : > { %v1923_v62 = vadd.f32 %v6283_v20, %v1922_v22  ;;  %v6371_v39 = vld [vmem:[#allocation4 + $0x81] sm:$0xff] }
 0x30d   : > { %2042 = vst.msk [vmem:[#allocation4 + $0x99] sm:$0xff] %vm1618_vm13, %v1928_v33  ;;  %2213 = vrot.lane.b32.xlu1 %v6371_v39, %s4786_s15  ;;  %v6376_v10 = vld [vmem:[#allocation4 + $0x79] sm:$0xff] }
 0x30e   : > { %v6378_v56 = vld [vmem:[#allocation4 + $0x80] sm:$0xff]  ;;  %v6380_v47 = vld [vmem:[#allocation4 + $0x78] sm:$0xff]  ;;  %2041 = vst.msk [vmem:[#allocation4 + $0x91] sm:$0xff] %vm1618_vm13, %v1923_v62  ;;  %2211 = vrot.lane.b32.xlu0 %v6376_v10, %s4786_s15 }
 0x30f   : > { %2106 = vst.msk [vmem:[#allocation3 + $0x58] sm:$0xff] %vm1618_vm13, %v6378_v56  ;;  %2105 = vst.msk [vmem:[#allocation3 + $0x50] sm:$0xff] %vm1618_vm13, %v6380_v47 }
 0x312   : > { %v4540_v35 = vpop.f32.mrb[12].mxu0 }
 0x313   : > { %v1938_v52 = vadd.f32 %v4540_v35, %v6283_v20  ;;  %v1932_v15 = vpop.f32.mrb[13].mxu0 }
 0x314   : > { %v1933_v0 = vadd.f32 %v6283_v20, %v1932_v15  ;;  %v2140_v60 = vld [vmem:[#allocation4 + $0x99] sm:$0xff] }
 0x315   : > { %2044 = vst.msk [vmem:[#allocation4 + $0xb1] sm:$0xff] %vm1618_vm13, %v1938_v52  ;;  %2217 = vrot.lane.b32.xlu1 %v2140_v60, %s4786_s15  ;;  %v6393_v28 = vld [vmem:[#allocation4 + $0x91] sm:$0xff] }
 0x316   : > { %v6395_v8 = vld [vmem:[#allocation4 + $0x98] sm:$0xff]  ;;  %2043 = vst.msk [vmem:[#allocation4 + $0xa9] sm:$0xff] %vm1618_vm13, %v1933_v0  ;;  %2215 = vrot.lane.b32.xlu0 %v6393_v28, %s4786_s15  ;;  %v6402_v2 = vld [vmem:[#allocation4 + $0x90] sm:$0xff] }
 0x317   : > { %2108 = vst.msk [vmem:[#allocation3 + $0x68] sm:$0xff] %vm1618_vm13, %v6395_v8  ;;  %2107 = vst.msk [vmem:[#allocation3 + $0x60] sm:$0xff] %vm1618_vm13, %v6402_v2 }
 0x31a   : > { %v4543_v63 = vpop.f32.mrb[14].mxu0 }
 0x31b   : > { %v1948_v11 = vadd.f32 %v4543_v63, %v6283_v20  ;;  %v1942_v42 = vpop.f32.mrb[15].mxu0 }
 0x31c   : > { %v1943_v5 = vadd.f32 %v6283_v20, %v1942_v42  ;;  %v2142_v12 = vld [vmem:[#allocation4 + $0xb1] sm:$0xff] }
 0x31d   : > { %2046 = vst.msk [vmem:[#allocation4 + $0xc9] sm:$0xff] %vm1618_vm13, %v1948_v11  ;;  %2221 = vrot.lane.b32.xlu1 %v2142_v12, %s4786_s15  ;;  %v2141_v25 = vld [vmem:[#allocation4 + $0xa9] sm:$0xff] }
 0x31e   : > { %v6410_v16 = vld [vmem:[#allocation4 + $0xb0] sm:$0xff]  ;;  %2045 = vst.msk [vmem:[#allocation4 + $0xc1] sm:$0xff] %vm1618_vm13, %v1943_v5  ;;  %2219 = vrot.lane.b32.xlu0 %v2141_v25, %s4786_s15  ;;  %v6416_v18 = vld [vmem:[#allocation4 + $0xa8] sm:$0xff] }
 0x31f   : > { %2110 = vst.msk [vmem:[#allocation3 + $0x78] sm:$0xff] %vm1618_vm13, %v6410_v16  ;;  %2109 = vst.msk [vmem:[#allocation3 + $0x70] sm:$0xff] %vm1618_vm13, %v6416_v18 }
 0x322   : > { %v4546_v55 = vpop.f32.mrb[16].mxu0 }
 0x323   : > { %v1958_v19 = vadd.f32 %v4546_v55, %v6283_v20  ;;  %v1952_v23 = vpop.f32.mrb[17].mxu0 }
 0x324   : > { %v1953_v24 = vadd.f32 %v6283_v20, %v1952_v23  ;;  %v2144_v27 = vld [vmem:[#allocation4 + $0xc9] sm:$0xff] }
 0x325   : > { %2048 = vst.msk [vmem:[#allocation4 + $0xe1] sm:$0xff] %vm1618_vm13, %v1958_v19  ;;  %2225 = vrot.lane.b32.xlu1 %v2144_v27, %s4786_s15  ;;  %v2143_v6 = vld [vmem:[#allocation4 + $0xc1] sm:$0xff] }
 0x326   : > { %v6425_v29 = vld [vmem:[#allocation4 + $0xc8] sm:$0xff]  ;;  %2047 = vst.msk [vmem:[#allocation4 + $0xd9] sm:$0xff] %vm1618_vm13, %v1953_v24  ;;  %2223 = vrot.lane.b32.xlu0 %v2143_v6, %s4786_s15  ;;  %v6432_v30 = vld [vmem:[#allocation4 + $0xc0] sm:$0xff] }
 0x327   : > { %2112 = vst.msk [vmem:[#allocation3 + $0x88] sm:$0xff] %vm1618_vm13, %v6425_v29  ;;  %2111 = vst.msk [vmem:[#allocation3 + $0x80] sm:$0xff] %vm1618_vm13, %v6432_v30 }
 0x32a   : > { %v4549_v40 = vpop.f32.mrb[18].mxu0 }
 0x32b   : > { %v1968_v9 = vadd.f32 %v4549_v40, %v6283_v20  ;;  %v1962_v26 = vpop.f32.mrb[19].mxu0 }
 0x32c   : > { %v1963_v59 = vadd.f32 %v6283_v20, %v1962_v26  ;;  %v2146_v41 = vld [vmem:[#allocation4 + $0xe1] sm:$0xff] }
 0x32d   : > { %2050 = vst.msk [vmem:[#allocation4 + $0xf9] sm:$0xff] %vm1618_vm13, %v1968_v9  ;;  %2229 = vrot.lane.b32.xlu1 %v2146_v41, %s4786_s15  ;;  %v2145_v44 = vld [vmem:[#allocation4 + $0xd9] sm:$0xff] }
 0x32e   : > { %v6440_v1 = vld [vmem:[#allocation4 + $0xe0] sm:$0xff]  ;;  %2049 = vst.msk [vmem:[#allocation4 + $0xf1] sm:$0xff] %vm1618_vm13, %v1963_v59  ;;  %2227 = vrot.lane.b32.xlu0 %v2145_v44, %s4786_s15  ;;  %v6446_v34 = vld [vmem:[#allocation4 + $0xd8] sm:$0xff] }
 0x32f   : > { %2114 = vst.msk [vmem:[#allocation3 + $0x98] sm:$0xff] %vm1618_vm13, %v6440_v1  ;;  %2113 = vst.msk [vmem:[#allocation3 + $0x90] sm:$0xff] %vm1618_vm13, %v6446_v34 }
 0x332   : > { %v4552_v21 = vpop.f32.mrb[20].mxu0 }
 0x333   : > { %v1978_v14 = vadd.f32 %v4552_v21, %v6283_v20  ;;  %v1972_v57 = vpop.f32.mrb[21].mxu0 }
 0x334   : > { %v1973_v45 = vadd.f32 %v6283_v20, %v1972_v57  ;;  %v2148_v46 = vld [vmem:[#allocation4 + $0xf9] sm:$0xff] }
 0x335   : > { %2052 = vst.msk [vmem:[#allocation4 + $0x111] sm:$0xff] %vm1618_vm13, %v1978_v14  ;;  %2233 = vrot.lane.b32.xlu1 %v2148_v46, %s4786_s15  ;;  %v2147_v54 = vld [vmem:[#allocation4 + $0xf1] sm:$0xff] }
 0x336   : > { %v6454_v33 = vld [vmem:[#allocation4 + $0xf8] sm:$0xff]  ;;  %2051 = vst.msk [vmem:[#allocation4 + $0x109] sm:$0xff] %vm1618_vm13, %v1973_v45  ;;  %2231 = vrot.lane.b32.xlu0 %v2147_v54, %s4786_s15  ;;  %v6460_v22 = vld [vmem:[#allocation4 + $0xf0] sm:$0xff] }
 0x337   : > { %2116 = vst.msk [vmem:[#allocation3 + $0xa8] sm:$0xff] %vm1618_vm13, %v6454_v33  ;;  %2115 = vst.msk [vmem:[#allocation3 + $0xa0] sm:$0xff] %vm1618_vm13, %v6460_v22 }
 0x33b   : > { %v4555_v62 = vpop.f32.mrb[22].mxu0 }
 0x33c   : > { %v1988_v35 = vadd.f32 %v4555_v62, %v6283_v20  ;;  %v1982_v52 = vpop.f32.mrb[23].mxu0  ;;  %v2150_v15 = vld [vmem:[#allocation4 + $0x111] sm:$0xff] }
 0x33d   : > { %v1983_v0 = vadd.f32 %v6283_v20, %v1982_v52  ;;  %2237 = vrot.lane.b32.xlu1 %v2150_v15, %s4786_s15  ;;  %v2149_v60 = vld [vmem:[#allocation4 + $0x109] sm:$0xff] }
 0x33e   : > { %v2086_v63 = vld [vmem:[#allocation4 + $0x110] sm:$0xff]  ;;  %2054 = vst.msk [vmem:[#allocation4 + $0x129] sm:$0xff] %vm1618_vm13, %v1988_v35  ;;  %2235 = vrot.lane.b32.xlu0 %v2149_v60, %s4786_s15  ;;  %v6470_v11 = vld [vmem:[#allocation4 + $0x108] sm:$0xff] }
 0x33f   : > { %2118 = vst.msk [vmem:[#allocation3 + $0xb8] sm:$0xff] %vm1618_vm13, %v2086_v63  ;;  %2053 = vst.msk [vmem:[#allocation4 + $0x121] sm:$0xff] %vm1618_vm13, %v1983_v0 }
 0x340   : > { %2117 = vst.msk [vmem:[#allocation3 + $0xb0] sm:$0xff] %vm1618_vm13, %v6470_v11 }
 0x345   : > { %v2152_v42 = vld [vmem:[#allocation4 + $0x129] sm:$0xff] }
 0x346   : > { %2241 = vrot.lane.b32.xlu1 %v2152_v42, %s4786_s15  ;;  %v2151_v5 = vld [vmem:[#allocation4 + $0x121] sm:$0xff]  ;;  %v2321_v42 = vld [vmem:[#allocation4 + $0xa] sm:$0xff] }
 0x347   : > { %v2088_v12 = vld [vmem:[#allocation4 + $0x128] sm:$0xff]  ;;  %v4558_v25 = vpop.f32.mrb[24].mxu0  ;;  %2239 = vrot.lane.b32.xlu0 %v2151_v5, %s4786_s15  ;;  %v2087_v55 = vld [vmem:[#allocation4 + $0x120] sm:$0xff] }
 0x348   : > { %2120 = vst.msk [vmem:[#allocation3 + $0xc8] sm:$0xff] %vm1618_vm13, %v2088_v12  ;;  %v1998_v19 = vadd.f32 %v4558_v25, %v6283_v20  ;;  %v1992_v23 = vpop.f32.mrb[25].mxu0  ;;  %2119 = vst.msk [vmem:[#allocation3 + $0xc0] sm:$0xff] %vm1618_vm13, %v2087_v55  ;;  %v2320_v12 = vld [vmem:[#allocation4 + $0x2] sm:$0xff] }
 0x349   : > { %v1993_v3 = vadd.f32 %v6283_v20, %v1992_v23  ;;  %v6515_v23 = vld [vmem:[#allocation4 + $0x1a] sm:$0xff] }
 0x34a   : > { %2056 = vst.msk [vmem:[#allocation4 + $0x141] sm:$0xff] %vm1618_vm13, %v1998_v19  ;;  %v6511_v19 = vld [vmem:[#allocation4 + $0x22] sm:$0xff] }
 0x34b   : > { %2055 = vst.msk [vmem:[#allocation4 + $0x139] sm:$0xff] %vm1618_vm13, %v1993_v3  ;;  %v6519_v3 = vld [vmem:[#allocation4 + $0x3a] sm:$0xff] }
 0x351   : > { %v2154_v7 = vld [vmem:[#allocation4 + $0x141] sm:$0xff] }
 0x352   : > { %2245 = vrot.lane.b32.xlu1 %v2154_v7, %s4786_s15  ;;  %v2153_v24 = vld [vmem:[#allocation4 + $0x139] sm:$0xff] }
 0x353   : > { %v2090_v27 = vld [vmem:[#allocation4 + $0x140] sm:$0xff]  ;;  %v4561_v6 = vpop.f32.mrb[26].mxu0  ;;  %2243 = vrot.lane.b32.xlu0 %v2153_v24, %s4786_s15  ;;  %v2089_v40 = vld [vmem:[#allocation4 + $0x138] sm:$0xff] }
 0x354   : > { %2122 = vst.msk [vmem:[#allocation3 + $0xd8] sm:$0xff] %vm1618_vm13, %v2090_v27  ;;  %v2008_v9 = vadd.f32 %v4561_v6, %v6283_v20  ;;  %v2002_v26 = vpop.f32.mrb[27].mxu0  ;;  %2121 = vst.msk [vmem:[#allocation3 + $0xd0] sm:$0xff] %vm1618_vm13, %v2089_v40  ;;  %v6523_v7 = vld [vmem:[#allocation4 + $0x32] sm:$0xff]  ;;  %v6533_v40 = vld [vmem:[#allocation4 + $0x4a] sm:$0xff] }
 0x355   : > { %v2003_v59 = vadd.f32 %v6283_v20, %v2002_v26  ;;  %v6529_v6 = vld [vmem:[#allocation4 + $0x52] sm:$0xff]  ;;  %v6541_v26 = vld [vmem:[#allocation4 + $0x62] sm:$0xff] }
 0x356   : > { %2058 = vst.msk [vmem:[#allocation4 + $0x159] sm:$0xff] %vm1618_vm13, %v2008_v9  ;;  %v6537_v9 = vld [vmem:[#allocation4 + $0x6a] sm:$0xff] }
 0x357   : > { %2057 = vst.msk [vmem:[#allocation4 + $0x151] sm:$0xff] %vm1618_vm13, %v2003_v59 }
 0x35d   : > { %v2156_v41 = vld [vmem:[#allocation4 + $0x159] sm:$0xff] }
 0x35e   : > { %2249 = vrot.lane.b32.xlu1 %v2156_v41, %s4786_s15  ;;  %v2155_v44 = vld [vmem:[#allocation4 + $0x151] sm:$0xff] }
 0x35f   : > { %v2092_v21 = vld [vmem:[#allocation4 + $0x158] sm:$0xff]  ;;  %v2198_v14 = vpop.permute.xlu1 %2197  ;;  %v4564_v57 = vpop.f32.mrb[28].mxu0  ;;  %2247 = vrot.lane.b32.xlu0 %v2155_v44, %s4786_s15  ;;  %v2091_v45 = vld [vmem:[#allocation4 + $0x150] sm:$0xff]  ;;  %v6547_v44 = vld [vmem:[#allocation4 + $0x82] sm:$0xff] }
 0x360   : > { %2124 = vst.msk [vmem:[#allocation3 + $0xe8] sm:$0xff] %vm1618_vm13, %v2092_v21  ;;  %v2018_v46 = vadd.f32 %v4564_v57, %v6283_v20  ;;  %v2012_v54 = vpop.f32.mrb[29].mxu0  ;;  %v2196_v62 = vpop.permute.xlu0 %2195  ;;  %2123 = vst.msk [vmem:[#allocation3 + $0xe0] sm:$0xff] %vm1618_vm13, %v2091_v45  ;;  %v6551_v21 = vld [vmem:[#allocation4 + $0x7a] sm:$0xff]  ;;  %v6559_v57 = vld [vmem:[#allocation4 + $0x92] sm:$0xff] }
 0x361   : > { %2291 = vst.msk [vmem:[#allocation3 + $0x18] sm:$0xff] %vm2287_vm0, %v2198_v14  ;;  %v2013_v35 = vadd.f32 %v6283_v20, %v2012_v54  ;;  %2290 = vst.msk [vmem:[#allocation3 + $0x10] sm:$0xff] %vm2287_vm0, %v2196_v62  ;;  %v6555_v14 = vld [vmem:[#allocation4 + $0x9a] sm:$0xff]  ;;  %v6565_v54 = vld [vmem:[#allocation4 + $0xb2] sm:$0xff] }
 0x362   : > { %2060 = vst.msk [vmem:[#allocation4 + $0x171] sm:$0xff] %vm1618_vm13, %v2018_v46  ;;  %v6569_v62 = vld [vmem:[#allocation4 + $0xaa] sm:$0xff] }
 0x363   : > { %2059 = vst.msk [vmem:[#allocation4 + $0x169] sm:$0xff] %vm1618_vm13, %v2013_v35  ;;  %v6573_v35 = vld [vmem:[#allocation4 + $0xca] sm:$0xff] }
 0x367   : > { %v2202_v52 = vpop.permute.xlu1 %2201 }
 0x368   : > { %2293 = vst.msk [vmem:[#allocation3 + $0x28] sm:$0xff] %vm2287_vm0, %v2202_v52  ;;  %v2200_v15 = vpop.permute.xlu0 %2199  ;;  %v6577_v52 = vld [vmem:[#allocation4 + $0xc2] sm:$0xff] }
 0x369   : > { %2292 = vst.msk [vmem:[#allocation3 + $0x20] sm:$0xff] %vm2287_vm0, %v2200_v15  ;;  %v2158_v0 = vld [vmem:[#allocation4 + $0x171] sm:$0xff] }
 0x36a   : > { %2253 = vrot.lane.b32.xlu1 %v2158_v0, %s4786_s15  ;;  %v2157_v60 = vld [vmem:[#allocation4 + $0x169] sm:$0xff] }
 0x36b   : > { %v2094_v63 = vld [vmem:[#allocation4 + $0x170] sm:$0xff]  ;;  %2251 = vrot.lane.b32.xlu0 %v2157_v60, %s4786_s15  ;;  %v2093_v5 = vld [vmem:[#allocation4 + $0x168] sm:$0xff]  ;;  %s4794_s15 = smov 40  }
 0x36c   : > { %2126 = vst.msk [vmem:[#allocation3 + $0xf8] sm:$0xff] %vm1618_vm13, %v2094_v63  ;;  %2125 = vst.msk [vmem:[#allocation3 + $0xf0] sm:$0xff] %vm1618_vm13, %v2093_v5  ;;  %v6583_v60 = vld [vmem:[#allocation4 + $0xe2] sm:$0xff]  ;;  %v6587_v63 = vld [vmem:[#allocation4 + $0xda] sm:$0xff] }
 0x36d   : > { %v2340_v5 = vld [vmem:[#allocation4 + $0xf2] sm:$0xff] }
 0x36e   : > { %2386 = vrot.lane.b32.xlu1 %v2321_v42, %s4788_s17  ;;  %v2341_v42 = vld [vmem:[#allocation4 + $0xfa] sm:$0xff] }
 0x36f   : > { %v2206_v25 = vpop.permute.xlu1 %2205  ;;  %2384 = vrot.lane.b32.xlu0 %v2320_v12, %s4788_s17 }
 0x370   : > { %2295 = vst.msk [vmem:[#allocation3 + $0x38] sm:$0xff] %vm2287_vm0, %v2206_v25  ;;  %v2204_v55 = vpop.permute.xlu0 %2203 }
 0x371   : > { %2294 = vst.msk [vmem:[#allocation3 + $0x30] sm:$0xff] %vm2287_vm0, %v2204_v55  ;;  %v2343_v55 = vld [vmem:[#allocation4 + $0x112] sm:$0xff] }
 0x372   : > { %2390 = vrot.lane.b32.xlu1 %v6511_v19, %s4788_s17 }
 0x373   : > { %2388 = vrot.lane.b32.xlu0 %v6515_v23, %s4788_s17 }
 0x376   : > { %2394 = vrot.lane.b32.xlu1 %v6519_v3, %s4788_s17 }
 0x377   : > { %v2210_v24 = vpop.permute.xlu1 %2209  ;;  %2392 = vrot.lane.b32.xlu0 %v6523_v7, %s4788_s17 }
 0x378   : > { %2297 = vst.msk [vmem:[#allocation3 + $0x48] sm:$0xff] %vm2287_vm0, %v2210_v24  ;;  %v2208_v27 = vpop.permute.xlu0 %2207  ;;  %v2342_v24 = vld [vmem:[#allocation4 + $0x10a] sm:$0xff] }
 0x379   : > { %2296 = vst.msk [vmem:[#allocation3 + $0x40] sm:$0xff] %vm2287_vm0, %v2208_v27  ;;  %v2345_v27 = vld [vmem:[#allocation4 + $0x12a] sm:$0xff] }
 0x37a   : > { %2398 = vrot.lane.b32.xlu1 %v6529_v6, %s4788_s17 }
 0x37b   : > { %2396 = vrot.lane.b32.xlu0 %v6533_v40, %s4788_s17 }
 0x37e   : > { %2402 = vrot.lane.b32.xlu1 %v6537_v9, %s4788_s17 }
 0x37f   : > { %v2214_v59 = vpop.permute.xlu1 %2213  ;;  %2400 = vrot.lane.b32.xlu0 %v6541_v26, %s4788_s17 }
 0x380   : > { %2299 = vst.msk [vmem:[#allocation3 + $0x58] sm:$0xff] %vm2287_vm0, %v2214_v59  ;;  %v2212_v41 = vpop.permute.xlu0 %2211  ;;  %v2344_v59 = vld [vmem:[#allocation4 + $0x122] sm:$0xff] }
 0x381   : > { %2298 = vst.msk [vmem:[#allocation3 + $0x50] sm:$0xff] %vm2287_vm0, %v2212_v41 }
 0x382   : > { %2406 = vrot.lane.b32.xlu1 %v6547_v44, %s4788_s17 }
 0x383   : > { %2404 = vrot.lane.b32.xlu0 %v6551_v21, %s4788_s17 }
 0x386   : > { %2410 = vrot.lane.b32.xlu1 %v6555_v14, %s4788_s17 }
 0x387   : > { %v2218_v45 = vpop.permute.xlu1 %2217  ;;  %2408 = vrot.lane.b32.xlu0 %v6559_v57, %s4788_s17 }
 0x388   : > { %2301 = vst.msk [vmem:[#allocation3 + $0x68] sm:$0xff] %vm2287_vm0, %v2218_v45  ;;  %v2216_v46 = vpop.permute.xlu0 %2215 }
 0x389   : > { %2300 = vst.msk [vmem:[#allocation3 + $0x60] sm:$0xff] %vm2287_vm0, %v2216_v46  ;;  %v2347_v46 = vld [vmem:[#allocation4 + $0x142] sm:$0xff] }
 0x38a   : > { %2414 = vrot.lane.b32.xlu1 %v6565_v54, %s4788_s17 }
 0x38b   : > { %2412 = vrot.lane.b32.xlu0 %v6569_v62, %s4788_s17 }
 0x38e   : > { %2418 = vrot.lane.b32.xlu1 %v6573_v35, %s4788_s17 }
 0x38f   : > { %v2222_v15 = vpop.permute.xlu1 %2221  ;;  %2416 = vrot.lane.b32.xlu0 %v6577_v52, %s4788_s17 }
 0x390   : > { %2303 = vst.msk [vmem:[#allocation3 + $0x78] sm:$0xff] %vm2287_vm0, %v2222_v15  ;;  %v2220_v0 = vpop.permute.xlu0 %2219  ;;  %v2346_v15 = vld [vmem:[#allocation4 + $0x13a] sm:$0xff] }
 0x391   : > { %2302 = vst.msk [vmem:[#allocation3 + $0x70] sm:$0xff] %vm2287_vm0, %v2220_v0  ;;  %v2349_v0 = vld [vmem:[#allocation4 + $0x15a] sm:$0xff] }
 0x392   : > { %2422 = vrot.lane.b32.xlu1 %v6583_v60, %s4788_s17 }
 0x393   : > { %2420 = vrot.lane.b32.xlu0 %v6587_v63, %s4788_s17 }
 0x396   : > { %2426 = vrot.lane.b32.xlu1 %v2341_v42, %s4788_s17  ;;  %v2348_v42 = vld [vmem:[#allocation4 + $0x152] sm:$0xff] }
 0x397   : > { %v2226_v12 = vpop.permute.xlu1 %2225  ;;  %2424 = vrot.lane.b32.xlu0 %v2340_v5, %s4788_s17 }
 0x398   : > { %2305 = vst.msk [vmem:[#allocation3 + $0x88] sm:$0xff] %vm2287_vm0, %v2226_v12  ;;  %v2224_v25 = vpop.permute.xlu0 %2223 }
 0x399   : > { %2304 = vst.msk [vmem:[#allocation3 + $0x80] sm:$0xff] %vm2287_vm0, %v2224_v25  ;;  %v2351_v25 = vld [vmem:[#allocation4 + $0x172] sm:$0xff] }
 0x39a   : > { %2430 = vrot.lane.b32.xlu1 %v2343_v55, %s4788_s17  ;;  %v2350_v55 = vld [vmem:[#allocation4 + $0x16a] sm:$0xff] }
 0x39b   : > { %2428 = vrot.lane.b32.xlu0 %v2342_v24, %s4788_s17 }
 0x39e   : > { %2434 = vrot.lane.b32.xlu1 %v2345_v27, %s4788_s17 }
 0x39f   : > { %v2230_v41 = vpop.permute.xlu1 %2229  ;;  %2432 = vrot.lane.b32.xlu0 %v2344_v59, %s4788_s17 }
 0x3a0   : > { %2307 = vst.msk [vmem:[#allocation3 + $0x98] sm:$0xff] %vm2287_vm0, %v2230_v41  ;;  %v2228_v45 = vpop.permute.xlu0 %2227 }
 0x3a1   : > { %2306 = vst.msk [vmem:[#allocation3 + $0x90] sm:$0xff] %vm2287_vm0, %v2228_v45 }
 0x3a2   : > { %2438 = vrot.lane.b32.xlu1 %v2347_v46, %s4788_s17 }
 0x3a3   : > { %2436 = vrot.lane.b32.xlu0 %v2346_v15, %s4788_s17 }
 0x3a6   : > { %2442 = vrot.lane.b32.xlu1 %v2349_v0, %s4788_s17  ;;  %v3708_v0 = vld [vmem:[%s7414_s3 + $0x20] sm:$0xff] }
 0x3a7   : > { %v2234_v5 = vpop.permute.xlu1 %2233  ;;  %2440 = vrot.lane.b32.xlu0 %v2348_v42, %s4788_s17  ;;  %v3709_v42 = vld [vmem:[%s7414_s3 + $0x28] sm:$0xff] }
 0x3a8   : > { %2309 = vst.msk [vmem:[#allocation3 + $0xa8] sm:$0xff] %vm2287_vm0, %v2234_v5  ;;  %v2232_v12 = vpop.permute.xlu0 %2231  ;;  %v4650_v5 = vpack.c.bf16 %v3709_v42, %v3708_v0 }
 0x3a9   : > { %2308 = vst.msk [vmem:[#allocation3 + $0xa0] sm:$0xff] %vm2287_vm0, %v2232_v12  ;;  %v3711_v12 = vld [vmem:[%s7414_s3 + $0x38] sm:$0xff] }
 0x3aa   : > { %2446 = vrot.lane.b32.xlu1 %v2351_v25, %s4788_s17 }
 0x3ab   : > { %2444 = vrot.lane.b32.xlu0 %v2350_v55, %s4788_s17  ;;  %s4795_s17 = smov 48  }
 0x3ae   : > { %2579 = vrot.lane.b32.xlu1 %v6298_v31, %s4790_s19 }
 0x3af   : > { %v2238_v24 = vpop.permute.xlu1 %2237  ;;  %2577 = vrot.lane.b32.xlu0 %v6300_v32, %s4790_s19 }
 0x3b0   : > { %2311 = vst.msk [vmem:[#allocation3 + $0xb8] sm:$0xff] %vm2287_vm0, %v2238_v24  ;;  %v2236_v27 = vpop.permute.xlu0 %2235 }
 0x3b1   : > { %2310 = vst.msk [vmem:[#allocation3 + $0xb0] sm:$0xff] %vm2287_vm0, %v2236_v27 }
 0x3b2   : > { %2583 = vrot.lane.b32.xlu1 %v6318_v58, %s4790_s19 }
 0x3b3   : > { %2581 = vrot.lane.b32.xlu0 %v6320_v43, %s4790_s19 }
 0x3b6   : > { %2587 = vrot.lane.b32.xlu1 %v6338_v61, %s4790_s19 }
 0x3b7   : > { %2585 = vrot.lane.b32.xlu0 %v6340_v38, %s4790_s19 }
 0x3b8   : > { %v2242_v31 = vpop.permute.xlu1 %2241 }
 0x3b9   : > { %2313 = vst.msk [vmem:[#allocation3 + $0xc8] sm:$0xff] %vm2287_vm0, %v2242_v31  ;;  %v2240_v32 = vpop.permute.xlu0 %2239 }
 0x3ba   : > { %2312 = vst.msk [vmem:[#allocation3 + $0xc0] sm:$0xff] %vm2287_vm0, %v2240_v32  ;;  %2591 = vrot.lane.b32.xlu1 %v6358_v48, %s4790_s19 }
 0x3bb   : > { %2589 = vrot.lane.b32.xlu0 %v6360_v51, %s4790_s19 }
 0x3be   : > { %2595 = vrot.lane.b32.xlu1 %v6378_v56, %s4790_s19 }
 0x3bf   : > { %2593 = vrot.lane.b32.xlu0 %v6380_v47, %s4790_s19 }
 0x3c2   : > { %2772 = vrot.lane.b32.xlu1 %v6291_v49, %s4792_s26  ;;  %v3704_v49 = vld [vmem:[%s7414_s3] sm:$0xff] }
 0x3c3   : > { %2770 = vrot.lane.b32.xlu0 %v6296_v17, %s4792_s26  ;;  %v3705_v17 = vld [vmem:[%s7414_s3 + $0x8] sm:$0xff] }
 0x3c4   : > { %v2246_v59 = vpop.permute.xlu1 %2245  ;;  %v4642_v45 = vpack.c.bf16 %v3705_v17, %v3704_v49 }
 0x3c5   : > { %2315 = vst.msk [vmem:[#allocation3 + $0xd8] sm:$0xff] %vm2287_vm0, %v2246_v59  ;;  %v2244_v41 = vpop.permute.xlu0 %2243 }
 0x3c6   : > { %2314 = vst.msk [vmem:[#allocation3 + $0xd0] sm:$0xff] %vm2287_vm0, %v2244_v41  ;;  %2774 = vrot.lane.b32.xlu1 %v6316_v13, %s4792_s26  ;;  %4643 = vmatprep.subr.bf16.mxu0 %v4642_v45 }
 0x3c7   : > { %2963 = vrot.lane.b32.xlu0 %v6515_v23, %s4794_s15  ;;  %4658 = vmatprep.subr.bf16.mxu1 %v4642_v45  ;;  %v3707_v23 = vld [vmem:[%s7414_s3 + $0x18] sm:$0xff] }
 0x3c8   : > { %4645 = vmatpush3.bf16.msra.mxu0 %v4642_v45  ;;  %4663 = vmatpush3.bf16.msra.mxu1 %v4642_v45 }
 0x3ca   : > { %3157 = vrot.lane.b32.xlu1 %v6320_v43, %s4795_s17  ;;  %v3706_v43 = vld [vmem:[%s7414_s3 + $0x10] sm:$0xff] }
 0x3cb   : > { %2965 = vrot.lane.b32.xlu0 %v6511_v19, %s4794_s15  ;;  %v4646_v46 = vpack.c.bf16 %v3707_v23, %v3706_v43 }
 0x3cd   : > { %4647 = vmatprep.subr.bf16.mxu0 %v4646_v46  ;;  %4659 = vmatprep.subr.bf16.mxu1 %v4646_v46 }
 0x3ce   : > { %2967 = vrot.lane.b32.xlu1 %v6523_v7, %s4794_s15  ;;  %4649 = vmatpush3.bf16.msra.mxu0 %v4646_v46 }
 0x3cf   : > { %2776 = vrot.lane.b32.xlu0 %v6311_v53, %s4792_s26  ;;  %4664 = vmatpush3.bf16.msra.mxu1 %v4646_v46 }
 0x3d0   : > { %v2250_v19 = vpop.permute.xlu1 %2249  ;;  %4651 = vmatprep.subr.bf16.mxu0 %v4650_v5  ;;  %4660 = vmatprep.subr.bf16.mxu1 %v4650_v5 }
 0x3d1   : > { %2317 = vst.msk [vmem:[#allocation3 + $0xe8] sm:$0xff] %vm2287_vm0, %v2250_v19  ;;  %v2248_v15 = vpop.permute.xlu0 %2247 }
 0x3d2   : > { %2316 = vst.msk [vmem:[#allocation3 + $0xe0] sm:$0xff] %vm2287_vm0, %v2248_v15  ;;  %3350 = vrot.lane.b32.xlu1 %v6316_v13, %s4796_s13  ;;  %4653 = vmatpush3.bf16.msra.mxu0 %v4650_v5  ;;  %v3710_v13 = vld [vmem:[%s7414_s3 + $0x30] sm:$0xff] }
 0x3d3   : > { %3159 = vrot.lane.b32.xlu0 %v6318_v58, %s4795_s17  ;;  %v4654_v58 = vpack.c.bf16 %v3711_v12, %v3710_v13  ;;  %4665 = vmatpush3.bf16.msra.mxu1 %v4650_v5  ;;  %v2716_v13 = vld [vmem:[#allocation4 + $0x91] sm:$0xff]  ;;  %v3295_v12 = vld [vmem:[#allocation4 + $0x99] sm:$0xff] }
 0x3d5   : > { %4655 = vmatprep.subr.bf16.mxu0 %v4654_v58  ;;  %4661 = vmatprep.subr.bf16.mxu1 %v4654_v58 }
 0x3d6   : > { %3161 = vrot.lane.b32.xlu1 %v6340_v38, %s4795_s17  ;;  %4657 = vmatpush3.bf16.msra.mxu0 %v4654_v58  ;;  %v3712_v38 = vld [vmem:[%s7414_s3 + $0x40] sm:$0xff] }
 0x3d7   : > { %2969 = vrot.lane.b32.xlu0 %v6519_v3, %s4794_s15  ;;  %4666 = vmatpush3.bf16.msra.mxu1 %v4654_v58 }
 0x3d8   : > { %4584 = vmatprep.subr.mxu0 %v3712_v38  ;;  %4662 = vmatprep.subr.mxu1 %v3712_v38 }
 0x3da   : > { %3543 = vrot.lane.b32.xlu1 %v6523_v7, %s4797_s20  ;;  %4585 = vmatpush3.msra.mxu0 %v3712_v38 }
 0x3db   : > { %3352 = vrot.lane.b32.xlu0 %v6311_v53, %s4796_s13  ;;  %4667 = vmatpush3.msra.mxu1 %v3712_v38 }
 0x3dc   : > { %v2254_v25 = vpop.permute.xlu1 %2253 }
 0x3dd   : > { %2319 = vst.msk [vmem:[#allocation3 + $0xf8] sm:$0xff] %vm2287_vm0, %v2254_v25  ;;  %v2252_v55 = vpop.permute.xlu0 %2251 }
 0x3de   : > { %2318 = vst.msk [vmem:[#allocation3 + $0xf0] sm:$0xff] %vm2287_vm0, %v2252_v55  ;;  %3354 = vrot.lane.b32.xlu1 %v6336_v37, %s4796_s13 }
 0x3df   : > { %3163 = vrot.lane.b32.xlu0 %v6338_v61, %s4795_s17 }
 0x3e0   : > { %v2387_v53 = vpop.permute.xlu1 %2386 }
 0x3e1   : > { %2482 = vst.msk [vmem:[#allocation3 + $0x8] sm:$0xff] %vm2480_vm1, %v2387_v53  ;;  %v2385_v7 = vpop.permute.xlu0 %2384 }
 0x3e2   : > { %2481 = vst.msk [vmem:[#allocation3] sm:$0xff] %vm2480_vm1, %v2385_v7  ;;  %2778 = vrot.lane.b32.xlu1 %v6336_v37, %s4792_s26 }
 0x3e3   : > { %3545 = vrot.lane.b32.xlu0 %v6519_v3, %s4797_s20 }
 0x3e4   : > { %v2391_v24 = vpop.permute.xlu1 %2390 }
 0x3e5   : > { %2484 = vst.msk [vmem:[#allocation3 + $0x18] sm:$0xff] %vm2480_vm1, %v2391_v24  ;;  %v2389_v27 = vpop.permute.xlu0 %2388  ;;  %v3296_v24 = vld [vmem:[#allocation4 + $0xa9] sm:$0xff] }
 0x3e6   : > { %2483 = vst.msk [vmem:[#allocation3 + $0x10] sm:$0xff] %vm2480_vm1, %v2389_v27  ;;  %3547 = vrot.lane.b32.xlu1 %v6533_v40, %s4797_s20 }
 0x3e7   : > { %3356 = vrot.lane.b32.xlu0 %v6331_v36, %s4796_s13 }
 0x3e8   : > { %v2395_v61 = vpop.permute.xlu1 %2394 }
 0x3e9   : > { %2486 = vst.msk [vmem:[#allocation3 + $0x28] sm:$0xff] %vm2480_vm1, %v2395_v61  ;;  %v2393_v31 = vpop.permute.xlu0 %2392 }
 0x3ea   : > { %2485 = vst.msk [vmem:[#allocation3 + $0x20] sm:$0xff] %vm2480_vm1, %v2393_v31  ;;  %2971 = vrot.lane.b32.xlu1 %v6533_v40, %s4794_s15  ;;  %v3297_v31 = vld [vmem:[#allocation4 + $0xb1] sm:$0xff] }
 0x3eb   : > { %2780 = vrot.lane.b32.xlu0 %v6331_v36, %s4792_s26 }
 0x3ec   : > { %v2399_v37 = vpop.permute.xlu1 %2398 }
 0x3ed   : > { %2488 = vst.msk [vmem:[#allocation3 + $0x38] sm:$0xff] %vm2480_vm1, %v2399_v37  ;;  %v2397_v3 = vpop.permute.xlu0 %2396 }
 0x3ee   : > { %2487 = vst.msk [vmem:[#allocation3 + $0x30] sm:$0xff] %vm2480_vm1, %v2397_v3  ;;  %2973 = vrot.lane.b32.xlu1 %v6529_v6, %s4794_s15 }
 0x3ef   : > { %3549 = vrot.lane.b32.xlu0 %v6529_v6, %s4797_s20 }
 0x3f0   : > { %v2403_v32 = vpop.permute.xlu1 %2402 }
 0x3f1   : > { %2490 = vst.msk [vmem:[#allocation3 + $0x48] sm:$0xff] %vm2480_vm1, %v2403_v32  ;;  %v2401_v59 = vpop.permute.xlu0 %2400 }
 0x3f2   : > { %2489 = vst.msk [vmem:[#allocation3 + $0x40] sm:$0xff] %vm2480_vm1, %v2401_v59  ;;  %3167 = vrot.lane.b32.xlu1 %v6358_v48, %s4795_s17  ;;  %v4567_v48 = vpop.f32.mrb[30].mxu0 }
 0x3f3   : > { %3165 = vrot.lane.b32.xlu0 %v6360_v51, %s4795_s17  ;;  %v2028_v51 = vadd.f32 %v4567_v48, %v6283_v20  ;;  %v2022_v49 = vpop.f32.mrb[31].mxu0 }
 0x3f4   : > { %v2407_v36 = vpop.permute.xlu1 %2406  ;;  %v2023_v17 = vadd.f32 %v6283_v20, %v2022_v49  ;;  %v3299_v49 = vld [vmem:[#allocation4 + $0xc9] sm:$0xff] }
 0x3f5   : > { %2492 = vst.msk [vmem:[#allocation3 + $0x58] sm:$0xff] %vm2480_vm1, %v2407_v36  ;;  %v2405_v40 = vpop.permute.xlu0 %2404 }
 0x3f6   : > { %2491 = vst.msk [vmem:[#allocation3 + $0x50] sm:$0xff] %vm2480_vm1, %v2405_v40  ;;  %2782 = vrot.lane.b32.xlu1 %v6356_v50, %s4792_s26 }
 0x3f7   : > { %3358 = vrot.lane.b32.xlu0 %v6356_v50, %s4796_s13  ;;  %2062 = vst.msk [vmem:[#allocation4 + $0x189] sm:$0xff] %vm1618_vm13, %v2028_v51  ;;  %2061 = vst.msk [vmem:[#allocation4 + $0x181] sm:$0xff] %vm1618_vm13, %v2023_v17 }
 0x3f8   : > { %v2411_v6 = vpop.permute.xlu1 %2410 }
 0x3f9   : > { %2494 = vst.msk [vmem:[#allocation3 + $0x68] sm:$0xff] %vm2480_vm1, %v2411_v6  ;;  %v2409_v41 = vpop.permute.xlu0 %2408  ;;  %v3298_v6 = vld [vmem:[#allocation4 + $0xc1] sm:$0xff] }
 0x3fa   : > { %2493 = vst.msk [vmem:[#allocation3 + $0x60] sm:$0xff] %vm2480_vm1, %v2409_v41  ;;  %3551 = vrot.lane.b32.xlu1 %v6541_v26, %s4797_s20 }
 0x3fb   : > { %3360 = vrot.lane.b32.xlu0 %v6351_v4, %s4796_s13 }
 0x3fc   : > { %v2415_v45 = vpop.permute.xlu1 %2414 }
 0x3fd   : > { %2496 = vst.msk [vmem:[#allocation3 + $0x78] sm:$0xff] %vm2480_vm1, %v2415_v45  ;;  %v2413_v50 = vpop.permute.xlu0 %2412 }
 0x3fe   : > { %2495 = vst.msk [vmem:[#allocation3 + $0x70] sm:$0xff] %vm2480_vm1, %v2413_v50  ;;  %2975 = vrot.lane.b32.xlu1 %v6541_v26, %s4794_s15 }
 0x3ff   : > { %2784 = vrot.lane.b32.xlu0 %v6351_v4, %s4792_s26 }
 0x400   : > { %v2419_v43 = vpop.permute.xlu1 %2418 }
 0x401   : > { %2498 = vst.msk [vmem:[#allocation3 + $0x88] sm:$0xff] %vm2480_vm1, %v2419_v43  ;;  %v2417_v20 = vpop.permute.xlu0 %2416 }
 0x402   : > { %2497 = vst.msk [vmem:[#allocation3 + $0x80] sm:$0xff] %vm2480_vm1, %v2417_v20  ;;  %2977 = vrot.lane.b32.xlu1 %v6537_v9, %s4794_s15 }
 0x403   : > { %3553 = vrot.lane.b32.xlu0 %v6537_v9, %s4797_s20 }
 0x404   : > { %v2423_v23 = vpop.permute.xlu1 %2422 }
 0x405   : > { %2500 = vst.msk [vmem:[#allocation3 + $0x98] sm:$0xff] %vm2480_vm1, %v2423_v23  ;;  %v2421_v46 = vpop.permute.xlu0 %2420 }
 0x406   : > { %2499 = vst.msk [vmem:[#allocation3 + $0x90] sm:$0xff] %vm2480_vm1, %v2421_v46  ;;  %3171 = vrot.lane.b32.xlu1 %v6378_v56, %s4795_s17 }
 0x407   : > { %3169 = vrot.lane.b32.xlu0 %v6380_v47, %s4795_s17 }
 0x408   : > { %v2427_v4 = vpop.permute.xlu1 %2426 }
 0x409   : > { %2502 = vst.msk [vmem:[#allocation3 + $0xa8] sm:$0xff] %vm2480_vm1, %v2427_v4  ;;  %v2425_v26 = vpop.permute.xlu0 %2424 }
 0x40a   : > { %2501 = vst.msk [vmem:[#allocation3 + $0xa0] sm:$0xff] %vm2480_vm1, %v2425_v26  ;;  %2786 = vrot.lane.b32.xlu1 %v6376_v10, %s4792_s26 }
 0x40b   : > { %3362 = vrot.lane.b32.xlu0 %v6376_v10, %s4796_s13 }
 0x40c   : > { %v2431_v9 = vpop.permute.xlu1 %2430 }
 0x40d   : > { %2504 = vst.msk [vmem:[#allocation3 + $0xb8] sm:$0xff] %vm2480_vm1, %v2431_v9  ;;  %v2429_v19 = vpop.permute.xlu0 %2428 }
 0x40e   : > { %2503 = vst.msk [vmem:[#allocation3 + $0xb0] sm:$0xff] %vm2480_vm1, %v2429_v19  ;;  %3555 = vrot.lane.b32.xlu1 %v6551_v21, %s4797_s20 }
 0x40f   : > { %3364 = vrot.lane.b32.xlu0 %v6371_v39, %s4796_s13 }
 0x410   : > { %v2435_v56 = vpop.permute.xlu1 %2434 }
 0x411   : > { %2506 = vst.msk [vmem:[#allocation3 + $0xc8] sm:$0xff] %vm2480_vm1, %v2435_v56  ;;  %v2433_v47 = vpop.permute.xlu0 %2432 }
 0x412   : > { %2505 = vst.msk [vmem:[#allocation3 + $0xc0] sm:$0xff] %vm2480_vm1, %v2433_v47  ;;  %2979 = vrot.lane.b32.xlu1 %v6551_v21, %s4794_s15  ;;  %v3301_v47 = vld [vmem:[#allocation4 + $0xe1] sm:$0xff] }
 0x413   : > { %2788 = vrot.lane.b32.xlu0 %v6371_v39, %s4792_s26 }
 0x414   : > { %v2439_v10 = vpop.permute.xlu1 %2438 }
 0x415   : > { %2508 = vst.msk [vmem:[#allocation3 + $0xd8] sm:$0xff] %vm2480_vm1, %v2439_v10  ;;  %v2437_v15 = vpop.permute.xlu0 %2436 }
 0x416   : > { %2507 = vst.msk [vmem:[#allocation3 + $0xd0] sm:$0xff] %vm2480_vm1, %v2437_v15  ;;  %2981 = vrot.lane.b32.xlu1 %v6547_v44, %s4794_s15 }
 0x417   : > { %3557 = vrot.lane.b32.xlu0 %v6547_v44, %s4797_s20 }
 0x418   : > { %v2443_v0 = vpop.permute.xlu1 %2442 }
 0x419   : > { %2510 = vst.msk [vmem:[#allocation3 + $0xe8] sm:$0xff] %vm2480_vm1, %v2443_v0  ;;  %v2441_v42 = vpop.permute.xlu0 %2440 }
 0x41a   : > { %2509 = vst.msk [vmem:[#allocation3 + $0xe0] sm:$0xff] %vm2480_vm1, %v2441_v42  ;;  %2597 = vrot.lane.b32.xlu1 %v6402_v2, %s4790_s19 }
 0x41b   : > { %3173 = vrot.lane.b32.xlu0 %v6402_v2, %s4795_s17 }
 0x41c   : > { %v2447_v39 = vpop.permute.xlu1 %2446 }
 0x41d   : > { %2512 = vst.msk [vmem:[#allocation3 + $0xf8] sm:$0xff] %vm2480_vm1, %v2447_v39  ;;  %v2445_v21 = vpop.permute.xlu0 %2444 }
 0x41e   : > { %2511 = vst.msk [vmem:[#allocation3 + $0xf0] sm:$0xff] %vm2480_vm1, %v2445_v21  ;;  %3366 = vrot.lane.b32.xlu1 %v6393_v28, %s4796_s13 }
 0x41f   : > { %3175 = vrot.lane.b32.xlu0 %v6395_v8, %s4795_s17 }
 0x420   : > { %v2580_v44 = vpop.permute.xlu1 %2579 }
 0x421   : > { %2675 = vst.msk [vmem:[#allocation3 + $0x8] sm:$0xff] %vm2673_vm2, %v2580_v44  ;;  %v2578_v5 = vpop.permute.xlu0 %2577 }
 0x422   : > { %2674 = vst.msk [vmem:[#allocation3] sm:$0xff] %vm2673_vm2, %v2578_v5  ;;  %2790 = vrot.lane.b32.xlu1 %v2716_v13, %s4792_s26  ;;  %v3302_v5 = vld [vmem:[#allocation4 + $0xf1] sm:$0xff] }
 0x423   : > { %2599 = vrot.lane.b32.xlu0 %v6395_v8, %s4790_s19 }
 0x424   : > { %v2584_v2 = vpop.permute.xlu1 %2583 }
 0x425   : > { %2677 = vst.msk [vmem:[#allocation3 + $0x18] sm:$0xff] %vm2673_vm2, %v2584_v2  ;;  %v2582_v28 = vpop.permute.xlu0 %2581 }
 0x426   : > { %2676 = vst.msk [vmem:[#allocation3 + $0x10] sm:$0xff] %vm2673_vm2, %v2582_v28  ;;  %3559 = vrot.lane.b32.xlu1 %v6559_v57, %s4797_s20 }
 0x427   : > { %3368 = vrot.lane.b32.xlu0 %v3295_v12, %s4796_s13 }
 0x428   : > { %v2588_v58 = vpop.permute.xlu1 %2587 }
 0x429   : > { %2679 = vst.msk [vmem:[#allocation3 + $0x28] sm:$0xff] %vm2673_vm2, %v2588_v58  ;;  %v2586_v38 = vpop.permute.xlu0 %2585  ;;  %v3303_v58 = vld [vmem:[#allocation4 + $0xf9] sm:$0xff] }
 0x42a   : > { %2678 = vst.msk [vmem:[#allocation3 + $0x20] sm:$0xff] %vm2673_vm2, %v2586_v38  ;;  %2983 = vrot.lane.b32.xlu1 %v6559_v57, %s4794_s15 }
 0x42b   : > { %2792 = vrot.lane.b32.xlu0 %v3295_v12, %s4792_s26  ;;  %v3495_v12 = vld [vmem:[#allocation4 + $0xf2] sm:$0xff] }
 0x42c   : > { %v2592_v8 = vpop.permute.xlu1 %2591 }
 0x42d   : > { %2681 = vst.msk [vmem:[#allocation3 + $0x38] sm:$0xff] %vm2673_vm2, %v2592_v8  ;;  %v2590_v25 = vpop.permute.xlu0 %2589 }
 0x42e   : > { %2680 = vst.msk [vmem:[#allocation3 + $0x30] sm:$0xff] %vm2673_vm2, %v2590_v25  ;;  %2985 = vrot.lane.b32.xlu1 %v6555_v14, %s4794_s15 }
 0x42f   : > { %3561 = vrot.lane.b32.xlu0 %v6555_v14, %s4797_s20 }
 0x430   : > { %v2596_v55 = vpop.permute.xlu1 %2595 }
 0x431   : > { %2683 = vst.msk [vmem:[#allocation3 + $0x48] sm:$0xff] %vm2673_vm2, %v2596_v55  ;;  %v2594_v53 = vpop.permute.xlu0 %2593 }
 0x432   : > { %2682 = vst.msk [vmem:[#allocation3 + $0x40] sm:$0xff] %vm2673_vm2, %v2594_v53  ;;  %2601 = vrot.lane.b32.xlu1 %v6416_v18, %s4790_s19  ;;  %v2918_v53 = vld [vmem:[#allocation4 + $0xfa] sm:$0xff] }
 0x433   : > { %3177 = vrot.lane.b32.xlu0 %v6416_v18, %s4795_s17 }
 0x434   : > { %v2773_v57 = vpop.permute.xlu1 %2772 }
 0x435   : > { %2868 = vst.msk [vmem:[#allocation3 + $0x8] sm:$0xff] %vm2866_vm3, %v2773_v57  ;;  %v2771_v7 = vpop.permute.xlu0 %2770 }
 0x436   : > { %2867 = vst.msk [vmem:[#allocation3] sm:$0xff] %vm2866_vm3, %v2771_v7  ;;  %3370 = vrot.lane.b32.xlu1 %v3296_v24, %s4796_s13 }
 0x437   : > { %3179 = vrot.lane.b32.xlu0 %v6410_v16, %s4795_s17 }
 0x438   : > { %v2775_v14 = vpop.permute.xlu1 %2774 }
 0x439   : > { %2869 = vst.msk [vmem:[#allocation3 + $0x10] sm:$0xff] %vm2866_vm3, %v2775_v14  ;;  %v2964_v27 = vpop.permute.xlu0 %2963 }
 0x43a   : > { %3060 = vst.msk [vmem:[#allocation3] sm:$0xff] %vm3059_vm4, %v2964_v27  ;;  %2794 = vrot.lane.b32.xlu1 %v3296_v24, %s4792_s26 }
 0x43b   : > { %2603 = vrot.lane.b32.xlu0 %v6410_v16, %s4790_s19 }
 0x43c   : > { %v3158_v18 = vpop.permute.xlu1 %3157 }
 0x43d   : > { %3254 = vst.msk [vmem:[#allocation3] sm:$0xff] %vm3253_vm5, %v3158_v18  ;;  %v2966_v61 = vpop.permute.xlu0 %2965  ;;  %v3304_v18 = vld [vmem:[#allocation4 + $0x109] sm:$0xff] }
 0x43e   : > { %3061 = vst.msk [vmem:[#allocation3 + $0x8] sm:$0xff] %vm3059_vm4, %v2966_v61  ;;  %3563 = vrot.lane.b32.xlu1 %v6569_v62, %s4797_s20  ;;  %v3112_v61 = vld [vmem:[#allocation4 + $0x110] sm:$0xff] }
 0x43f   : > { %3372 = vrot.lane.b32.xlu0 %v3297_v31, %s4796_s13 }
 0x440   : > { %v2968_v37 = vpop.permute.xlu1 %2967 }
 0x441   : > { %3062 = vst.msk [vmem:[#allocation3 + $0x10] sm:$0xff] %vm3059_vm4, %v2968_v37  ;;  %v2777_v3 = vpop.permute.xlu0 %2776 }
 0x442   : > { %2870 = vst.msk [vmem:[#allocation3 + $0x18] sm:$0xff] %vm2866_vm3, %v2777_v3  ;;  %2987 = vrot.lane.b32.xlu1 %v6569_v62, %s4794_s15 }
 0x443   : > { %2796 = vrot.lane.b32.xlu0 %v3297_v31, %s4792_s26 }
 0x444   : > { %v3351_v16 = vpop.permute.xlu1 %3350 }
 0x445   : > { %3447 = vst.msk [vmem:[#allocation3] sm:$0xff] %vm3446_vm6, %v3351_v16  ;;  %v3160_v32 = vpop.permute.xlu0 %3159  ;;  %v3497_v16 = vld [vmem:[#allocation4 + $0x10a] sm:$0xff] }
 0x446   : > { %3255 = vst.msk [vmem:[#allocation3 + $0x8] sm:$0xff] %vm3253_vm5, %v3160_v32  ;;  %2989 = vrot.lane.b32.xlu1 %v6565_v54, %s4794_s15  ;;  %v3305_v32 = vld [vmem:[#allocation4 + $0x111] sm:$0xff] }
 0x447   : > { %3565 = vrot.lane.b32.xlu0 %v6565_v54, %s4797_s20 }
 0x448   : > { %v3162_v59 = vpop.permute.xlu1 %3161 }
 0x449   : > { %3256 = vst.msk [vmem:[#allocation3 + $0x10] sm:$0xff] %vm3253_vm5, %v3162_v59  ;;  %v2970_v36 = vpop.permute.xlu0 %2969 }
 0x44a   : > { %3063 = vst.msk [vmem:[#allocation3 + $0x18] sm:$0xff] %vm3059_vm4, %v2970_v36  ;;  %2605 = vrot.lane.b32.xlu1 %v6432_v30, %s4790_s19 }
 0x44b   : > { %3181 = vrot.lane.b32.xlu0 %v6432_v30, %s4795_s17 }
 0x44c   : > { %v3544_v62 = vpop.permute.xlu1 %3543 }
 0x44d   : > { %3640 = vst.msk [vmem:[#allocation3] sm:$0xff] %vm3639_vm7, %v3544_v62  ;;  %v3353_v40 = vpop.permute.xlu0 %3352 }
 0x44e   : > { %3448 = vst.msk [vmem:[#allocation3 + $0x8] sm:$0xff] %vm3446_vm6, %v3353_v40  ;;  %3374 = vrot.lane.b32.xlu1 %v3298_v6, %s4796_s13 }
 0x44f   : > { %3183 = vrot.lane.b32.xlu0 %v6425_v29, %s4795_s17 }
 0x450   : > { %v3355_v54 = vpop.permute.xlu1 %3354 }
 0x451   : > { %3449 = vst.msk [vmem:[#allocation3 + $0x10] sm:$0xff] %vm3446_vm6, %v3355_v54  ;;  %v3164_v41 = vpop.permute.xlu0 %3163  ;;  %v2920_v54 = vld [vmem:[#allocation4 + $0x112] sm:$0xff] }
 0x452   : > { %3257 = vst.msk [vmem:[#allocation3 + $0x18] sm:$0xff] %vm3253_vm5, %v3164_v41  ;;  %2798 = vrot.lane.b32.xlu1 %v3298_v6, %s4792_s26 }
 0x453   : > { %2607 = vrot.lane.b32.xlu0 %v6425_v29, %s4790_s19 }
 0x454   : > { %v2779_v30 = vpop.permute.xlu1 %2778  ;;  %v3672_v48 = vld [vmem:[#allocation3] sm:$0xff] }
 0x455   : > { %2871 = vst.msk [vmem:[#allocation3 + $0x20] sm:$0xff] %vm2866_vm3, %v2779_v30  ;;  %4586 = vmatprep.mubr.msk.f32.mxu0 %vm3720_vm8, %v3672_v48  ;;  %v3546_v51 = vpop.permute.xlu0 %3545  ;;  %v2535_v48 = vld [vmem:[#allocation4 + $0x120] sm:$0xff] }
 0x456   : > { %3641 = vst.msk [vmem:[#allocation3 + $0x8] sm:$0xff] %vm3639_vm7, %v3546_v51  ;;  %3567 = vrot.lane.b32.xlu1 %v6577_v52, %s4797_s20 }
 0x457   : > { %3376 = vrot.lane.b32.xlu0 %v3299_v49, %s4796_s13 }
 0x458   : > { %v3548_v17 = vpop.permute.xlu1 %3547 }
 0x459   : > { %3642 = vst.msk [vmem:[#allocation3 + $0x10] sm:$0xff] %vm3639_vm7, %v3548_v17  ;;  %v3357_v45 = vpop.permute.xlu0 %3356 }
 0x45a   : > { %3450 = vst.msk [vmem:[#allocation3 + $0x18] sm:$0xff] %vm3446_vm6, %v3357_v45  ;;  %2991 = vrot.lane.b32.xlu1 %v6577_v52, %s4794_s15  ;;  %v3306_v45 = vld [vmem:[#allocation4 + $0x121] sm:$0xff] }
 0x45b   : > { %2800 = vrot.lane.b32.xlu0 %v3299_v49, %s4792_s26 }
 0x45c   : > { %v2972_v29 = vpop.permute.xlu1 %2971 }
 0x45d   : > { %3064 = vst.msk [vmem:[#allocation3 + $0x20] sm:$0xff] %vm3059_vm4, %v2972_v29  ;;  %v2781_v50 = vpop.permute.xlu0 %2780  ;;  %v3673_v43 = vld [vmem:[#allocation3 + $0x8] sm:$0xff] }
 0x45e   : > { %2872 = vst.msk [vmem:[#allocation3 + $0x28] sm:$0xff] %vm2866_vm3, %v2781_v50  ;;  %2993 = vrot.lane.b32.xlu1 %v6573_v35, %s4794_s15  ;;  %4587 = vmatmul.mubr.msk.f32.vlgmr.msra.gmra.mrb[32].mxu0 %vm3720_vm8, %v3673_v43  ;;  %v3114_v29 = vld [vmem:[#allocation4 + $0x128] sm:$0xff] }
 0x45f   : > { %3569 = vrot.lane.b32.xlu0 %v6573_v35, %s4797_s20  ;;  %v3300_v35 = vld [vmem:[#allocation4 + $0xd9] sm:$0xff] }
 0x460   : > { %v2974_v20 = vpop.permute.xlu1 %2973  ;;  %v3674_v23 = vld [vmem:[#allocation3 + $0x10] sm:$0xff] }
 0x461   : > { %3065 = vst.msk [vmem:[#allocation3 + $0x28] sm:$0xff] %vm3059_vm4, %v2974_v20  ;;  %v3550_v52 = vpop.permute.xlu0 %3549  ;;  %4589 = vmatprep.mubr.msk.f32.mxu1 %vm3720_vm8, %v3674_v23 }
 0x462   : > { %3643 = vst.msk [vmem:[#allocation3 + $0x18] sm:$0xff] %vm3639_vm7, %v3550_v52  ;;  %2609 = vrot.lane.b32.xlu1 %v6446_v34, %s4790_s19  ;;  %v3499_v52 = vld [vmem:[#allocation4 + $0x122] sm:$0xff] }
 0x463   : > { %3185 = vrot.lane.b32.xlu0 %v6446_v34, %s4795_s17 }
 0x464   : > { %v3168_v46 = vpop.permute.xlu1 %3167 }
 0x465   : > { %3259 = vst.msk [vmem:[#allocation3 + $0x28] sm:$0xff] %vm3253_vm5, %v3168_v46  ;;  %v3166_v4 = vpop.permute.xlu0 %3165  ;;  %v3307_v46 = vld [vmem:[#allocation4 + $0x129] sm:$0xff] }
 0x466   : > { %3258 = vst.msk [vmem:[#allocation3 + $0x20] sm:$0xff] %vm3253_vm5, %v3166_v4  ;;  %3378 = vrot.lane.b32.xlu1 %v3300_v35, %s4796_s13 }
 0x467   : > { %3187 = vrot.lane.b32.xlu0 %v6440_v1, %s4795_s17 }
 0x468   : > { %v2783_v26 = vpop.permute.xlu1 %2782 }
 0x469   : > { %2873 = vst.msk [vmem:[#allocation3 + $0x30] sm:$0xff] %vm2866_vm3, %v2783_v26  ;;  %v3359_v9 = vpop.permute.xlu0 %3358  ;;  %v3675_v19 = vld [vmem:[#allocation3 + $0x18] sm:$0xff] }
 0x46a   : > { %3451 = vst.msk [vmem:[#allocation3 + $0x20] sm:$0xff] %vm3446_vm6, %v3359_v9  ;;  %2802 = vrot.lane.b32.xlu1 %v3300_v35, %s4792_s26  ;;  %4590 = vmatmul.mubr.msk.f32.vlgmr.msra.gmra.mrb[0].mxu1 %vm3720_vm8, %v3675_v19 }
 0x46b   : > { %2611 = vrot.lane.b32.xlu0 %v6440_v1, %s4790_s19 }
 0x46c   : > { %v3552_v34 = vpop.permute.xlu1 %3551 }
 0x46d   : > { %3644 = vst.msk [vmem:[#allocation3 + $0x20] sm:$0xff] %vm3639_vm7, %v3552_v34  ;;  %v3361_v56 = vpop.permute.xlu0 %3360  ;;  %v2922_v34 = vld [vmem:[#allocation4 + $0x12a] sm:$0xff] }
 0x46e   : > { %3452 = vst.msk [vmem:[#allocation3 + $0x28] sm:$0xff] %vm3446_vm6, %v3361_v56  ;;  %3571 = vrot.lane.b32.xlu1 %v6587_v63, %s4797_s20 }
 0x46f   : > { %3380 = vrot.lane.b32.xlu0 %v3301_v47, %s4796_s13 }
 0x470   : > { %v2976_v10 = vpop.permute.xlu1 %2975 }
 0x471   : > { %3066 = vst.msk [vmem:[#allocation3 + $0x30] sm:$0xff] %vm3059_vm4, %v2976_v10  ;;  %v2785_v15 = vpop.permute.xlu0 %2784  ;;  %v2537_v10 = vld [vmem:[#allocation4 + $0x138] sm:$0xff] }
 0x472   : > { %2874 = vst.msk [vmem:[#allocation3 + $0x38] sm:$0xff] %vm2866_vm3, %v2785_v15  ;;  %2995 = vrot.lane.b32.xlu1 %v6587_v63, %s4794_s15 }
 0x473   : > { %2804 = vrot.lane.b32.xlu0 %v3301_v47, %s4792_s26 }
 0x474   : > { %v2978_v1 = vpop.permute.xlu1 %2977  ;;  %v3676_v0 = vld [vmem:[#allocation3 + $0x20] sm:$0xff] }
 0x475   : > { %3067 = vst.msk [vmem:[#allocation3 + $0x38] sm:$0xff] %vm3059_vm4, %v2978_v1  ;;  %v3554_v42 = vpop.permute.xlu0 %3553  ;;  %4592 = vmatprep.mubr.msk.f32.mxu1 %vm3720_vm8, %v3676_v0 }
 0x476   : > { %3645 = vst.msk [vmem:[#allocation3 + $0x28] sm:$0xff] %vm3639_vm7, %v3554_v42  ;;  %2997 = vrot.lane.b32.xlu1 %v6583_v60, %s4794_s15  ;;  %v3308_v42 = vld [vmem:[#allocation4 + $0x139] sm:$0xff] }
 0x477   : > { %3573 = vrot.lane.b32.xlu0 %v6583_v60, %s4797_s20 }
 0x478   : > { %v3172_v39 = vpop.permute.xlu1 %3171 }
 0x479   : > { %3261 = vst.msk [vmem:[#allocation3 + $0x38] sm:$0xff] %vm3253_vm5, %v3172_v39  ;;  %v3170_v63 = vpop.permute.xlu0 %3169  ;;  %v3116_v39 = vld [vmem:[#allocation4 + $0x140] sm:$0xff] }
 0x47a   : > { %3260 = vst.msk [vmem:[#allocation3 + $0x30] sm:$0xff] %vm3253_vm5, %v3170_v63  ;;  %2613 = vrot.lane.b32.xlu1 %v6460_v22, %s4790_s19 }
 0x47b   : > { %3189 = vrot.lane.b32.xlu0 %v6460_v22, %s4795_s17 }
 0x47c   : > { %v2787_v21 = vpop.permute.xlu1 %2786 }
 0x47d   : > { %2875 = vst.msk [vmem:[#allocation3 + $0x40] sm:$0xff] %vm2866_vm3, %v2787_v21  ;;  %v3363_v44 = vpop.permute.xlu0 %3362  ;;  %v3677_v13 = vld [vmem:[#allocation3 + $0x28] sm:$0xff] }
 0x47e   : > { %3453 = vst.msk [vmem:[#allocation3 + $0x30] sm:$0xff] %vm3446_vm6, %v3363_v44  ;;  %3382 = vrot.lane.b32.xlu1 %v3302_v5, %s4796_s13  ;;  %4593 = vmatmul.mubr.msk.f32.gmra.mrb[2].mxu1 %vm3720_vm8, %v3677_v13  ;;  %v3501_v13 = vld [vmem:[#allocation4 + $0x13a] sm:$0xff] }
 0x47f   : > { %3191 = vrot.lane.b32.xlu0 %v6454_v33, %s4795_s17 }
 0x480   : > { %v3556_v60 = vpop.permute.xlu1 %3555 }
 0x481   : > { %3646 = vst.msk [vmem:[#allocation3 + $0x30] sm:$0xff] %vm3639_vm7, %v3556_v60  ;;  %v3365_v2 = vpop.permute.xlu0 %3364  ;;  %v3309_v60 = vld [vmem:[#allocation4 + $0x141] sm:$0xff] }
 0x482   : > { %3454 = vst.msk [vmem:[#allocation3 + $0x38] sm:$0xff] %vm3446_vm6, %v3365_v2  ;;  %2806 = vrot.lane.b32.xlu1 %v3302_v5, %s4792_s26 }
 0x483   : > { %2615 = vrot.lane.b32.xlu0 %v6454_v33, %s4790_s19 }
 0x484   : > { %v2980_v22 = vpop.permute.xlu1 %2979 }
 0x485   : > { %3068 = vst.msk [vmem:[#allocation3 + $0x40] sm:$0xff] %vm3059_vm4, %v2980_v22  ;;  %v2789_v28 = vpop.permute.xlu0 %2788 }
 0x486   : > { %2876 = vst.msk [vmem:[#allocation3 + $0x48] sm:$0xff] %vm2866_vm3, %v2789_v28  ;;  %3575 = vrot.lane.b32.xlu1 %v3495_v12, %s4797_s20 }
 0x487   : > { %3384 = vrot.lane.b32.xlu0 %v3303_v58, %s4796_s13 }
 0x488   : > { %v2982_v38 = vpop.permute.xlu1 %2981  ;;  %v3678_v8 = vld [vmem:[#allocation3 + $0x30] sm:$0xff] }
 0x489   : > { %3069 = vst.msk [vmem:[#allocation3 + $0x48] sm:$0xff] %vm3059_vm4, %v2982_v38  ;;  %v3558_v25 = vpop.permute.xlu0 %3557  ;;  %4595 = vmatprep.mubr.msk.f32.mxu1 %vm3720_vm8, %v3678_v8  ;;  %v2924_v38 = vld [vmem:[#allocation4 + $0x142] sm:$0xff] }
 0x48a   : > { %3647 = vst.msk [vmem:[#allocation3 + $0x38] sm:$0xff] %vm3639_vm7, %v3558_v25  ;;  %2999 = vrot.lane.b32.xlu1 %v3495_v12, %s4794_s15 }
 0x48b   : > { %2808 = vrot.lane.b32.xlu0 %v3303_v58, %s4792_s26 }
 0x48c   : > { %v2598_v33 = vpop.permute.xlu1 %2597 }
 0x48d   : > { %2684 = vst.msk [vmem:[#allocation3 + $0x50] sm:$0xff] %vm2673_vm2, %v2598_v33  ;;  %v3174_v55 = vpop.permute.xlu0 %3173  ;;  %v2539_v33 = vld [vmem:[#allocation4 + $0x150] sm:$0xff] }
 0x48e   : > { %3262 = vst.msk [vmem:[#allocation3 + $0x40] sm:$0xff] %vm3253_vm5, %v3174_v55  ;;  %3001 = vrot.lane.b32.xlu1 %v2918_v53, %s4794_s15 }
 0x48f   : > { %3577 = vrot.lane.b32.xlu0 %v2918_v53, %s4797_s20 }
 0x490   : > { %v3367_v57 = vpop.permute.xlu1 %3366 }
 0x491   : > { %3455 = vst.msk [vmem:[#allocation3 + $0x40] sm:$0xff] %vm3446_vm6, %v3367_v57  ;;  %v3176_v7 = vpop.permute.xlu0 %3175  ;;  %v3679_v24 = vld [vmem:[#allocation3 + $0x38] sm:$0xff] }
 0x492   : > { %3263 = vst.msk [vmem:[#allocation3 + $0x48] sm:$0xff] %vm3253_vm5, %v3176_v7  ;;  %2617 = vrot.lane.b32.xlu1 %v6470_v11, %s4790_s19  ;;  %4596 = vmatmul.mubr.msk.f32.gmra.mrb[4].mxu1 %vm3720_vm8, %v3679_v24  ;;  %v3310_v7 = vld [vmem:[#allocation4 + $0x151] sm:$0xff] }
 0x493   : > { %3193 = vrot.lane.b32.xlu0 %v6470_v11, %s4795_s17  ;;  %v3118_v24 = vld [vmem:[#allocation4 + $0x158] sm:$0xff] }
 0x494   : > { %v2791_v14 = vpop.permute.xlu1 %2790 }
 0x495   : > { %2877 = vst.msk [vmem:[#allocation3 + $0x50] sm:$0xff] %vm2866_vm3, %v2791_v14  ;;  %v2600_v27 = vpop.permute.xlu0 %2599 }
 0x496   : > { %2685 = vst.msk [vmem:[#allocation3 + $0x58] sm:$0xff] %vm2673_vm2, %v2600_v27  ;;  %3386 = vrot.lane.b32.xlu1 %v3304_v18, %s4796_s13 }
 0x497   : > { %3195 = vrot.lane.b32.xlu0 %v3112_v61, %s4795_s17 }
 0x498   : > { %v3560_v31 = vpop.permute.xlu1 %3559 }
 0x499   : > { %3648 = vst.msk [vmem:[#allocation3 + $0x40] sm:$0xff] %vm3639_vm7, %v3560_v31  ;;  %v3369_v37 = vpop.permute.xlu0 %3368  ;;  %v3503_v31 = vld [vmem:[#allocation4 + $0x152] sm:$0xff] }
 0x49a   : > { %3456 = vst.msk [vmem:[#allocation3 + $0x48] sm:$0xff] %vm3446_vm6, %v3369_v37  ;;  %2810 = vrot.lane.b32.xlu1 %v3304_v18, %s4792_s26  ;;  %v3311_v37 = vld [vmem:[#allocation4 + $0x159] sm:$0xff] }
 0x49b   : > { %2619 = vrot.lane.b32.xlu0 %v3112_v61, %s4790_s19 }
 0x49c   : > { %v2984_v11 = vpop.permute.xlu1 %2983 }
 0x49d   : > { %3070 = vst.msk [vmem:[#allocation3 + $0x50] sm:$0xff] %vm3059_vm4, %v2984_v11  ;;  %v2793_v3 = vpop.permute.xlu0 %2792 }
 0x49e   : > { %2878 = vst.msk [vmem:[#allocation3 + $0x58] sm:$0xff] %vm2866_vm3, %v2793_v3  ;;  %3579 = vrot.lane.b32.xlu1 %v3497_v16, %s4797_s20 }
 0x49f   : > { %3388 = vrot.lane.b32.xlu0 %v3305_v32, %s4796_s13 }
 0x4a0   : > { %v2986_v59 = vpop.permute.xlu1 %2985  ;;  %v3680_v36 = vld [vmem:[#allocation3 + $0x40] sm:$0xff] }
 0x4a1   : > { %3071 = vst.msk [vmem:[#allocation3 + $0x58] sm:$0xff] %vm3059_vm4, %v2986_v59  ;;  %v3562_v62 = vpop.permute.xlu0 %3561  ;;  %4598 = vmatprep.mubr.msk.f32.mxu1 %vm3720_vm8, %v3680_v36  ;;  %v2926_v36 = vld [vmem:[#allocation4 + $0x15a] sm:$0xff] }
 0x4a2   : > { %3649 = vst.msk [vmem:[#allocation3 + $0x48] sm:$0xff] %vm3639_vm7, %v3562_v62  ;;  %3003 = vrot.lane.b32.xlu1 %v3497_v16, %s4794_s15 }
 0x4a3   : > { %2812 = vrot.lane.b32.xlu0 %v3305_v32, %s4792_s26 }
 0x4a4   : > { %v2602_v40 = vpop.permute.xlu1 %2601 }
 0x4a5   : > { %2686 = vst.msk [vmem:[#allocation3 + $0x60] sm:$0xff] %vm2673_vm2, %v2602_v40  ;;  %v3178_v6 = vpop.permute.xlu0 %3177 }
 0x4a6   : > { %3264 = vst.msk [vmem:[#allocation3 + $0x50] sm:$0xff] %vm3253_vm5, %v3178_v6  ;;  %3005 = vrot.lane.b32.xlu1 %v2920_v54, %s4794_s15  ;;  %v2541_v6 = vld [vmem:[#allocation4 + $0x168] sm:$0xff] }
 0x4a7   : > { %3581 = vrot.lane.b32.xlu0 %v2920_v54, %s4797_s20 }
 0x4a8   : > { %v3371_v41 = vpop.permute.xlu1 %3370 }
 0x4a9   : > { %3457 = vst.msk [vmem:[#allocation3 + $0x50] sm:$0xff] %vm3446_vm6, %v3371_v41  ;;  %v3180_v30 = vpop.permute.xlu0 %3179  ;;  %v3681_v51 = vld [vmem:[#allocation3 + $0x48] sm:$0xff] }
 0x4aa   : > { %3265 = vst.msk [vmem:[#allocation3 + $0x58] sm:$0xff] %vm3253_vm5, %v3180_v30  ;;  %2621 = vrot.lane.b32.xlu1 %v2535_v48, %s4790_s19  ;;  %4599 = vmatmul.mubr.msk.f32.gmra.mrb[6].mxu1 %vm3720_vm8, %v3681_v51  ;;  %v3120_v51 = vld [vmem:[#allocation4 + $0x170] sm:$0xff] }
 0x4ab   : > { %3197 = vrot.lane.b32.xlu0 %v2535_v48, %s4795_s17  ;;  %v3312_v48 = vld [vmem:[#allocation4 + $0x169] sm:$0xff] }
 0x4ac   : > { %v2795_v49 = vpop.permute.xlu1 %2794 }
 0x4ad   : > { %2879 = vst.msk [vmem:[#allocation3 + $0x60] sm:$0xff] %vm2866_vm3, %v2795_v49  ;;  %v2604_v17 = vpop.permute.xlu0 %2603 }
 0x4ae   : > { %2687 = vst.msk [vmem:[#allocation3 + $0x68] sm:$0xff] %vm2673_vm2, %v2604_v17  ;;  %3390 = vrot.lane.b32.xlu1 %v3306_v45, %s4796_s13 }
 0x4af   : > { %3199 = vrot.lane.b32.xlu0 %v3114_v29, %s4795_s17 }
 0x4b0   : > { %v3564_v50 = vpop.permute.xlu1 %3563 }
 0x4b1   : > { %3650 = vst.msk [vmem:[#allocation3 + $0x50] sm:$0xff] %vm3639_vm7, %v3564_v50  ;;  %v3373_v43 = vpop.permute.xlu0 %3372  ;;  %v3505_v50 = vld [vmem:[#allocation4 + $0x16a] sm:$0xff] }
 0x4b2   : > { %3458 = vst.msk [vmem:[#allocation3 + $0x58] sm:$0xff] %vm3446_vm6, %v3373_v43  ;;  %2814 = vrot.lane.b32.xlu1 %v3306_v45, %s4792_s26  ;;  %v3313_v43 = vld [vmem:[#allocation4 + $0x171] sm:$0xff] }
 0x4b3   : > { %2623 = vrot.lane.b32.xlu0 %v3114_v29, %s4790_s19 }
 0x4b4   : > { %v2988_v20 = vpop.permute.xlu1 %2987 }
 0x4b5   : > { %3072 = vst.msk [vmem:[#allocation3 + $0x60] sm:$0xff] %vm3059_vm4, %v2988_v20  ;;  %v2797_v23 = vpop.permute.xlu0 %2796 }
 0x4b6   : > { %2880 = vst.msk [vmem:[#allocation3 + $0x68] sm:$0xff] %vm2866_vm3, %v2797_v23  ;;  %3583 = vrot.lane.b32.xlu1 %v3499_v52, %s4797_s20 }
 0x4b7   : > { %3392 = vrot.lane.b32.xlu0 %v3307_v46, %s4796_s13 }
 0x4b8   : > { %v2990_v4 = vpop.permute.xlu1 %2989  ;;  %v3682_v35 = vld [vmem:[#allocation3 + $0x50] sm:$0xff] }
 0x4b9   : > { %3073 = vst.msk [vmem:[#allocation3 + $0x68] sm:$0xff] %vm3059_vm4, %v2990_v4  ;;  %v3566_v26 = vpop.permute.xlu0 %3565  ;;  %4601 = vmatprep.mubr.msk.f32.mxu1 %vm3720_vm8, %v3682_v35  ;;  %v2928_v35 = vld [vmem:[#allocation4 + $0x172] sm:$0xff] }
 0x4ba   : > { %3651 = vst.msk [vmem:[#allocation3 + $0x58] sm:$0xff] %vm3639_vm7, %v3566_v26  ;;  %3007 = vrot.lane.b32.xlu1 %v3499_v52, %s4794_s15 }
 0x4bb   : > { %2816 = vrot.lane.b32.xlu0 %v3307_v46, %s4792_s26 }
 0x4bc   : > { %v2606_v9 = vpop.permute.xlu1 %2605 }
 0x4bd   : > { %2688 = vst.msk [vmem:[#allocation3 + $0x70] sm:$0xff] %vm2673_vm2, %v2606_v9  ;;  %v3182_v19 = vpop.permute.xlu0 %3181 }
 0x4be   : > { %3266 = vst.msk [vmem:[#allocation3 + $0x60] sm:$0xff] %vm3253_vm5, %v3182_v19  ;;  %3009 = vrot.lane.b32.xlu1 %v2922_v34, %s4794_s15  ;;  %v2543_v19 = vld [vmem:[#allocation4 + $0x180] sm:$0xff] }
 0x4bf   : > { %3585 = vrot.lane.b32.xlu0 %v2922_v34, %s4797_s20 }
 0x4c0   : > { %v3375_v56 = vpop.permute.xlu1 %3374 }
 0x4c1   : > { %3459 = vst.msk [vmem:[#allocation3 + $0x60] sm:$0xff] %vm3446_vm6, %v3375_v56  ;;  %v3184_v47 = vpop.permute.xlu0 %3183  ;;  %v3683_v15 = vld [vmem:[#allocation3 + $0x58] sm:$0xff] }
 0x4c2   : > { %3267 = vst.msk [vmem:[#allocation3 + $0x68] sm:$0xff] %vm3253_vm5, %v3184_v47  ;;  %2625 = vrot.lane.b32.xlu1 %v2537_v10, %s4790_s19  ;;  %4602 = vmatmul.mubr.msk.f32.gmra.mrb[8].mxu1 %vm3720_vm8, %v3683_v15  ;;  %v3122_v15 = vld [vmem:[#allocation4 + $0x188] sm:$0xff] }
 0x4c3   : > { %3201 = vrot.lane.b32.xlu0 %v2537_v10, %s4795_s17  ;;  %v3314_v10 = vld [vmem:[#allocation4 + $0x181] sm:$0xff] }
 0x4c4   : > { %v2799_v1 = vpop.permute.xlu1 %2798 }
 0x4c5   : > { %2881 = vst.msk [vmem:[#allocation3 + $0x70] sm:$0xff] %vm2866_vm3, %v2799_v1  ;;  %v2608_v0 = vpop.permute.xlu0 %2607 }
 0x4c6   : > { %2689 = vst.msk [vmem:[#allocation3 + $0x78] sm:$0xff] %vm2673_vm2, %v2608_v0  ;;  %3394 = vrot.lane.b32.xlu1 %v3308_v42, %s4796_s13 }
 0x4c7   : > { %3203 = vrot.lane.b32.xlu0 %v3116_v39, %s4795_s17 }
 0x4c8   : > { %v3568_v63 = vpop.permute.xlu1 %3567 }
 0x4c9   : > { %3652 = vst.msk [vmem:[#allocation3 + $0x60] sm:$0xff] %vm3639_vm7, %v3568_v63  ;;  %v3377_v21 = vpop.permute.xlu0 %3376  ;;  %v3507_v63 = vld [vmem:[#allocation4 + $0x182] sm:$0xff] }
 0x4ca   : > { %3460 = vst.msk [vmem:[#allocation3 + $0x68] sm:$0xff] %vm3446_vm6, %v3377_v21  ;;  %2818 = vrot.lane.b32.xlu1 %v3308_v42, %s4792_s26  ;;  %v3315_v21 = vld [vmem:[#allocation4 + $0x189] sm:$0xff] }
 0x4cb   : > { %2627 = vrot.lane.b32.xlu0 %v3116_v39, %s4790_s19 }
 0x4cc   : > { %v2992_v44 = vpop.permute.xlu1 %2991 }
 0x4cd   : > { %3074 = vst.msk [vmem:[#allocation3 + $0x70] sm:$0xff] %vm3059_vm4, %v2992_v44  ;;  %v2801_v5 = vpop.permute.xlu0 %2800 }
 0x4ce   : > { %2882 = vst.msk [vmem:[#allocation3 + $0x78] sm:$0xff] %vm2866_vm3, %v2801_v5  ;;  %3587 = vrot.lane.b32.xlu1 %v3501_v13, %s4797_s20 }
 0x4cf   : > { %3396 = vrot.lane.b32.xlu0 %v3309_v60, %s4796_s13 }
 0x4d0   : > { %v2994_v2 = vpop.permute.xlu1 %2993  ;;  %v3684_v22 = vld [vmem:[#allocation3 + $0x60] sm:$0xff] }
 0x4d1   : > { %3075 = vst.msk [vmem:[#allocation3 + $0x78] sm:$0xff] %vm3059_vm4, %v2994_v2  ;;  %v3570_v28 = vpop.permute.xlu0 %3569  ;;  %4604 = vmatprep.mubr.msk.f32.mxu1 %vm3720_vm8, %v3684_v22  ;;  %v2930_v22 = vld [vmem:[#allocation4 + $0x18a] sm:$0xff] }
 0x4d2   : > { %3653 = vst.msk [vmem:[#allocation3 + $0x68] sm:$0xff] %vm3639_vm7, %v3570_v28  ;;  %3011 = vrot.lane.b32.xlu1 %v3501_v13, %s4794_s15  ;;  %v3124_v28 = vld [vmem:[#allocation4 + $0x1a0] sm:$0xff] }
 0x4d3   : > { %2820 = vrot.lane.b32.xlu0 %v3309_v60, %s4792_s26 }
 0x4d4   : > { %v2610_v12 = vpop.permute.xlu1 %2609 }
 0x4d5   : > { %2690 = vst.msk [vmem:[#allocation3 + $0x80] sm:$0xff] %vm2673_vm2, %v2610_v12  ;;  %v3186_v58 = vpop.permute.xlu0 %3185 }
 0x4d6   : > { %3268 = vst.msk [vmem:[#allocation3 + $0x70] sm:$0xff] %vm3253_vm5, %v3186_v58  ;;  %3013 = vrot.lane.b32.xlu1 %v2924_v38, %s4794_s15  ;;  %v3123_v58 = vld [vmem:[#allocation4 + $0x198] sm:$0xff] }
 0x4d7   : > { %3589 = vrot.lane.b32.xlu0 %v2924_v38, %s4797_s20 }
 0x4d8   : > { %v3379_v8 = vpop.permute.xlu1 %3378 }
 0x4d9   : > { %3461 = vst.msk [vmem:[#allocation3 + $0x70] sm:$0xff] %vm3446_vm6, %v3379_v8  ;;  %v3188_v25 = vpop.permute.xlu0 %3187  ;;  %v3685_v55 = vld [vmem:[#allocation3 + $0x68] sm:$0xff] }
 0x4da   : > { %3269 = vst.msk [vmem:[#allocation3 + $0x78] sm:$0xff] %vm3253_vm5, %v3188_v25  ;;  %2629 = vrot.lane.b32.xlu1 %v2539_v33, %s4790_s19  ;;  %4605 = vmatmul.mubr.msk.f32.gmra.mrb[10].mxu1 %vm3720_vm8, %v3685_v55  ;;  %v3317_v25 = vld [vmem:[#allocation4 + $0x1a1] sm:$0xff]  ;;  %v3316_v55 = vld [vmem:[#allocation4 + $0x199] sm:$0xff] }
 0x4db   : > { %3205 = vrot.lane.b32.xlu0 %v2539_v33, %s4795_s17 }
 0x4dc   : > { %v2803_v53 = vpop.permute.xlu1 %2802 }
 0x4dd   : > { %2883 = vst.msk [vmem:[#allocation3 + $0x80] sm:$0xff] %vm2866_vm3, %v2803_v53  ;;  %v2612_v57 = vpop.permute.xlu0 %2611 }
 0x4de   : > { %2691 = vst.msk [vmem:[#allocation3 + $0x88] sm:$0xff] %vm2673_vm2, %v2612_v57  ;;  %3398 = vrot.lane.b32.xlu1 %v3310_v7, %s4796_s13  ;;  %v3510_v57 = vld [vmem:[#allocation4 + $0x1a2] sm:$0xff] }
 0x4df   : > { %3207 = vrot.lane.b32.xlu0 %v3118_v24, %s4795_s17 }
 0x4e0   : > { %v3572_v14 = vpop.permute.xlu1 %3571 }
 0x4e1   : > { %3654 = vst.msk [vmem:[#allocation3 + $0x70] sm:$0xff] %vm3639_vm7, %v3572_v14  ;;  %v3381_v27 = vpop.permute.xlu0 %3380 }
 0x4e2   : > { %3462 = vst.msk [vmem:[#allocation3 + $0x78] sm:$0xff] %vm3446_vm6, %v3381_v27  ;;  %2822 = vrot.lane.b32.xlu1 %v3310_v7, %s4792_s26 }
 0x4e3   : > { %2631 = vrot.lane.b32.xlu0 %v3118_v24, %s4790_s19  ;;  %v3509_v24 = vld [vmem:[#allocation4 + $0x19a] sm:$0xff] }
 0x4e4   : > { %v2996_v18 = vpop.permute.xlu1 %2995 }
 0x4e5   : > { %3076 = vst.msk [vmem:[#allocation3 + $0x80] sm:$0xff] %vm3059_vm4, %v2996_v18  ;;  %v2805_v61 = vpop.permute.xlu0 %2804 }
 0x4e6   : > { %2884 = vst.msk [vmem:[#allocation3 + $0x88] sm:$0xff] %vm2866_vm3, %v2805_v61  ;;  %3591 = vrot.lane.b32.xlu1 %v3503_v31, %s4797_s20  ;;  %v7127_v61 = vld [vmem:[%s7415_s4] ss:$0 sm:$0xff] }
 0x4e7   : > { %3400 = vrot.lane.b32.xlu0 %v3311_v37, %s4796_s13 }
 0x4e8   : > { %v2998_v11 = vpop.permute.xlu1 %2997  ;;  %v3686_v3 = vld [vmem:[#allocation3 + $0x70] sm:$0xff] }
 0x4e9   : > { %3077 = vst.msk [vmem:[#allocation3 + $0x88] sm:$0xff] %vm3059_vm4, %v2998_v11  ;;  %v3574_v16 = vpop.permute.xlu0 %3573  ;;  %4607 = vmatprep.mubr.msk.f32.mxu1 %vm3720_vm8, %v3686_v3 }
 0x4ea   : > { %3655 = vst.msk [vmem:[#allocation3 + $0x78] sm:$0xff] %vm3639_vm7, %v3574_v16  ;;  %3015 = vrot.lane.b32.xlu1 %v3503_v31, %s4794_s15 }
 0x4eb   : > { %2824 = vrot.lane.b32.xlu0 %v3311_v37, %s4792_s26 }
 0x4ec   : > { %v2614_v32 = vpop.permute.xlu1 %2613 }
 0x4ed   : > { %2692 = vst.msk [vmem:[#allocation3 + $0x90] sm:$0xff] %vm2673_vm2, %v2614_v32  ;;  %v3190_v59 = vpop.permute.xlu0 %3189 }
 0x4ee   : > { %3270 = vst.msk [vmem:[#allocation3 + $0x80] sm:$0xff] %vm3253_vm5, %v3190_v59  ;;  %3017 = vrot.lane.b32.xlu1 %v2926_v36, %s4794_s15 }
 0x4ef   : > { %3593 = vrot.lane.b32.xlu0 %v2926_v36, %s4797_s20 }
 0x4f0   : > { %v3383_v62 = vpop.permute.xlu1 %3382 }
 0x4f1   : > { %3463 = vst.msk [vmem:[#allocation3 + $0x80] sm:$0xff] %vm3446_vm6, %v3383_v62  ;;  %v3192_v40 = vpop.permute.xlu0 %3191  ;;  %v3687_v54 = vld [vmem:[#allocation3 + $0x78] sm:$0xff] }
 0x4f2   : > { %3271 = vst.msk [vmem:[#allocation3 + $0x88] sm:$0xff] %vm3253_vm5, %v3192_v40  ;;  %2633 = vrot.lane.b32.xlu1 %v2541_v6, %s4790_s19  ;;  %4608 = vmatmul.mubr.msk.f32.gmra.mrb[12].mxu1 %vm3720_vm8, %v3687_v54 }
 0x4f3   : > { %3209 = vrot.lane.b32.xlu0 %v2541_v6, %s4795_s17 }
 0x4f4   : > { %v2807_v41 = vpop.permute.xlu1 %2806 }
 0x4f5   : > { %2885 = vst.msk [vmem:[#allocation3 + $0x90] sm:$0xff] %vm2866_vm3, %v2807_v41  ;;  %v2616_v30 = vpop.permute.xlu0 %2615 }
 0x4f6   : > { %2693 = vst.msk [vmem:[#allocation3 + $0x98] sm:$0xff] %vm2673_vm2, %v2616_v30  ;;  %3402 = vrot.lane.b32.xlu1 %v3312_v48, %s4796_s13 }
 0x4f7   : > { %3211 = vrot.lane.b32.xlu0 %v3120_v51, %s4795_s17 }
 0x4f8   : > { %v3576_v49 = vpop.permute.xlu1 %3575 }
 0x4f9   : > { %3656 = vst.msk [vmem:[#allocation3 + $0x80] sm:$0xff] %vm3639_vm7, %v3576_v49  ;;  %v3385_v17 = vpop.permute.xlu0 %3384 }
 0x4fa   : > { %3464 = vst.msk [vmem:[#allocation3 + $0x88] sm:$0xff] %vm3446_vm6, %v3385_v17  ;;  %2826 = vrot.lane.b32.xlu1 %v3312_v48, %s4792_s26 }
 0x4fb   : > { %2635 = vrot.lane.b32.xlu0 %v3120_v51, %s4790_s19 }
 0x4fc   : > { %v3000_v45 = vpop.permute.xlu1 %2999 }
 0x4fd   : > { %3078 = vst.msk [vmem:[#allocation3 + $0x90] sm:$0xff] %vm3059_vm4, %v3000_v45  ;;  %v2809_v29 = vpop.permute.xlu0 %2808 }
 0x4fe   : > { %2886 = vst.msk [vmem:[#allocation3 + $0x98] sm:$0xff] %vm2866_vm3, %v2809_v29  ;;  %3595 = vrot.lane.b32.xlu1 %v3505_v50, %s4797_s20 }
 0x4ff   : > { %3404 = vrot.lane.b32.xlu0 %v3313_v43, %s4796_s13 }
 0x500   : > { %v3002_v20 = vpop.permute.xlu1 %3001  ;;  %v3688_v23 = vld [vmem:[#allocation3 + $0x80] sm:$0xff] }
 0x501   : > { %3079 = vst.msk [vmem:[#allocation3 + $0x98] sm:$0xff] %vm3059_vm4, %v3002_v20  ;;  %v3578_v52 = vpop.permute.xlu0 %3577  ;;  %4610 = vmatprep.mubr.msk.f32.mxu1 %vm3720_vm8, %v3688_v23 }
 0x502   : > { %3657 = vst.msk [vmem:[#allocation3 + $0x88] sm:$0xff] %vm3639_vm7, %v3578_v52  ;;  %3019 = vrot.lane.b32.xlu1 %v3505_v50, %s4794_s15 }
 0x503   : > { %2828 = vrot.lane.b32.xlu0 %v3313_v43, %s4792_s26 }
 0x504   : > { %v2618_v46 = vpop.permute.xlu1 %2617 }
 0x505   : > { %2694 = vst.msk [vmem:[#allocation3 + $0xa0] sm:$0xff] %vm2673_vm2, %v2618_v46  ;;  %v3194_v4 = vpop.permute.xlu0 %3193 }
 0x506   : > { %3272 = vst.msk [vmem:[#allocation3 + $0x90] sm:$0xff] %vm3253_vm5, %v3194_v4  ;;  %3021 = vrot.lane.b32.xlu1 %v2928_v35, %s4794_s15 }
 0x507   : > { %3597 = vrot.lane.b32.xlu0 %v2928_v35, %s4797_s20 }
 0x508   : > { %v3387_v26 = vpop.permute.xlu1 %3386 }
 0x509   : > { %3465 = vst.msk [vmem:[#allocation3 + $0x90] sm:$0xff] %vm3446_vm6, %v3387_v26  ;;  %v3196_v9 = vpop.permute.xlu0 %3195  ;;  %v3689_v34 = vld [vmem:[#allocation3 + $0x88] sm:$0xff] }
 0x50a   : > { %3273 = vst.msk [vmem:[#allocation3 + $0x98] sm:$0xff] %vm3253_vm5, %v3196_v9  ;;  %2637 = vrot.lane.b32.xlu1 %v2543_v19, %s4790_s19  ;;  %4611 = vmatmul.mubr.msk.f32.gmra.mrb[14].mxu1 %vm3720_vm8, %v3689_v34 }
 0x50b   : > { %3213 = vrot.lane.b32.xlu0 %v2543_v19, %s4795_s17 }
 0x50c   : > { %v2811_v56 = vpop.permute.xlu1 %2810 }
 0x50d   : > { %2887 = vst.msk [vmem:[#allocation3 + $0xa0] sm:$0xff] %vm2866_vm3, %v2811_v56  ;;  %v2620_v47 = vpop.permute.xlu0 %2619 }
 0x50e   : > { %2695 = vst.msk [vmem:[#allocation3 + $0xa8] sm:$0xff] %vm2673_vm2, %v2620_v47  ;;  %3406 = vrot.lane.b32.xlu1 %v3314_v10, %s4796_s13 }
 0x50f   : > { %3215 = vrot.lane.b32.xlu0 %v3122_v15, %s4795_s17 }
 0x510   : > { %v3580_v1 = vpop.permute.xlu1 %3579 }
 0x511   : > { %3658 = vst.msk [vmem:[#allocation3 + $0x90] sm:$0xff] %vm3639_vm7, %v3580_v1  ;;  %v3389_v0 = vpop.permute.xlu0 %3388 }
 0x512   : > { %3466 = vst.msk [vmem:[#allocation3 + $0x98] sm:$0xff] %vm3446_vm6, %v3389_v0  ;;  %2830 = vrot.lane.b32.xlu1 %v3314_v10, %s4792_s26 }
 0x513   : > { %2639 = vrot.lane.b32.xlu0 %v3122_v15, %s4790_s19  ;;  %s4431_s19 = sshll.u32 %s4884_s9, 8  ;;  %s250_s9 = sand.u32 1, %s4775_s22  }
 0x514   : > { %v3004_v42 = vpop.permute.xlu1 %3003  ;;  %s7133_s10 = scalar_lea.vmem %s7416_s5, %s4431_s19  ;;  %s4356_s11 = sshll.u32 %s250_s9, 1 }
 0x515   : > { %3080 = vst.msk [vmem:[#allocation3 + $0xa0] sm:$0xff] %vm3059_vm4, %v3004_v42  ;;  %v2813_v39 = vpop.permute.xlu0 %2812  ;;  %s252_s14 = scalar_lea.vmem [#allocation5], %s4356_s11  ;;  %s4252_s25 = scalar_lea.sflag [#allocation6], %s250_s9 }
 0x516   : > { %2888 = vst.msk [vmem:[#allocation3 + $0xa8] sm:$0xff] %vm2866_vm3, %v2813_v39  ;;  %3599 = vrot.lane.b32.xlu1 %v3507_v63, %s4797_s20  ;;  %s4268_s16 = sshll.u32 %s252_s14, 4  ;;  %s4798_s19 = smov [#allocation5]   ;;  %s7370_s16 = int_to_ptr.vmem [resolvable:$true] %s4268_s16 }
 0x517   : > { %3408 = vrot.lane.b32.xlu0 %v3315_v21, %s4796_s13  ;;  %s4721_s29 = scalar_lea.vmem %s7370_s16, 32 }
 0x518   : > { %v3006_v44 = vpop.permute.xlu1 %3005  ;;  %v3690_v5 = vld [vmem:[#allocation3 + $0x90] sm:$0xff]  ;;  %p4722_p11 = scmp.ne.s32.totalorder %s7370_s16, %s4721_s29 }
 0x519   : > { %3081 = vst.msk [vmem:[#allocation3 + $0xa8] sm:$0xff] %vm3059_vm4, %v3006_v44  ;;  %v3582_v13 = vpop.permute.xlu0 %3581  ;;  %4613 = vmatprep.mubr.msk.f32.mxu1 %vm3720_vm8, %v3690_v5 }
 0x51a   : > { %3659 = vst.msk [vmem:[#allocation3 + $0x98] sm:$0xff] %vm3639_vm7, %v3582_v13  ;;  %3023 = vrot.lane.b32.xlu1 %v3507_v63, %s4794_s15  ;;  %p4723_p12 = pnand %p4722_p11, %p4872_p5 }
 0x51b   : > { %2832 = vrot.lane.b32.xlu0 %v3315_v21, %s4792_s26  ;;  %s4725_s26 = sshll.u32 %s4798_s19, 4  ;;  %s4726_s26 = int_to_ptr.vmem [resolvable:$false] %s4725_s26 }
 0x51c   : > { %v2622_v60 = vpop.permute.xlu1 %2621  ;;  %p4724_p13 = pneg %p4723_p12  ;;  %p4728_p0 = scmp.lt.s32.totalorder %s7370_s16, %s4726_s26 }
 0x51d   : > { %2696 = vst.msk [vmem:[#allocation3 + $0xb0] sm:$0xff] %vm2673_vm2, %v2622_v60  ;;  %v3198_v2 = vpop.permute.xlu0 %3197 }
 0x51e   : > { %3274 = vst.msk [vmem:[#allocation3 + $0xa0] sm:$0xff] %vm3253_vm5, %v3198_v2  ;;  %3025 = vrot.lane.b32.xlu1 %v2930_v22, %s4794_s15  ;;  %s4727_s15 = scalar_lea.vmem %s4726_s26, 64 }
 0x51f   : > { %3601 = vrot.lane.b32.xlu0 %v2930_v22, %s4797_s20  ;;  %p4729_p1 = scmp.lt.s32.totalorder %s4727_s15, %s4721_s29 }
 0x520   : > { %v3391_v12 = vpop.permute.xlu1 %3390 }
 0x521   : > { %3467 = vst.msk [vmem:[#allocation3 + $0xa0] sm:$0xff] %vm3446_vm6, %v3391_v12  ;;  %v3200_v38 = vpop.permute.xlu0 %3199  ;;  %v3691_v8 = vld [vmem:[#allocation3 + $0x98] sm:$0xff]  ;;  %p4730_p2 = por %p4729_p1, %p4728_p0 }
 0x522   : > { %3275 = vst.msk [vmem:[#allocation3 + $0xa8] sm:$0xff] %vm3253_vm5, %v3200_v38  ;;  %4614 = vmatmul.mubr.msk.f32.gmra.mrb[16].mxu1 %vm3720_vm8, %v3691_v8  ;;  %3219 = vrot.lane.b32.xlu1 %v3124_v28, %s4795_s17 }
 0x523   : > { %3217 = vrot.lane.b32.xlu0 %v3123_v58, %s4795_s17  ;;  %p4731_p3 = pnand %p4730_p2, %p4724_p13 }
 0x524   : > { %v2815_v33 = vpop.permute.xlu1 %2814 }
 0x525   : > { %2889 = vst.msk [vmem:[#allocation3 + $0xb0] sm:$0xff] %vm2866_vm3, %v2815_v33  ;;  %v2624_v53 = vpop.permute.xlu0 %2623 }
 0x526   : > { %2697 = vst.msk [vmem:[#allocation3 + $0xb8] sm:$0xff] %vm2673_vm2, %v2624_v53  ;;  %3412 = vrot.lane.b32.xlu1 %v3317_v25, %s4796_s13 }
 0x527   : > { %3410 = vrot.lane.b32.xlu0 %v3316_v55, %s4796_s13 }
 0x528   : > { %v3584_v7 = vpop.permute.xlu1 %3583 }
 0x529   : > { %3660 = vst.msk [vmem:[#allocation3 + $0xa0] sm:$0xff] %vm3639_vm7, %v3584_v7  ;;  %v3393_v14 = vpop.permute.xlu0 %3392 }
 0x52a   : > { %3468 = vst.msk [vmem:[#allocation3 + $0xa8] sm:$0xff] %vm3446_vm6, %v3393_v14  ;;  %3605 = vrot.lane.b32.xlu1 %v3510_v57, %s4797_s20 }
 0x52b   : > { %3603 = vrot.lane.b32.xlu0 %v3509_v24, %s4797_s20 }
 0x52c   : > { %v3008_v27 = vpop.permute.xlu1 %3007 }
 0x52d   : > { %3082 = vst.msk [vmem:[#allocation3 + $0xb0] sm:$0xff] %vm3059_vm4, %v3008_v27  ;;  %v2817_v18 = vpop.permute.xlu0 %2816 }
 0x52e   : > { %2890 = vst.msk [vmem:[#allocation3 + $0xb8] sm:$0xff] %vm2866_vm3, %v2817_v18 }
 0x530   : > { %v3010_v31 = vpop.permute.xlu1 %3009  ;;  %v3692_v37 = vld [vmem:[#allocation3 + $0xa0] sm:$0xff] }
 0x531   : > { %3083 = vst.msk [vmem:[#allocation3 + $0xb8] sm:$0xff] %vm3059_vm4, %v3010_v31  ;;  %v4588_v11 = vpop.f32.mrb[32].mxu0  ;;  %v3586_v3 = vpop.permute.xlu0 %3585  ;;  %4616 = vmatprep.mubr.msk.f32.mxu1 %vm3720_vm8, %v3692_v37 }
 0x532   : > { %v3889_v16 = vadd.f32 %v4588_v11, %v7127_v61  ;;  %3661 = vst.msk [vmem:[#allocation3 + $0xa8] sm:$0xff] %vm3639_vm7, %v3586_v3  ;;  %v3883_v32 = vpop.f32.mrb[33].mxu0 }
 0x533   : > { %v3884_v59 = vadd.f32 %v7127_v61, %v3883_v32 }
 0x534   : > { %v4043_v36 = vsel %vm1618_vm13, %v3889_v16, 0.0  ;;  %v4113_v62 = vmul.f32 %v3889_v16, %v3889_v16  ;;  %4215 = vst.msk [vmem:[%s7133_s10 + $0x8] sm:$0xff] %vm1618_vm13, %v3889_v16  ;;  %v2626_v40 = vpop.permute.xlu1 %2625 }
 0x535   : > { %v4042_v6 = vsel %vm1618_vm13, %v3884_v59, 0.0  ;;  %v4112_v54 = vmul.f32 %v3884_v59, %v3884_v59  ;;  %4214 = vst.msk [vmem:[%s7133_s10] sm:$0xff] %vm1618_vm13, %v3884_v59  ;;  %v3202_v41 = vpop.permute.xlu0 %3201 }
 0x536   : > { %2698 = vst.msk [vmem:[#allocation3 + $0xc0] sm:$0xff] %vm2673_vm2, %v2626_v40  ;;  %v4145_v30 = vsel %vm1618_vm13, %v4113_v62, 0.0  ;;  %v4044_v48 = vadd.f32 %v4043_v36, %v4042_v6 }
 0x537   : > { %3276 = vst.msk [vmem:[#allocation3 + $0xb0] sm:$0xff] %vm3253_vm5, %v3202_v41  ;;  %v4144_v51 = vsel %vm1618_vm13, %v4112_v54, 0.0 }
 0x538   : > { %v4146_v49 = vadd.f32 %v4145_v30, %v4144_v51  ;;  %v3395_v17 = vpop.permute.xlu1 %3394 }
 0x539   : > { %3469 = vst.msk [vmem:[#allocation3 + $0xb0] sm:$0xff] %vm3446_vm6, %v3395_v17  ;;  %v3204_v45 = vpop.permute.xlu0 %3203  ;;  %v3693_v29 = vld [vmem:[#allocation3 + $0xa8] sm:$0xff] }
 0x53a   : > { %3277 = vst.msk [vmem:[#allocation3 + $0xb8] sm:$0xff] %vm3253_vm5, %v3204_v45  ;;  %4617 = vmatmul.mubr.msk.f32.gmra.mrb[18].mxu1 %vm3720_vm8, %v3693_v29 }
 0x53c   : > { %v2819_v50 = vpop.permute.xlu1 %2818 }
 0x53d   : > { %2891 = vst.msk [vmem:[#allocation3 + $0xc0] sm:$0xff] %vm2866_vm3, %v2819_v50  ;;  %v2628_v43 = vpop.permute.xlu0 %2627  ;;  %v4591_v20 = vpop.f32.mrb[0].mxu1 }
 0x53e   : > { %2699 = vst.msk [vmem:[#allocation3 + $0xc8] sm:$0xff] %vm2673_vm2, %v2628_v43  ;;  %v3899_v23 = vadd.f32 %v4591_v20, %v7127_v61  ;;  %v3893_v52 = vpop.f32.mrb[1].mxu1 }
 0x53f   : > { %v3894_v46 = vadd.f32 %v7127_v61, %v3893_v52 }
 0x540   : > { %4217 = vst.msk [vmem:[%s7133_s10 + $0x18] sm:$0xff] %vm1618_vm13, %v3899_v23  ;;  %v3588_v4 = vpop.permute.xlu1 %3587  ;;  %v4115_v35 = vmul.f32 %v3899_v23, %v3899_v23  ;;  %v4047_v56 = vsel %vm1618_vm13, %v3899_v23, 0.0 }
 0x541   : > { %v4045_v26 = vsel %vm1618_vm13, %v3894_v46, 0.0  ;;  %v4114_v9 = vmul.f32 %v3894_v46, %v3894_v46  ;;  %4216 = vst.msk [vmem:[%s7133_s10 + $0x10] sm:$0xff] %vm1618_vm13, %v3894_v46  ;;  %v3397_v19 = vpop.permute.xlu0 %3396 }
 0x542   : > { %3662 = vst.msk [vmem:[#allocation3 + $0xb0] sm:$0xff] %vm3639_vm7, %v3588_v4  ;;  %v4046_v34 = vadd.f32 %v4045_v26, %v4044_v48  ;;  %v4149_v0 = vsel %vm1618_vm13, %v4115_v35, 0.0 }
 0x543   : > { %3470 = vst.msk [vmem:[#allocation3 + $0xb8] sm:$0xff] %vm3446_vm6, %v3397_v19  ;;  %v4147_v47 = vsel %vm1618_vm13, %v4114_v9, 0.0 }
 0x544   : > { %v4148_v10 = vadd.f32 %v4147_v47, %v4146_v49  ;;  %v3012_v15 = vpop.permute.xlu1 %3011  ;;  %v4048_v1 = vadd.f32 %v4047_v56, %v4046_v34 }
 0x545   : > { %3084 = vst.msk [vmem:[#allocation3 + $0xc0] sm:$0xff] %vm3059_vm4, %v3012_v15  ;;  %v2821_v42 = vpop.permute.xlu0 %2820 }
 0x546   : > { %2892 = vst.msk [vmem:[#allocation3 + $0xc8] sm:$0xff] %vm2866_vm3, %v2821_v42  ;;  %v4150_v39 = vadd.f32 %v4149_v0, %v4148_v10 }
 0x548   : > { %v3014_v63 = vpop.permute.xlu1 %3013 }
 0x549   : > { %v3694_v21 = vld [vmem:[#allocation3 + $0xb0] sm:$0xff]  ;;  %3085 = vst.msk [vmem:[#allocation3 + $0xc8] sm:$0xff] %vm3059_vm4, %v3014_v63  ;;  %v3590_v44 = vpop.permute.xlu0 %3589 }
 0x54a   : > { %4619 = vmatprep.mubr.msk.f32.mxu1 %vm3720_vm8, %v3694_v21  ;;  %3663 = vst.msk [vmem:[#allocation3 + $0xb8] sm:$0xff] %vm3639_vm7, %v3590_v44 }
 0x54c   : > { %v2630_v5 = vpop.permute.xlu1 %2629 }
 0x54d   : > { %2700 = vst.msk [vmem:[#allocation3 + $0xd0] sm:$0xff] %vm2673_vm2, %v2630_v5  ;;  %v3206_v13 = vpop.permute.xlu0 %3205 }
 0x54e   : > { %3278 = vst.msk [vmem:[#allocation3 + $0xc0] sm:$0xff] %vm3253_vm5, %v3206_v13 }
 0x550   : > { %v3399_v60 = vpop.permute.xlu1 %3398 }
 0x551   : > { %3471 = vst.msk [vmem:[#allocation3 + $0xc0] sm:$0xff] %vm3446_vm6, %v3399_v60  ;;  %v3208_v2 = vpop.permute.xlu0 %3207  ;;  %v4594_v22 = vpop.f32.mrb[2].mxu1  ;;  %v3695_v28 = vld [vmem:[#allocation3 + $0xb8] sm:$0xff] }
 0x552   : > { %3279 = vst.msk [vmem:[#allocation3 + $0xc8] sm:$0xff] %vm3253_vm5, %v3208_v2  ;;  %v3909_v12 = vadd.f32 %v4594_v22, %v7127_v61  ;;  %v3903_v58 = vpop.f32.mrb[3].mxu1  ;;  %4620 = vmatmul.mubr.msk.f32.gmra.mrb[20].mxu1 %vm3720_vm8, %v3695_v28 }
 0x553   : > { %v3904_v38 = vadd.f32 %v7127_v61, %v3903_v58 }
 0x554   : > { %4219 = vst.msk [vmem:[%s7133_s10 + $0x28] sm:$0xff] %vm1618_vm13, %v3909_v12  ;;  %v2823_v8 = vpop.permute.xlu1 %2822  ;;  %v4117_v25 = vmul.f32 %v3909_v12, %v3909_v12  ;;  %v4051_v7 = vsel %vm1618_vm13, %v3909_v12, 0.0 }
 0x555   : > { %v4049_v33 = vsel %vm1618_vm13, %v3904_v38, 0.0  ;;  %v4116_v55 = vmul.f32 %v3904_v38, %v3904_v38  ;;  %4218 = vst.msk [vmem:[%s7133_s10 + $0x20] sm:$0xff] %vm1618_vm13, %v3904_v38  ;;  %v2632_v53 = vpop.permute.xlu0 %2631 }
 0x556   : > { %2893 = vst.msk [vmem:[#allocation3 + $0xd0] sm:$0xff] %vm2866_vm3, %v2823_v8  ;;  %v4050_v57 = vadd.f32 %v4049_v33, %v4048_v1  ;;  %v4153_v31 = vsel %vm1618_vm13, %v4117_v25, 0.0 }
 0x557   : > { %2701 = vst.msk [vmem:[#allocation3 + $0xd8] sm:$0xff] %vm2673_vm2, %v2632_v53  ;;  %v4151_v24 = vsel %vm1618_vm13, %v4116_v55, 0.0 }
 0x558   : > { %v4152_v14 = vadd.f32 %v4151_v24, %v4150_v39  ;;  %v3592_v27 = vpop.permute.xlu1 %3591  ;;  %v4052_v18 = vadd.f32 %v4051_v7, %v4050_v57 }
 0x559   : > { %3664 = vst.msk [vmem:[#allocation3 + $0xc0] sm:$0xff] %vm3639_vm7, %v3592_v27  ;;  %v3401_v37 = vpop.permute.xlu0 %3400 }
 0x55a   : > { %3472 = vst.msk [vmem:[#allocation3 + $0xc8] sm:$0xff] %vm3446_vm6, %v3401_v37  ;;  %v4154_v11 = vadd.f32 %v4153_v31, %v4152_v14 }
 0x55c   : > { %v3016_v3 = vpop.permute.xlu1 %3015 }
 0x55d   : > { %3086 = vst.msk [vmem:[#allocation3 + $0xd0] sm:$0xff] %vm3059_vm4, %v3016_v3  ;;  %v2825_v16 = vpop.permute.xlu0 %2824 }
 0x55e   : > { %2894 = vst.msk [vmem:[#allocation3 + $0xd8] sm:$0xff] %vm2866_vm3, %v2825_v16 }
 0x560   : > { %v3018_v32 = vpop.permute.xlu1 %3017  ;;  %v3696_v59 = vld [vmem:[#allocation3 + $0xc0] sm:$0xff] }
 0x561   : > { %3087 = vst.msk [vmem:[#allocation3 + $0xd8] sm:$0xff] %vm3059_vm4, %v3018_v32  ;;  %v3594_v36 = vpop.permute.xlu0 %3593  ;;  %4622 = vmatprep.mubr.msk.f32.mxu1 %vm3720_vm8, %v3696_v59 }
 0x562   : > { %3665 = vst.msk [vmem:[#allocation3 + $0xc8] sm:$0xff] %vm3639_vm7, %v3594_v36 }
 0x564   : > { %v2634_v62 = vpop.permute.xlu1 %2633 }
 0x565   : > { %2702 = vst.msk [vmem:[#allocation3 + $0xe0] sm:$0xff] %vm2673_vm2, %v2634_v62  ;;  %v3210_v40 = vpop.permute.xlu0 %3209  ;;  %v4597_v6 = vpop.f32.mrb[4].mxu1 }
 0x566   : > { %3280 = vst.msk [vmem:[#allocation3 + $0xd0] sm:$0xff] %vm3253_vm5, %v3210_v40  ;;  %v3919_v54 = vadd.f32 %v4597_v6, %v7127_v61  ;;  %v3913_v41 = vpop.f32.mrb[5].mxu1 }
 0x567   : > { %v3914_v30 = vadd.f32 %v7127_v61, %v3913_v41 }
 0x568   : > { %4221 = vst.msk [vmem:[%s7133_s10 + $0x38] sm:$0xff] %vm1618_vm13, %v3919_v54  ;;  %v3403_v48 = vpop.permute.xlu1 %3402  ;;  %v4119_v51 = vmul.f32 %v3919_v54, %v3919_v54  ;;  %v4055_v43 = vsel %vm1618_vm13, %v3919_v54, 0.0 }
 0x569   : > { %v4053_v49 = vsel %vm1618_vm13, %v3914_v30, 0.0  ;;  %v4118_v17 = vmul.f32 %v3914_v30, %v3914_v30  ;;  %4220 = vst.msk [vmem:[%s7133_s10 + $0x30] sm:$0xff] %vm1618_vm13, %v3914_v30  ;;  %v3212_v45 = vpop.permute.xlu0 %3211  ;;  %v3697_v29 = vld [vmem:[#allocation3 + $0xc8] sm:$0xff] }
 0x56a   : > { %3473 = vst.msk [vmem:[#allocation3 + $0xd0] sm:$0xff] %vm3446_vm6, %v3403_v48  ;;  %v4054_v50 = vadd.f32 %v4053_v49, %v4052_v18  ;;  %4623 = vmatmul.mubr.msk.f32.gmra.mrb[22].mxu1 %vm3720_vm8, %v3697_v29  ;;  %v4157_v4 = vsel %vm1618_vm13, %v4119_v51, 0.0 }
 0x56b   : > { %3281 = vst.msk [vmem:[#allocation3 + $0xd8] sm:$0xff] %vm3253_vm5, %v3212_v45  ;;  %v4155_v20 = vsel %vm1618_vm13, %v4118_v17, 0.0 }
 0x56c   : > { %v4156_v23 = vadd.f32 %v4155_v20, %v4154_v11  ;;  %v2827_v52 = vpop.permute.xlu1 %2826  ;;  %v4056_v46 = vadd.f32 %v4055_v43, %v4054_v50 }
 0x56d   : > { %2895 = vst.msk [vmem:[#allocation3 + $0xe0] sm:$0xff] %vm2866_vm3, %v2827_v52  ;;  %v2636_v35 = vpop.permute.xlu0 %2635 }
 0x56e   : > { %2703 = vst.msk [vmem:[#allocation3 + $0xe8] sm:$0xff] %vm2673_vm2, %v2636_v35  ;;  %v4158_v26 = vadd.f32 %v4157_v4, %v4156_v23 }
 0x570   : > { %v3596_v9 = vpop.permute.xlu1 %3595 }
 0x571   : > { %3666 = vst.msk [vmem:[#allocation3 + $0xd0] sm:$0xff] %vm3639_vm7, %v3596_v9  ;;  %v3405_v19 = vpop.permute.xlu0 %3404 }
 0x572   : > { %3474 = vst.msk [vmem:[#allocation3 + $0xd8] sm:$0xff] %vm3446_vm6, %v3405_v19 }
 0x574   : > { %v3020_v34 = vpop.permute.xlu1 %3019 }
 0x575   : > { %3088 = vst.msk [vmem:[#allocation3 + $0xe0] sm:$0xff] %vm3059_vm4, %v3020_v34  ;;  %v2829_v56 = vpop.permute.xlu0 %2828 }
 0x576   : > { %2896 = vst.msk [vmem:[#allocation3 + $0xe8] sm:$0xff] %vm2866_vm3, %v2829_v56 }
 0x578   : > { %v3022_v47 = vpop.permute.xlu1 %3021  ;;  %v3698_v10 = vld [vmem:[#allocation3 + $0xd0] sm:$0xff] }
 0x579   : > { %3089 = vst.msk [vmem:[#allocation3 + $0xe8] sm:$0xff] %vm3059_vm4, %v3022_v47  ;;  %v3598_v15 = vpop.permute.xlu0 %3597  ;;  %4625 = vmatprep.mubr.msk.f32.mxu1 %vm3720_vm8, %v3698_v10 }
 0x57a   : > { %3667 = vst.msk [vmem:[#allocation3 + $0xd8] sm:$0xff] %vm3639_vm7, %v3598_v15 }
 0x57c   : > { %v2638_v1 = vpop.permute.xlu1 %2637 }
 0x57d   : > { %2704 = vst.msk [vmem:[#allocation3 + $0xf0] sm:$0xff] %vm2673_vm2, %v2638_v1  ;;  %v3214_v0 = vpop.permute.xlu0 %3213  ;;  %v4600_v42 = vpop.f32.mrb[6].mxu1 }
 0x57e   : > { %3282 = vst.msk [vmem:[#allocation3 + $0xe0] sm:$0xff] %vm3253_vm5, %v3214_v0  ;;  %v3929_v39 = vadd.f32 %v4600_v42, %v7127_v61  ;;  %v3923_v63 = vpop.f32.mrb[7].mxu1 }
 0x57f   : > { %v3924_v21 = vadd.f32 %v7127_v61, %v3923_v63 }
 0x580   : > { %4223 = vst.msk [vmem:[%s7133_s10 + $0x48] sm:$0xff] %vm1618_vm13, %v3929_v39  ;;  %v3407_v44 = vpop.permute.xlu1 %3406  ;;  %v4121_v5 = vmul.f32 %v3929_v39, %v3929_v39  ;;  %v4059_v12 = vsel %vm1618_vm13, %v3929_v39, 0.0 }
 0x581   : > { %v4057_v13 = vsel %vm1618_vm13, %v3924_v21, 0.0  ;;  %v4120_v60 = vmul.f32 %v3924_v21, %v3924_v21  ;;  %4222 = vst.msk [vmem:[%s7133_s10 + $0x40] sm:$0xff] %vm1618_vm13, %v3924_v21  ;;  %v3216_v2 = vpop.permute.xlu0 %3215  ;;  %v3699_v22 = vld [vmem:[#allocation3 + $0xd8] sm:$0xff] }
 0x582   : > { %3475 = vst.msk [vmem:[#allocation3 + $0xe0] sm:$0xff] %vm3446_vm6, %v3407_v44  ;;  %v4058_v28 = vadd.f32 %v4057_v13, %v4056_v46  ;;  %4626 = vmatmul.mubr.msk.f32.gmra.mrb[24].mxu1 %vm3720_vm8, %v3699_v22  ;;  %v4161_v33 = vsel %vm1618_vm13, %v4121_v5, 0.0 }
 0x583   : > { %3283 = vst.msk [vmem:[#allocation3 + $0xe8] sm:$0xff] %vm3253_vm5, %v3216_v2  ;;  %v4159_v58 = vsel %vm1618_vm13, %v4120_v60, 0.0 }
 0x584   : > { %v4160_v38 = vadd.f32 %v4159_v58, %v4158_v26  ;;  %v2831_v8 = vpop.permute.xlu1 %2830  ;;  %v4060_v25 = vadd.f32 %v4059_v12, %v4058_v28 }
 0x585   : > { %2897 = vst.msk [vmem:[#allocation3 + $0xf0] sm:$0xff] %vm2866_vm3, %v2831_v8  ;;  %v2640_v55 = vpop.permute.xlu0 %2639 }
 0x586   : > { %2705 = vst.msk [vmem:[#allocation3 + $0xf8] sm:$0xff] %vm2673_vm2, %v2640_v55  ;;  %v4162_v53 = vadd.f32 %v4161_v33, %v4160_v38 }
 0x588   : > { %v3600_v57 = vpop.permute.xlu1 %3599 }
 0x589   : > { %3668 = vst.msk [vmem:[#allocation3 + $0xe0] sm:$0xff] %vm3639_vm7, %v3600_v57  ;;  %v3409_v7 = vpop.permute.xlu0 %3408 }
 0x58a   : > { %3476 = vst.msk [vmem:[#allocation3 + $0xe8] sm:$0xff] %vm3446_vm6, %v3409_v7 }
 0x58c   : > { %v3024_v24 = vpop.permute.xlu1 %3023 }
 0x58d   : > { %3090 = vst.msk [vmem:[#allocation3 + $0xf0] sm:$0xff] %vm3059_vm4, %v3024_v24  ;;  %v2833_v14 = vpop.permute.xlu0 %2832 }
 0x58e   : > { %2898 = vst.msk [vmem:[#allocation3 + $0xf8] sm:$0xff] %vm2866_vm3, %v2833_v14 }
 0x590   : > { %v3026_v27 = vpop.permute.xlu1 %3025  ;;  %v3700_v18 = vld [vmem:[#allocation3 + $0xe0] sm:$0xff] }
 0x591   : > { %3091 = vst.msk [vmem:[#allocation3 + $0xf8] sm:$0xff] %vm3059_vm4, %v3026_v27  ;;  %v3602_v31 = vpop.permute.xlu0 %3601  ;;  %4628 = vmatprep.mubr.msk.f32.mxu1 %vm3720_vm8, %v3700_v18 }
 0x592   : > { %3669 = vst.msk [vmem:[#allocation3 + $0xe8] sm:$0xff] %vm3639_vm7, %v3602_v31 }
 0x594   : > { %v3220_v37 = vpop.permute.xlu1 %3219 }
 0x595   : > { %v3218_v11 = vpop.permute.xlu0 %3217  ;;  %v4603_v3 = vpop.f32.mrb[8].mxu1  ;;  %3285 = vst.msk [vmem:[#allocation3 + $0xf8] sm:$0xff] %vm3253_vm5, %v3220_v37 }
 0x596   : > { %3284 = vst.msk [vmem:[#allocation3 + $0xf0] sm:$0xff] %vm3253_vm5, %v3218_v11  ;;  %v3939_v16 = vadd.f32 %v4603_v3, %v7127_v61  ;;  %v3933_v32 = vpop.f32.mrb[9].mxu1 }
 0x597   : > { %v3934_v59 = vadd.f32 %v7127_v61, %v3933_v32 }
 0x598   : > { %4225 = vst.msk [vmem:[%s7133_s10 + $0x58] sm:$0xff] %vm1618_vm13, %v3939_v16  ;;  %v3413_v36 = vpop.permute.xlu1 %3412  ;;  %v4123_v62 = vmul.f32 %v3939_v16, %v3939_v16  ;;  %v4063_v48 = vsel %vm1618_vm13, %v3939_v16, 0.0 }
 0x599   : > { %v4061_v40 = vsel %vm1618_vm13, %v3934_v59, 0.0  ;;  %v4122_v6 = vmul.f32 %v3934_v59, %v3934_v59  ;;  %4224 = vst.msk [vmem:[%s7133_s10 + $0x50] sm:$0xff] %vm1618_vm13, %v3934_v59  ;;  %v3411_v54 = vpop.permute.xlu0 %3410  ;;  %v3701_v41 = vld [vmem:[#allocation3 + $0xe8] sm:$0xff] }
 0x59a   : > { %3478 = vst.msk [vmem:[#allocation3 + $0xf8] sm:$0xff] %vm3446_vm6, %v3413_v36  ;;  %v4062_v30 = vadd.f32 %v4061_v40, %v4060_v25  ;;  %3477 = vst.msk [vmem:[#allocation3 + $0xf0] sm:$0xff] %vm3446_vm6, %v3411_v54  ;;  %4629 = vmatmul.mubr.msk.f32.gmra.mrb[26].mxu1 %vm3720_vm8, %v3701_v41  ;;  %v4165_v29 = vsel %vm1618_vm13, %v4123_v62, 0.0 }
 0x59b   : > { %v4163_v51 = vsel %vm1618_vm13, %v4122_v6, 0.0 }
 0x59c   : > { %v4164_v49 = vadd.f32 %v4163_v51, %v4162_v53  ;;  %v3606_v17 = vpop.permute.xlu1 %3605  ;;  %v4064_v45 = vadd.f32 %v4063_v48, %v4062_v30 }
 0x59d   : > { %v3604_v50 = vpop.permute.xlu0 %3603  ;;  %3671 = vst.msk [vmem:[#allocation3 + $0xf8] sm:$0xff] %vm3639_vm7, %v3606_v17 }
 0x59e   : > { %3670 = vst.msk [vmem:[#allocation3 + $0xf0] sm:$0xff] %vm3639_vm7, %v3604_v50  ;;  %v4166_v43 = vadd.f32 %v4165_v29, %v4164_v49 }
 0x5a4   : > { %v3703_v20 = vld [vmem:[#allocation3 + $0xf8] sm:$0xff] }
 0x5a5   : > { %v3702_v23 = vld [vmem:[#allocation3 + $0xf0] sm:$0xff] }
 0x5a6   : > { %4631 = vmatprep.mubr.msk.f32.mxu1 %vm3720_vm8, %v3702_v23 }
 0x5a7   : > { %4632 = vmatmul.mubr.msk.f32.gmra.mrb[28].mxu1 %vm3720_vm8, %v3703_v20 }
 0x5ad   : > { %v4606_v52 = vpop.f32.mrb[10].mxu1 }
 0x5ae   : > { %v3949_v46 = vadd.f32 %v4606_v52, %v7127_v61  ;;  %v3943_v4 = vpop.f32.mrb[11].mxu1 }
 0x5af   : > { %v3944_v35 = vadd.f32 %v7127_v61, %v3943_v4 }
 0x5b0   : > { %4227 = vst.msk [vmem:[%s7133_s10 + $0x68] sm:$0xff] %vm1618_vm13, %v3949_v46  ;;  %v4125_v26 = vmul.f32 %v3949_v46, %v3949_v46  ;;  %v4067_v56 = vsel %vm1618_vm13, %v3949_v46, 0.0 }
 0x5b1   : > { %v4065_v9 = vsel %vm1618_vm13, %v3944_v35, 0.0  ;;  %v4124_v19 = vmul.f32 %v3944_v35, %v3944_v35  ;;  %4226 = vst.msk [vmem:[%s7133_s10 + $0x60] sm:$0xff] %vm1618_vm13, %v3944_v35 }
 0x5b2   : > { %v4066_v34 = vadd.f32 %v4065_v9, %v4064_v45  ;;  %v4169_v1 = vsel %vm1618_vm13, %v4125_v26, 0.0 }
 0x5b3   : > { %v4167_v47 = vsel %vm1618_vm13, %v4124_v19, 0.0 }
 0x5b4   : > { %v4168_v10 = vadd.f32 %v4167_v47, %v4166_v43  ;;  %v4068_v15 = vadd.f32 %v4067_v56, %v4066_v34 }
 0x5b6   : > { %v4170_v0 = vadd.f32 %v4169_v1, %v4168_v10 }
 0x5c5   : > { %v4609_v42 = vpop.f32.mrb[12].mxu1 }
 0x5c6   : > { %v3959_v39 = vadd.f32 %v4609_v42, %v7127_v61  ;;  %v3953_v63 = vpop.f32.mrb[13].mxu1 }
 0x5c7   : > { %v3954_v21 = vadd.f32 %v7127_v61, %v3953_v63 }
 0x5c8   : > { %4229 = vst.msk [vmem:[%s7133_s10 + $0x78] sm:$0xff] %vm1618_vm13, %v3959_v39  ;;  %v4127_v44 = vmul.f32 %v3959_v39, %v3959_v39  ;;  %v4071_v2 = vsel %vm1618_vm13, %v3959_v39, 0.0 }
 0x5c9   : > { %v4069_v5 = vsel %vm1618_vm13, %v3954_v21, 0.0  ;;  %v4126_v13 = vmul.f32 %v3954_v21, %v3954_v21  ;;  %4228 = vst.msk [vmem:[%s7133_s10 + $0x70] sm:$0xff] %vm1618_vm13, %v3954_v21 }
 0x5ca   : > { %v4070_v60 = vadd.f32 %v4069_v5, %v4068_v15  ;;  %v4173_v58 = vsel %vm1618_vm13, %v4127_v44, 0.0 }
 0x5cb   : > { %v4171_v22 = vsel %vm1618_vm13, %v4126_v13, 0.0 }
 0x5cc   : > { %v4172_v28 = vadd.f32 %v4171_v22, %v4170_v0  ;;  %v4072_v12 = vadd.f32 %v4071_v2, %v4070_v60 }
 0x5ce   : > { %v4174_v38 = vadd.f32 %v4173_v58, %v4172_v28 }
 0x5dd   : > { %v4612_v8 = vpop.f32.mrb[14].mxu1 }
 0x5de   : > { %v3969_v25 = vadd.f32 %v4612_v8, %v7127_v61  ;;  %v3963_v33 = vpop.f32.mrb[15].mxu1 }
 0x5df   : > { %v3964_v55 = vadd.f32 %v7127_v61, %v3963_v33 }
 0x5e0   : > { %4231 = vst.msk [vmem:[%s7133_s10 + $0x88] sm:$0xff] %vm1618_vm13, %v3969_v25  ;;  %v4129_v53 = vmul.f32 %v3969_v25, %v3969_v25  ;;  %v4075_v14 = vsel %vm1618_vm13, %v3969_v25, 0.0 }
 0x5e1   : > { %v4073_v57 = vsel %vm1618_vm13, %v3964_v55, 0.0  ;;  %v4128_v7 = vmul.f32 %v3964_v55, %v3964_v55  ;;  %4230 = vst.msk [vmem:[%s7133_s10 + $0x80] sm:$0xff] %vm1618_vm13, %v3964_v55 }
 0x5e2   : > { %v4074_v24 = vadd.f32 %v4073_v57, %v4072_v12  ;;  %v4177_v37 = vsel %vm1618_vm13, %v4129_v53, 0.0 }
 0x5e3   : > { %v4175_v27 = vsel %vm1618_vm13, %v4128_v7, 0.0 }
 0x5e4   : > { %v4176_v18 = vadd.f32 %v4175_v27, %v4174_v38  ;;  %v4076_v31 = vadd.f32 %v4075_v14, %v4074_v24 }
 0x5e6   : > { %v4178_v11 = vadd.f32 %v4177_v37, %v4176_v18 }
 0x5f5   : > { %v4615_v3 = vpop.f32.mrb[16].mxu1 }
 0x5f6   : > { %v3979_v16 = vadd.f32 %v4615_v3, %v7127_v61  ;;  %v3973_v32 = vpop.f32.mrb[17].mxu1 }
 0x5f7   : > { %v3974_v59 = vadd.f32 %v7127_v61, %v3973_v32 }
 0x5f8   : > { %4233 = vst.msk [vmem:[%s7133_s10 + $0x98] sm:$0xff] %vm1618_vm13, %v3979_v16  ;;  %v4131_v36 = vmul.f32 %v3979_v16, %v3979_v16  ;;  %v4079_v54 = vsel %vm1618_vm13, %v3979_v16, 0.0 }
 0x5f9   : > { %v4077_v62 = vsel %vm1618_vm13, %v3974_v59, 0.0  ;;  %v4130_v40 = vmul.f32 %v3974_v59, %v3974_v59  ;;  %4232 = vst.msk [vmem:[%s7133_s10 + $0x90] sm:$0xff] %vm1618_vm13, %v3974_v59 }
 0x5fa   : > { %v4078_v6 = vadd.f32 %v4077_v62, %v4076_v31  ;;  %v4181_v51 = vsel %vm1618_vm13, %v4131_v36, 0.0 }
 0x5fb   : > { %v4179_v41 = vsel %vm1618_vm13, %v4130_v40, 0.0 }
 0x5fc   : > { %v4180_v30 = vadd.f32 %v4179_v41, %v4178_v11  ;;  %v4080_v48 = vadd.f32 %v4079_v54, %v4078_v6 }
 0x5fe   : > { %v4182_v49 = vadd.f32 %v4181_v51, %v4180_v30 }
 0x60d   : > { %v4618_v17 = vpop.f32.mrb[18].mxu1 }
 0x60e   : > { %v3989_v45 = vadd.f32 %v4618_v17, %v7127_v61  ;;  %v3983_v29 = vpop.f32.mrb[19].mxu1 }
 0x60f   : > { %v3984_v50 = vadd.f32 %v7127_v61, %v3983_v29 }
 0x610   : > { %4235 = vst.msk [vmem:[%s7133_s10 + $0xa8] sm:$0xff] %vm1618_vm13, %v3989_v45  ;;  %v4133_v43 = vmul.f32 %v3989_v45, %v3989_v45  ;;  %v4083_v46 = vsel %vm1618_vm13, %v3989_v45, 0.0 }
 0x611   : > { %v4081_v20 = vsel %vm1618_vm13, %v3984_v50, 0.0  ;;  %v4132_v23 = vmul.f32 %v3984_v50, %v3984_v50  ;;  %4234 = vst.msk [vmem:[%s7133_s10 + $0xa0] sm:$0xff] %vm1618_vm13, %v3984_v50 }
 0x612   : > { %v4082_v52 = vadd.f32 %v4081_v20, %v4080_v48  ;;  %v4185_v9 = vsel %vm1618_vm13, %v4133_v43, 0.0 }
 0x613   : > { %v4183_v4 = vsel %vm1618_vm13, %v4132_v23, 0.0 }
 0x614   : > { %v4184_v35 = vadd.f32 %v4183_v4, %v4182_v49  ;;  %v4084_v26 = vadd.f32 %v4083_v46, %v4082_v52 }
 0x616   : > { %v4186_v19 = vadd.f32 %v4185_v9, %v4184_v35 }
 0x625   : > { %v4621_v34 = vpop.f32.mrb[20].mxu1 }
 0x626   : > { %v3999_v56 = vadd.f32 %v4621_v34, %v7127_v61  ;;  %v3993_v47 = vpop.f32.mrb[21].mxu1 }
 0x627   : > { %v3994_v10 = vadd.f32 %v7127_v61, %v3993_v47 }
 0x628   : > { %4237 = vst.msk [vmem:[%s7133_s10 + $0xb8] sm:$0xff] %vm1618_vm13, %v3999_v56  ;;  %v4135_v15 = vmul.f32 %v3999_v56, %v3999_v56  ;;  %v4087_v39 = vsel %vm1618_vm13, %v3999_v56, 0.0 }
 0x629   : > { %v4085_v1 = vsel %vm1618_vm13, %v3994_v10, 0.0  ;;  %v4134_v0 = vmul.f32 %v3994_v10, %v3994_v10  ;;  %4236 = vst.msk [vmem:[%s7133_s10 + $0xb0] sm:$0xff] %vm1618_vm13, %v3994_v10 }
 0x62a   : > { %v4086_v42 = vadd.f32 %v4085_v1, %v4084_v26  ;;  %v4189_v5 = vsel %vm1618_vm13, %v4135_v15, 0.0 }
 0x62b   : > { %v4187_v63 = vsel %vm1618_vm13, %v4134_v0, 0.0 }
 0x62c   : > { %v4188_v21 = vadd.f32 %v4187_v63, %v4186_v19  ;;  %v4088_v44 = vadd.f32 %v4087_v39, %v4086_v42 }
 0x62e   : > { %v4190_v13 = vadd.f32 %v4189_v5, %v4188_v21 }
 0x63d   : > { %v4624_v60 = vpop.f32.mrb[22].mxu1 }
 0x63e   : > { %v4009_v2 = vadd.f32 %v4624_v60, %v7127_v61  ;;  %v4003_v22 = vpop.f32.mrb[23].mxu1 }
 0x63f   : > { %v4004_v28 = vadd.f32 %v7127_v61, %v4003_v22 }
 0x640   : > { %4239 = vst.msk [vmem:[%s7133_s10 + $0xc8] sm:$0xff] %vm1618_vm13, %v4009_v2  ;;  %v4137_v12 = vmul.f32 %v4009_v2, %v4009_v2  ;;  %v4091_v25 = vsel %vm1618_vm13, %v4009_v2, 0.0 }
 0x641   : > { %v4089_v58 = vsel %vm1618_vm13, %v4004_v28, 0.0  ;;  %v4136_v38 = vmul.f32 %v4004_v28, %v4004_v28  ;;  %4238 = vst.msk [vmem:[%s7133_s10 + $0xc0] sm:$0xff] %vm1618_vm13, %v4004_v28 }
 0x642   : > { %v4090_v8 = vadd.f32 %v4089_v58, %v4088_v44  ;;  %v4193_v57 = vsel %vm1618_vm13, %v4137_v12, 0.0 }
 0x643   : > { %v4191_v33 = vsel %vm1618_vm13, %v4136_v38, 0.0 }
 0x644   : > { %v4192_v55 = vadd.f32 %v4191_v33, %v4190_v13  ;;  %v4092_v53 = vadd.f32 %v4091_v25, %v4090_v8 }
 0x646   : > { %v4194_v7 = vadd.f32 %v4193_v57, %v4192_v55 }
 0x655   : > { %v4627_v24 = vpop.f32.mrb[24].mxu1 }
 0x656   : > { %v4019_v14 = vadd.f32 %v4627_v24, %v7127_v61  ;;  %v4013_v27 = vpop.f32.mrb[25].mxu1 }
 0x657   : > { %v4014_v18 = vadd.f32 %v7127_v61, %v4013_v27 }
 0x658   : > { %4241 = vst.msk [vmem:[%s7133_s10 + $0xd8] sm:$0xff] %vm1618_vm13, %v4019_v14  ;;  %v4139_v31 = vmul.f32 %v4019_v14, %v4019_v14  ;;  %v4095_v16 = vsel %vm1618_vm13, %v4019_v14, 0.0 }
 0x659   : > { %v4093_v37 = vsel %vm1618_vm13, %v4014_v18, 0.0  ;;  %v4138_v11 = vmul.f32 %v4014_v18, %v4014_v18  ;;  %4240 = vst.msk [vmem:[%s7133_s10 + $0xd0] sm:$0xff] %vm1618_vm13, %v4014_v18 }
 0x65a   : > { %v4094_v3 = vadd.f32 %v4093_v37, %v4092_v53  ;;  %v4197_v62 = vsel %vm1618_vm13, %v4139_v31, 0.0 }
 0x65b   : > { %v4195_v32 = vsel %vm1618_vm13, %v4138_v11, 0.0 }
 0x65c   : > { %v4196_v59 = vadd.f32 %v4195_v32, %v4194_v7  ;;  %v4096_v36 = vadd.f32 %v4095_v16, %v4094_v3 }
 0x65e   : > { %v4198_v40 = vadd.f32 %v4197_v62, %v4196_v59 }
 0x66d   : > { %v4630_v6 = vpop.f32.mrb[26].mxu1 }
 0x66e   : > { %v4029_v54 = vadd.f32 %v4630_v6, %v7127_v61  ;;  %v4023_v41 = vpop.f32.mrb[27].mxu1 }
 0x66f   : > { %v4024_v30 = vadd.f32 %v7127_v61, %v4023_v41 }
 0x670   : > { %4243 = vst.msk [vmem:[%s7133_s10 + $0xe8] sm:$0xff] %vm1618_vm13, %v4029_v54  ;;  %v4141_v48 = vmul.f32 %v4029_v54, %v4029_v54  ;;  %v4099_v45 = vsel %vm1618_vm13, %v4029_v54, 0.0 }
 0x671   : > { %v4097_v51 = vsel %vm1618_vm13, %v4024_v30, 0.0  ;;  %v4140_v49 = vmul.f32 %v4024_v30, %v4024_v30  ;;  %4242 = vst.msk [vmem:[%s7133_s10 + $0xe0] sm:$0xff] %vm1618_vm13, %v4024_v30 }
 0x672   : > { %v4098_v17 = vadd.f32 %v4097_v51, %v4096_v36  ;;  %v4201_v20 = vsel %vm1618_vm13, %v4141_v48, 0.0 }
 0x673   : > { %v4199_v29 = vsel %vm1618_vm13, %v4140_v49, 0.0 }
 0x674   : > { %v4200_v50 = vadd.f32 %v4199_v29, %v4198_v40  ;;  %v4100_v43 = vadd.f32 %v4099_v45, %v4098_v17 }
 0x676   : > { %v4202_v23 = vadd.f32 %v4201_v20, %v4200_v50 }
 0x67a   : > { %v4633_v52 = vpop.f32.mrb[28].mxu1 }
 0x67b   : > { %v4039_v46 = vadd.f32 %v4633_v52, %v7127_v61  ;;  %v4033_v4 = vpop.f32.mrb[29].mxu1 }
 0x67c   : > { %v4034_v35 = vadd.f32 %v7127_v61, %v4033_v4 }
 0x67d   : > { %4245 = vst.msk [vmem:[%s7133_s10 + $0xf8] sm:$0xff] %vm1618_vm13, %v4039_v46  ;;  %v4143_v26 = vmul.f32 %v4039_v46, %v4039_v46  ;;  %v4103_v56 = vsel %vm1618_vm13, %v4039_v46, 0.0 }
 0x67e   : > { %v4101_v9 = vsel %vm1618_vm13, %v4034_v35, 0.0  ;;  %v4142_v19 = vmul.f32 %v4034_v35, %v4034_v35  ;;  %4244 = vst.msk [vmem:[%s7133_s10 + $0xf0] sm:$0xff] %vm1618_vm13, %v4034_v35 }
 0x67f   : > { %v4102_v34 = vadd.f32 %v4101_v9, %v4100_v43  ;;  %v4205_v1 = vsel %vm1618_vm13, %v4143_v26, 0.0 }
 0x680   : > { %v4203_v47 = vsel %vm1618_vm13, %v4142_v19, 0.0 }
 0x681   : > { %v4104_v10 = vadd.f32 %v4103_v56, %v4102_v34  ;;  %v4204_v15 = vadd.f32 %v4203_v47, %v4202_v23 }
 0x683   : > { %v4105_v0 = vrot.slane %v4104_v10, 4  ;;  %v4206_v61 = vadd.f32 %v4205_v1, %v4204_v15 }
 0x685   : > { %v4106_v42 = vadd.f32 %v4105_v0, %v4104_v10  ;;  %v4207_v39 = vrot.slane %v4206_v61, 4 }
 0x687   : > { %v4107_v63 = vrot.slane %v4106_v42, 2  ;;  %v4208_v21 = vadd.f32 %v4207_v39, %v4206_v61 }
 0x689   : > { %v4108_v44 = vadd.f32 %v4107_v63, %v4106_v42  ;;  %v4209_v5 = vrot.slane %v4208_v21, 2 }
 0x68b   : > { %v4109_v13 = vrot.slane %v4108_v44, 1  ;;  %v4210_v60 = vadd.f32 %v4209_v5, %v4208_v21 }
 0x68d   : > { %v4110_v2 = vadd.f32 %v4109_v13, %v4108_v44  ;;  %v4211_v22 = vrot.slane %v4210_v60, 1 }
 0x68f   : > { %4111 = vst.msk [vmem:[%s252_s14] sm:$0x1] %vm1628_vm15, %v4110_v2  ;;  %v4212_v28 = vadd.f32 %v4211_v22, %v4210_v60 }
 0x691   : > { %4213 = vst.msk [vmem:[%s252_s14 + $0x1] sm:$0x1] %vm1628_vm15, %v4212_v28 }
 0x692   : > { %4734 = shalt.err (!%p4731_p3)
}
 0x693   : > { %s4735_s17 = scalar_lea.hbm %s7368_s28, 32  ;;  %s4739_s9 = scalar_lea.hbm %s7417_s6, 64 }
 0x694   : > { %p4736_p4 = scmp.ne.s32.totalorder %s7368_s28, %s4735_s17  ;;  %p4740_p9 = scmp.lt.u32.totalorder %s7368_s28, %s7417_s6 }
 0x695   : > { %p4741_p10 = scmp.lt.u32.totalorder %s4739_s9, %s4735_s17  ;;  %p4743_p12 = scmp.lt.u32.totalorder %s4735_s17, %s7368_s28 }
 0x696   : > { %p4737_p7 = pnand %p4736_p4, %p4872_p5 }
 0x697   : > { %p4742_p11 = por %p4741_p10, %p4740_p9 }
 0x698   : > { %p4738_p8 = pneg %p4737_p7 }
 0x699   : > { %p4744_p13 = por %p4743_p12, %p4742_p11 }
 0x69b   : > { %p4745_p0 = pnand %p4744_p13, %p4738_p8 }
 0x69d   : > { %4748 = shalt.err (!%p4745_p0)
}
 0x69e   : > { %4669 = dma.vmem_to_hbm [thread:$0]  (%p4872_p5), %s7370_s16, 32, %s7368_s28, %s4252_s25  }
 0x69f PF: > { %p4675_p1 = scmp.ge.s32.totalorder %s4783_s24, 2  ;;  %s4288_s14 = sand.u32 1, %s4771_s21  }
 0x6a0   : > { %s4289_s18 = scalar_lea.sflag [#allocation6], %s4288_s14 }
 0x6a1   : > { %p4672_p2 = pnand %p4675_p1, %p4876_p6 }
 0x6a3   : > { %4766 = dma.done.wait (!%p4672_p2), %s4289_s18, 32  }
 0x6a4   : > { %4768 = vsyncadd (!%p4672_p2), %s4289_s18, 4294967264  ;;  %p17_p3 = scmp.ge.s32.totalorder %s4859_s27, 4   ;;  %s7613_s21 = smov %s4775_s22 }
 0x6a5   : > { %s7614_s22 = smov %s4779_s23  ;;  %s7615_s23 = smov %s4870_s30 }
 0x6a6   : > { %s7616_s24 = smov %s4859_s27  ;;  %19 = sbr.rel (!%p17_p3) target bundleno = 3 (0x3), region = 90 }
 0x6ad   :  { %4294 = vsyncpa [#allocation6], 1 }
 0x6ae   :  { %4296 = vsyncpa [#allocation6 + $0x1], 1 }

</bundles_post_ra>
